<compile_context>
chip_gen: v7x
topology: tpu7x:2x2x1
jax: 0.10.0
libtpu: 0.0.40
codegen_flags: <defaults>
</compile_context>

<pallas_src>
import functools
import math

import jax
import jax.numpy as jnp
from jax.experimental import pallas as pl
from jax.experimental.pallas import tpu as pltpu


NEG_SLOPE = 0.01            # nn.LeakyReLU default negative_slope
OUT_FEATURES = 1460
DIMS = [5, 2000, 2000, 2000, 2000, 2000, 2000, 1460]


def _round_up(n, m):
    return ((n + m - 1) // m) * m


def _fused_mlp_kernel(x_ref, w1_ref, b1_ref, w_ref, b_ref, o_ref,
                      act0, act1, *, n_tiles, tn):
    """grid = (n_stacked_layers, n_tiles).

    One grid step computes one tn-wide output tile of one stacked 2048x2048
    layer with the full K contraction (bias + LeakyReLU fused).  Activations
    live in the two ping-pong VMEM scratch buffers (shape (n_tiles, Bp, tn)).
    """
    l = pl.program_id(0)
    j = pl.program_id(1)
    last_l = pl.num_programs(0) - 1
    is_last = l == last_l
    bp = x_ref.shape[0]

    # ---- prologue: layer 1 (padded 128 -> 2048), runs once at (0, 0) ------
    @pl.when(jnp.logical_and(l == 0, j == 0))
    def _():
        h = jnp.dot(x_ref[...].astype(jnp.bfloat16), w1_ref[...],
                    preferred_element_type=jnp.float32) + b1_ref[...]
        h = jnp.where(h >= 0, h, NEG_SLOPE * h)
        for t in range(n_tiles):
            act0[t] = h[:, t * tn:(t + 1) * tn]

    # Last stacked layer (linear7) has no LeakyReLU -> slope 1.0 (identity).
    slope = jnp.where(is_last, 1.0, NEG_SLOPE)

    def one_tile(in_scratch, out_scratch):
        acc = jnp.zeros((bp, tn), jnp.float32)
        for t in range(n_tiles):
            acc += jnp.dot(in_scratch[t].astype(jnp.bfloat16),
                           w_ref[0, t * tn:(t + 1) * tn, :],
                           preferred_element_type=jnp.float32)
        y = acc + b_ref[0]
        y = jnp.where(y >= 0, y, slope * y)
        out_scratch[j] = y

        # When the final layer's final tile is done, dump the full activation
        # (earlier tiles were stored in scratch by previous grid steps; the
        # current tile is `y`) into the resident output block.
        @pl.when(jnp.logical_and(is_last, j == n_tiles - 1))
        def _():
            for t in range(n_tiles - 1):
                o_ref[:, t * tn:(t + 1) * tn] = out_scratch[t]
            o_ref[:, (n_tiles - 1) * tn:n_tiles * tn] = y

    @pl.when(l % 2 == 0)
    def _():
        one_tile(act0, act1)

    @pl.when(l % 2 == 1)
    def _():
        one_tile(act1, act0)


def fused_mlp(x_pad, w1, b1, w_stack, b_stack, *, tn=512):
    """x_pad: (Bp, 128) f32; w1: (128, N) bf16; b1: (1, N) f32;
    w_stack: (L, N, N) bf16; b_stack: (L, 1, N) f32  ->  (Bp, N) f32."""
    bp, k1 = x_pad.shape
    n = w1.shape[1]
    n_layers = w_stack.shape[0]
    assert n % tn == 0
    n_tiles = n // tn

    kernel = functools.partial(_fused_mlp_kernel, n_tiles=n_tiles, tn=tn)

    flops = 2 * bp * (k1 * n + n_layers * n * n)
    bytes_accessed = (x_pad.size * 4 + w1.size * 2 + b1.size * 4
                      + w_stack.size * 2 + b_stack.size * 4 + bp * n * 4)

    return pl.pallas_call(
        kernel,
        out_shape=jax.ShapeDtypeStruct((bp, n), jnp.float32),
        grid_spec=pltpu.PrefetchScalarGridSpec(
            num_scalar_prefetch=0,
            grid=(n_layers, n_tiles),
            in_specs=[
                pl.BlockSpec((bp, k1), lambda l, j: (0, 0)),       # x (resident)
                pl.BlockSpec((k1, n), lambda l, j: (0, 0)),        # w1 (resident)
                pl.BlockSpec((1, n), lambda l, j: (0, 0)),         # b1 (resident)
                pl.BlockSpec((1, n, tn), lambda l, j: (l, 0, j)),  # streamed W
                pl.BlockSpec((1, 1, tn), lambda l, j: (l, 0, j)),  # streamed b
            ],
            out_specs=pl.BlockSpec((bp, n), lambda l, j: (0, 0)),  # resident out
            scratch_shapes=[
                pltpu.VMEM((n_tiles, bp, tn), jnp.float32),        # act ping
                pltpu.VMEM((n_tiles, bp, tn), jnp.float32),        # act pong
            ],
        ),
        compiler_params=pltpu.CompilerParams(
            # The layer axis carries the activation dependency and all N tiles
            # of a layer must run on the same core (scratch-resident acts), so
            # both axes are sequential.
            dimension_semantics=("arbitrary", "arbitrary"),
        ),
        cost_estimate=pl.CostEstimate(
            flops=flops, transcendentals=0, bytes_accessed=bytes_accessed),
    )(x_pad, w1, b1, w_stack, b_stack)


# --------------------------- parameter handling -----------------------------

def _xavier_uniform(key, fan_in, fan_out):
    # matches nn.init.xavier_uniform_ (gain=1); stored (in, out) = W^T
    a = math.sqrt(6.0 / (fan_in + fan_out))
    return jax.random.uniform(key, (fan_in, fan_out), jnp.float32,
                              minval=-a, maxval=a)


def _bias_init(key, fan_in, fan_out):
    # PyTorch nn.Linear default bias init: U(-1/sqrt(fan_in), 1/sqrt(fan_in))
    bound = 1.0 / math.sqrt(fan_in)
    return jax.random.uniform(key, (1, fan_out), jnp.float32,
                              minval=-bound, maxval=bound)


def _pad_to(x, rows, cols):
    return jnp.pad(x, ((0, rows - x.shape[0]), (0, cols - x.shape[1])))


def make_params(key):
    """Initialize like the PyTorch module, then pre-pad/stack/cast ONCE."""
    raw = []
    for i in range(len(DIMS) - 1):
        key, kw, kb = jax.random.split(key, 3)
        raw.append((_xavier_uniform(kw, DIMS[i], DIMS[i + 1]),
                    _bias_init(kb, DIMS[i], DIMS[i + 1])))

    k1 = _round_up(DIMS[0], 128)          # 5    -> 128
    n = _round_up(DIMS[1], 128)           # 2000 -> 2048 (1460 also pads to 2048)

    w1, b1 = raw[0]
    w1 = _pad_to(w1, k1, n).astype(jnp.bfloat16)
    b1 = _pad_to(b1, 1, n).astype(jnp.float32)
    w_stack = jnp.stack([_pad_to(w, n, n) for w, _ in raw[1:]]).astype(jnp.bfloat16)
    b_stack = jnp.stack([_pad_to(b, 1, n) for _, b in raw[1:]]).astype(jnp.float32)
    return w1, b1, w_stack, b_stack


# --------------------------------- forward ----------------------------------

@jax.jit
def mlp_forward(x, params):
    """x: (B, 5) float32 -> (B, 1460) float32."""
    w1, b1, w_stack, b_stack = params
    b = x.shape[0]
    h = x.reshape(b, -1).astype(jnp.float32)        # x.view(x.size(0), -1)
    bp = _round_up(max(b, 8), 8)
    h = jnp.pad(h, ((0, bp - b), (0, w1.shape[0] - h.shape[1])))
    out = fused_mlp(h, w1, b1, w_stack, b_stack)
    return out[:b, :OUT_FEATURES]


def mlp_forward_ref(x, params):
    """Pure-JAX reference using the same bf16-weight / bf16-activation-input
    numerics as the kernel (f32 accumulation)."""
    w1, b1, w_stack, b_stack = params
    b = x.shape[0]
    h = x.reshape(b, -1).astype(jnp.float32)
    h = jnp.pad(h, ((0, 0), (0, w1.shape[0] - h.shape[1])))

    def mm(a, w):
        return jnp.dot(a.astype(jnp.bfloat16).astype(jnp.float32),
                       w.astype(jnp.float32))

    h = mm(h, w1) + b1
    h = jnp.where(h >= 0, h, NEG_SLOPE * h)
    n_layers = w_stack.shape[0]
    for l in range(n_layers):
        y = mm(h, w_stack[l]) + b_stack[l]
        h = jnp.where(y >= 0, y, NEG_SLOPE * y) if l < n_layers - 1 else y
    return h[:, :OUT_FEATURES]


if __name__ == "__main__":
    key = jax.random.PRNGKey(0)
    kp, kx = jax.random.split(key)
    params = make_params(kp)

    batch = 2
    x = jax.random.normal(kx, (batch, 5), jnp.float32)

    out = jax.block_until_ready(mlp_forward(x, params))
    ref = mlp_forward_ref(x, params)

    assert out.shape == (batch, OUT_FEATURES), out.shape
    max_err = float(jnp.max(jnp.abs(out - ref)))
    assert jnp.allclose(out, ref, atol=5e-3, rtol=5e-3), max_err
    print("KERNEL_OK")
</pallas_src>

<mosaic_0001>
module attributes {stable_mosaic.version = 11 : i64} {
  func.func @_fused_mlp_kernel(%arg0: i32, %arg1: i32, %arg2: memref<8x128xf32, #tpu.memory_space<vmem>>, %arg3: memref<128x2048xbf16, #tpu.memory_space<vmem>>, %arg4: memref<1x2048xf32, #tpu.memory_space<vmem>>, %arg5: memref<1x2048x512xbf16, #tpu.memory_space<vmem>>, %arg6: memref<1x1x512xf32, #tpu.memory_space<vmem>>, %arg7: memref<8x2048xf32, #tpu.memory_space<vmem>>, %arg8: memref<4x8x512xf32, #tpu.memory_space<vmem>>, %arg9: memref<4x8x512xf32, #tpu.memory_space<vmem>>) attributes {dimension_semantics = [#tpu.dimension_semantics<arbitrary>, #tpu.dimension_semantics<arbitrary>], iteration_bounds = array<i64: 6, 4>, scalar_prefetch = 0 : i64, scratch_operands = 2 : i64, tpu.core_type = #tpu.core_type<tc>, window_params = [{pipeline_mode = #tpu.pipeline_mode<synchronous>, transform_indices = @transform_0, window_bounds = array<i64: 8, 128>}, {pipeline_mode = #tpu.pipeline_mode<synchronous>, transform_indices = @transform_1, window_bounds = array<i64: 128, 2048>}, {pipeline_mode = #tpu.pipeline_mode<synchronous>, transform_indices = @transform_2, window_bounds = array<i64: 1, 2048>}, {transform_indices = @transform_3, window_bounds = array<i64: 1, 2048, 512>}, {transform_indices = @transform_4, window_bounds = array<i64: 1, 1, 512>}, {pipeline_mode = #tpu.pipeline_mode<synchronous>, transform_indices = @transform_5, window_bounds = array<i64: 8, 2048>}]} {
    %c5_i32 = arith.constant 5 : i32
    %0 = arith.cmpi eq, %arg0, %c5_i32 : i32
    %c0_i32 = arith.constant 0 : i32
    %1 = arith.cmpi eq, %arg0, %c0_i32 : i32
    %c0_i32_0 = arith.constant 0 : i32
    %2 = arith.cmpi eq, %arg1, %c0_i32_0 : i32
    %3 = arith.andi %1, %2 : i1
    %4 = arith.extui %3 : i1 to i32
    %c0_i32_1 = arith.constant 0 : i32
    %5 = arith.cmpi ne, %4, %c0_i32_1 : i32
    scf.if %5 {
      %c0 = arith.constant 0 : index
      %c0_17 = arith.constant 0 : index
      %33 = vector.load %arg2[%c0, %c0_17] : memref<8x128xf32, #tpu.memory_space<vmem>>, vector<8x128xf32>
      %34 = arith.truncf %33 : vector<8x128xf32> to vector<8x128xbf16>
      %c0_18 = arith.constant 0 : index
      %c0_19 = arith.constant 0 : index
      %35 = vector.load %arg3[%c0_18, %c0_19] : memref<128x2048xbf16, #tpu.memory_space<vmem>>, vector<128x2048xbf16>
      %cst_20 = arith.constant dense<0.000000e+00> : vector<8x2048xf32>
      %36 = tpu.matmul %34, %35, %cst_20 {dimension_numbers = #tpu.dot_dimension_numbers<[1], [0], [0], [1], [0, 0, 1, 1], [], []>} : vector<8x128xbf16>, vector<128x2048xbf16>, vector<8x2048xf32> -> vector<8x2048xf32>
      %c0_21 = arith.constant 0 : index
      %c0_22 = arith.constant 0 : index
      %37 = vector.load %arg4[%c0_21, %c0_22] : memref<1x2048xf32, #tpu.memory_space<vmem>>, vector<1x2048xf32>
      %38 = vector.broadcast %37 : vector<1x2048xf32> to vector<8x2048xf32>
      %39 = arith.addf %36, %38 : vector<8x2048xf32>
      %cst_23 = arith.constant 0.000000e+00 : f32
      %40 = vector.broadcast %cst_23 : f32 to vector<8x2048xf32>
      %41 = arith.cmpf oge, %39, %40 : vector<8x2048xf32>
      %cst_24 = arith.constant 0.00999999977 : f32
      %42 = vector.broadcast %cst_24 : f32 to vector<8x2048xf32>
      %43 = arith.mulf %42, %39 : vector<8x2048xf32>
      %44 = arith.select %41, %39, %43 : vector<8x2048xi1>, vector<8x2048xf32>
      %45 = vector.extract_strided_slice %44 {offsets = [0, 0], sizes = [8, 512], strides = [1, 1]} : vector<8x2048xf32> to vector<8x512xf32>
      %c0_25 = arith.constant 0 : index
      %c0_26 = arith.constant 0 : index
      %c0_27 = arith.constant 0 : index
      %46 = vector.load %arg8[%c0_25, %c0_26, %c0_27] : memref<4x8x512xf32, #tpu.memory_space<vmem>>, vector<1x8x512xf32>
      %47 = vector.shape_cast %46 : vector<1x8x512xf32> to vector<8x512xf32>
      %48 = vector.shape_cast %45 : vector<8x512xf32> to vector<1x8x512xf32>
      tpu.vector_store %arg8[%c0_25, %c0_26, %c0_27], %48 {strides = array<i32>} : memref<4x8x512xf32, #tpu.memory_space<vmem>>, vector<1x8x512xf32>,
      %49 = vector.extract_strided_slice %44 {offsets = [0, 512], sizes = [8, 512], strides = [1, 1]} : vector<8x2048xf32> to vector<8x512xf32>
      %c1 = arith.constant 1 : index
      %c0_28 = arith.constant 0 : index
      %c0_29 = arith.constant 0 : index
      %50 = vector.load %arg8[%c1, %c0_28, %c0_29] : memref<4x8x512xf32, #tpu.memory_space<vmem>>, vector<1x8x512xf32>
      %51 = vector.shape_cast %50 : vector<1x8x512xf32> to vector<8x512xf32>
      %52 = vector.shape_cast %49 : vector<8x512xf32> to vector<1x8x512xf32>
      tpu.vector_store %arg8[%c1, %c0_28, %c0_29], %52 {strides = array<i32>} : memref<4x8x512xf32, #tpu.memory_space<vmem>>, vector<1x8x512xf32>,
      %53 = vector.extract_strided_slice %44 {offsets = [0, 1024], sizes = [8, 512], strides = [1, 1]} : vector<8x2048xf32> to vector<8x512xf32>
      %c2 = arith.constant 2 : index
      %c0_30 = arith.constant 0 : index
      %c0_31 = arith.constant 0 : index
      %54 = vector.load %arg8[%c2, %c0_30, %c0_31] : memref<4x8x512xf32, #tpu.memory_space<vmem>>, vector<1x8x512xf32>
      %55 = vector.shape_cast %54 : vector<1x8x512xf32> to vector<8x512xf32>
      %56 = vector.shape_cast %53 : vector<8x512xf32> to vector<1x8x512xf32>
      tpu.vector_store %arg8[%c2, %c0_30, %c0_31], %56 {strides = array<i32>} : memref<4x8x512xf32, #tpu.memory_space<vmem>>, vector<1x8x512xf32>,
      %57 = vector.extract_strided_slice %44 {offsets = [0, 1536], sizes = [8, 512], strides = [1, 1]} : vector<8x2048xf32> to vector<8x512xf32>
      %c3 = arith.constant 3 : index
      %c0_32 = arith.constant 0 : index
      %c0_33 = arith.constant 0 : index
      %58 = vector.load %arg8[%c3, %c0_32, %c0_33] : memref<4x8x512xf32, #tpu.memory_space<vmem>>, vector<1x8x512xf32>
      %59 = vector.shape_cast %58 : vector<1x8x512xf32> to vector<8x512xf32>
      %60 = vector.shape_cast %57 : vector<8x512xf32> to vector<1x8x512xf32>
      tpu.vector_store %arg8[%c3, %c0_32, %c0_33], %60 {strides = array<i32>} : memref<4x8x512xf32, #tpu.memory_space<vmem>>, vector<1x8x512xf32>,
    } else {
    }
    %cst = arith.constant 1.000000e+00 : f32
    %cst_2 = arith.constant 0.00999999977 : f32
    %6 = arith.select %0, %cst, %cst_2 : f32
    %c2_i32 = arith.constant 2 : i32
    %c0_i32_3 = arith.constant 0 : i32
    %7 = arith.cmpi eq, %c2_i32, %c0_i32_3 : i32
    %c1_i32 = arith.constant 1 : i32
    %8 = arith.select %7, %c1_i32, %c2_i32 : i32
    %9 = arith.remsi %arg0, %8 : i32
    %c0_i32_4 = arith.constant 0 : i32
    %10 = arith.cmpi ne, %9, %c0_i32_4 : i32
    %c0_i32_5 = arith.constant 0 : i32
    %11 = arith.cmpi slt, %9, %c0_i32_5 : i32
    %c0_i32_6 = arith.constant 0 : i32
    %12 = arith.cmpi slt, %8, %c0_i32_6 : i32
    %13 = arith.xori %11, %12 : i1
    %14 = arith.andi %13, %10 : i1
    %15 = arith.addi %9, %8 : i32
    %16 = arith.select %14, %15, %9 : i32
    %c0_i32_7 = arith.constant 0 : i32
    %17 = arith.cmpi eq, %16, %c0_i32_7 : i32
    %18 = arith.extui %17 : i1 to i32
    %c0_i32_8 = arith.constant 0 : i32
    %19 = arith.cmpi ne, %18, %c0_i32_8 : i32
    scf.if %19 {
      %cst_17 = arith.constant 0.000000e+00 : f32
      %33 = vector.broadcast %cst_17 : f32 to vector<8x512xf32>
      %c0 = arith.constant 0 : index
      %c0_18 = arith.constant 0 : index
      %c0_19 = arith.constant 0 : index
      %34 = vector.load %arg8[%c0, %c0_18, %c0_19] : memref<4x8x512xf32, #tpu.memory_space<vmem>>, vector<1x8x512xf32>
      %35 = vector.shape_cast %34 : vector<1x8x512xf32> to vector<8x512xf32>
      %36 = arith.truncf %35 : vector<8x512xf32> to vector<8x512xbf16>
      %c0_20 = arith.constant 0 : index
      %c0_21 = arith.constant 0 : index
      %c0_22 = arith.constant 0 : index
      %37 = vector.load %arg5[%c0_20, %c0_21, %c0_22] : memref<1x2048x512xbf16, #tpu.memory_space<vmem>>, vector<1x512x512xbf16>
      %38 = vector.shape_cast %37 : vector<1x512x512xbf16> to vector<512x512xbf16>
      %cst_23 = arith.constant dense<0.000000e+00> : vector<8x512xf32>
      %39 = tpu.matmul %36, %38, %cst_23 {dimension_numbers = #tpu.dot_dimension_numbers<[1], [0], [0], [1], [0, 0, 1, 1], [], []>} : vector<8x512xbf16>, vector<512x512xbf16>, vector<8x512xf32> -> vector<8x512xf32>
      %40 = arith.addf %33, %39 : vector<8x512xf32>
      %c1 = arith.constant 1 : index
      %c0_24 = arith.constant 0 : index
      %c0_25 = arith.constant 0 : index
      %41 = vector.load %arg8[%c1, %c0_24, %c0_25] : memref<4x8x512xf32, #tpu.memory_space<vmem>>, vector<1x8x512xf32>
      %42 = vector.shape_cast %41 : vector<1x8x512xf32> to vector<8x512xf32>
      %43 = arith.truncf %42 : vector<8x512xf32> to vector<8x512xbf16>
      %c0_26 = arith.constant 0 : index
      %c512 = arith.constant 512 : index
      %c0_27 = arith.constant 0 : index
      %44 = vector.load %arg5[%c0_26, %c512, %c0_27] : memref<1x2048x512xbf16, #tpu.memory_space<vmem>>, vector<1x512x512xbf16>
      %45 = vector.shape_cast %44 : vector<1x512x512xbf16> to vector<512x512xbf16>
      %cst_28 = arith.constant dense<0.000000e+00> : vector<8x512xf32>
      %46 = tpu.matmul %43, %45, %cst_28 {dimension_numbers = #tpu.dot_dimension_numbers<[1], [0], [0], [1], [0, 0, 1, 1], [], []>} : vector<8x512xbf16>, vector<512x512xbf16>, vector<8x512xf32> -> vector<8x512xf32>
      %47 = arith.addf %40, %46 : vector<8x512xf32>
      %c2 = arith.constant 2 : index
      %c0_29 = arith.constant 0 : index
      %c0_30 = arith.constant 0 : index
      %48 = vector.load %arg8[%c2, %c0_29, %c0_30] : memref<4x8x512xf32, #tpu.memory_space<vmem>>, vector<1x8x512xf32>
      %49 = vector.shape_cast %48 : vector<1x8x512xf32> to vector<8x512xf32>
      %50 = arith.truncf %49 : vector<8x512xf32> to vector<8x512xbf16>
      %c0_31 = arith.constant 0 : index
      %c1024 = arith.constant 1024 : index
      %c0_32 = arith.constant 0 : index
      %51 = vector.load %arg5[%c0_31, %c1024, %c0_32] : memref<1x2048x512xbf16, #tpu.memory_space<vmem>>, vector<1x512x512xbf16>
      %52 = vector.shape_cast %51 : vector<1x512x512xbf16> to vector<512x512xbf16>
      %cst_33 = arith.constant dense<0.000000e+00> : vector<8x512xf32>
      %53 = tpu.matmul %50, %52, %cst_33 {dimension_numbers = #tpu.dot_dimension_numbers<[1], [0], [0], [1], [0, 0, 1, 1], [], []>} : vector<8x512xbf16>, vector<512x512xbf16>, vector<8x512xf32> -> vector<8x512xf32>
      %54 = arith.addf %47, %53 : vector<8x512xf32>
      %c3 = arith.constant 3 : index
      %c0_34 = arith.constant 0 : index
      %c0_35 = arith.constant 0 : index
      %55 = vector.load %arg8[%c3, %c0_34, %c0_35] : memref<4x8x512xf32, #tpu.memory_space<vmem>>, vector<1x8x512xf32>
      %56 = vector.shape_cast %55 : vector<1x8x512xf32> to vector<8x512xf32>
      %57 = arith.truncf %56 : vector<8x512xf32> to vector<8x512xbf16>
      %c0_36 = arith.constant 0 : index
      %c1536 = arith.constant 1536 : index
      %c0_37 = arith.constant 0 : index
      %58 = vector.load %arg5[%c0_36, %c1536, %c0_37] : memref<1x2048x512xbf16, #tpu.memory_space<vmem>>, vector<1x512x512xbf16>
      %59 = vector.shape_cast %58 : vector<1x512x512xbf16> to vector<512x512xbf16>
      %cst_38 = arith.constant dense<0.000000e+00> : vector<8x512xf32>
      %60 = tpu.matmul %57, %59, %cst_38 {dimension_numbers = #tpu.dot_dimension_numbers<[1], [0], [0], [1], [0, 0, 1, 1], [], []>} : vector<8x512xbf16>, vector<512x512xbf16>, vector<8x512xf32> -> vector<8x512xf32>
      %61 = arith.addf %54, %60 : vector<8x512xf32>
      %c0_39 = arith.constant 0 : index
      %c0_40 = arith.constant 0 : index
      %c0_41 = arith.constant 0 : index
      %62 = vector.load %arg6[%c0_39, %c0_40, %c0_41] : memref<1x1x512xf32, #tpu.memory_space<vmem>>, vector<1x1x512xf32>
      %63 = vector.shape_cast %62 : vector<1x1x512xf32> to vector<1x512xf32>
      %64 = vector.broadcast %63 : vector<1x512xf32> to vector<8x512xf32>
      %65 = arith.addf %61, %64 : vector<8x512xf32>
      %cst_42 = arith.constant 0.000000e+00 : f32
      %66 = vector.broadcast %cst_42 : f32 to vector<8x512xf32>
      %67 = arith.cmpf oge, %65, %66 : vector<8x512xf32>
      %68 = vector.broadcast %6 : f32 to vector<8x512xf32>
      %69 = arith.mulf %68, %65 : vector<8x512xf32>
      %70 = arith.select %67, %65, %69 : vector<8x512xi1>, vector<8x512xf32>
      %71 = arith.index_cast %arg1 : i32 to index
      %c0_43 = arith.constant 0 : index
      %c0_44 = arith.constant 0 : index
      %72 = vector.load %arg9[%71, %c0_43, %c0_44] : memref<4x8x512xf32, #tpu.memory_space<vmem>>, vector<1x8x512xf32>
      %73 = vector.shape_cast %72 : vector<1x8x512xf32> to vector<8x512xf32>
      %74 = vector.shape_cast %70 : vector<8x512xf32> to vector<1x8x512xf32>
      tpu.vector_store %arg9[%71, %c0_43, %c0_44], %74 {strides = array<i32>} : memref<4x8x512xf32, #tpu.memory_space<vmem>>, vector<1x8x512xf32>,
      %c3_i32 = arith.constant 3 : i32
      %75 = arith.cmpi eq, %arg1, %c3_i32 : i32
      %76 = arith.andi %0, %75 : i1
      %77 = arith.extui %76 : i1 to i32
      %c0_i32_45 = arith.constant 0 : i32
      %78 = arith.cmpi ne, %77, %c0_i32_45 : i32
      scf.if %78 {
        %c0_46 = arith.constant 0 : index
        %c0_47 = arith.constant 0 : index
        %c0_48 = arith.constant 0 : index
        %79 = vector.load %arg9[%c0_46, %c0_47, %c0_48] : memref<4x8x512xf32, #tpu.memory_space<vmem>>, vector<1x8x512xf32>
        %80 = vector.shape_cast %79 : vector<1x8x512xf32> to vector<8x512xf32>
        %c0_49 = arith.constant 0 : index
        %c0_50 = arith.constant 0 : index
        %81 = vector.load %arg7[%c0_49, %c0_50] : memref<8x2048xf32, #tpu.memory_space<vmem>>, vector<8x512xf32>
        tpu.vector_store %arg7[%c0_49, %c0_50], %80 {strides = array<i32>} : memref<8x2048xf32, #tpu.memory_space<vmem>>, vector<8x512xf32>,
        %c1_51 = arith.constant 1 : index
        %c0_52 = arith.constant 0 : index
        %c0_53 = arith.constant 0 : index
        %82 = vector.load %arg9[%c1_51, %c0_52, %c0_53] : memref<4x8x512xf32, #tpu.memory_space<vmem>>, vector<1x8x512xf32>
        %83 = vector.shape_cast %82 : vector<1x8x512xf32> to vector<8x512xf32>
        %c0_54 = arith.constant 0 : index
        %c512_55 = arith.constant 512 : index
        %84 = vector.load %arg7[%c0_54, %c512_55] : memref<8x2048xf32, #tpu.memory_space<vmem>>, vector<8x512xf32>
        tpu.vector_store %arg7[%c0_54, %c512_55], %83 {strides = array<i32>} : memref<8x2048xf32, #tpu.memory_space<vmem>>, vector<8x512xf32>,
        %c2_56 = arith.constant 2 : index
        %c0_57 = arith.constant 0 : index
        %c0_58 = arith.constant 0 : index
        %85 = vector.load %arg9[%c2_56, %c0_57, %c0_58] : memref<4x8x512xf32, #tpu.memory_space<vmem>>, vector<1x8x512xf32>
        %86 = vector.shape_cast %85 : vector<1x8x512xf32> to vector<8x512xf32>
        %c0_59 = arith.constant 0 : index
        %c1024_60 = arith.constant 1024 : index
        %87 = vector.load %arg7[%c0_59, %c1024_60] : memref<8x2048xf32, #tpu.memory_space<vmem>>, vector<8x512xf32>
        tpu.vector_store %arg7[%c0_59, %c1024_60], %86 {strides = array<i32>} : memref<8x2048xf32, #tpu.memory_space<vmem>>, vector<8x512xf32>,
        %c0_61 = arith.constant 0 : index
        %c1536_62 = arith.constant 1536 : index
        %88 = vector.load %arg7[%c0_61, %c1536_62] : memref<8x2048xf32, #tpu.memory_space<vmem>>, vector<8x512xf32>
        tpu.vector_store %arg7[%c0_61, %c1536_62], %70 {strides = array<i32>} : memref<8x2048xf32, #tpu.memory_space<vmem>>, vector<8x512xf32>,
      } else {
      }
    } else {
    }
    %c2_i32_9 = arith.constant 2 : i32
    %c0_i32_10 = arith.constant 0 : i32
    %20 = arith.cmpi eq, %c2_i32_9, %c0_i32_10 : i32
    %c1_i32_11 = arith.constant 1 : i32
    %21 = arith.select %20, %c1_i32_11, %c2_i32_9 : i32
    %22 = arith.remsi %arg0, %21 : i32
    %c0_i32_12 = arith.constant 0 : i32
    %23 = arith.cmpi ne, %22, %c0_i32_12 : i32
    %c0_i32_13 = arith.constant 0 : i32
    %24 = arith.cmpi slt, %22, %c0_i32_13 : i32
    %c0_i32_14 = arith.constant 0 : i32
    %25 = arith.cmpi slt, %21, %c0_i32_14 : i32
    %26 = arith.xori %24, %25 : i1
    %27 = arith.andi %26, %23 : i1
    %28 = arith.addi %22, %21 : i32
    %29 = arith.select %27, %28, %22 : i32
    %c1_i32_15 = arith.constant 1 : i32
    %30 = arith.cmpi eq, %29, %c1_i32_15 : i32
    %31 = arith.extui %30 : i1 to i32
    %c0_i32_16 = arith.constant 0 : i32
    %32 = arith.cmpi ne, %31, %c0_i32_16 : i32
    scf.if %32 {
      %cst_17 = arith.constant 0.000000e+00 : f32
      %33 = vector.broadcast %cst_17 : f32 to vector<8x512xf32>
      %c0 = arith.constant 0 : index
      %c0_18 = arith.constant 0 : index
      %c0_19 = arith.constant 0 : index
      %34 = vector.load %arg9[%c0, %c0_18, %c0_19] : memref<4x8x512xf32, #tpu.memory_space<vmem>>, vector<1x8x512xf32>
      %35 = vector.shape_cast %34 : vector<1x8x512xf32> to vector<8x512xf32>
      %36 = arith.truncf %35 : vector<8x512xf32> to vector<8x512xbf16>
      %c0_20 = arith.constant 0 : index
      %c0_21 = arith.constant 0 : index
      %c0_22 = arith.constant 0 : index
      %37 = vector.load %arg5[%c0_20, %c0_21, %c0_22] : memref<1x2048x512xbf16, #tpu.memory_space<vmem>>, vector<1x512x512xbf16>
      %38 = vector.shape_cast %37 : vector<1x512x512xbf16> to vector<512x512xbf16>
      %cst_23 = arith.constant dense<0.000000e+00> : vector<8x512xf32>
      %39 = tpu.matmul %36, %38, %cst_23 {dimension_numbers = #tpu.dot_dimension_numbers<[1], [0], [0], [1], [0, 0, 1, 1], [], []>} : vector<8x512xbf16>, vector<512x512xbf16>, vector<8x512xf32> -> vector<8x512xf32>
      %40 = arith.addf %33, %39 : vector<8x512xf32>
      %c1 = arith.constant 1 : index
      %c0_24 = arith.constant 0 : index
      %c0_25 = arith.constant 0 : index
      %41 = vector.load %arg9[%c1, %c0_24, %c0_25] : memref<4x8x512xf32, #tpu.memory_space<vmem>>, vector<1x8x512xf32>
      %42 = vector.shape_cast %41 : vector<1x8x512xf32> to vector<8x512xf32>
      %43 = arith.truncf %42 : vector<8x512xf32> to vector<8x512xbf16>
      %c0_26 = arith.constant 0 : index
      %c512 = arith.constant 512 : index
      %c0_27 = arith.constant 0 : index
      %44 = vector.load %arg5[%c0_26, %c512, %c0_27] : memref<1x2048x512xbf16, #tpu.memory_space<vmem>>, vector<1x512x512xbf16>
      %45 = vector.shape_cast %44 : vector<1x512x512xbf16> to vector<512x512xbf16>
      %cst_28 = arith.constant dense<0.000000e+00> : vector<8x512xf32>
      %46 = tpu.matmul %43, %45, %cst_28 {dimension_numbers = #tpu.dot_dimension_numbers<[1], [0], [0], [1], [0, 0, 1, 1], [], []>} : vector<8x512xbf16>, vector<512x512xbf16>, vector<8x512xf32> -> vector<8x512xf32>
      %47 = arith.addf %40, %46 : vector<8x512xf32>
      %c2 = arith.constant 2 : index
      %c0_29 = arith.constant 0 : index
      %c0_30 = arith.constant 0 : index
      %48 = vector.load %arg9[%c2, %c0_29, %c0_30] : memref<4x8x512xf32, #tpu.memory_space<vmem>>, vector<1x8x512xf32>
      %49 = vector.shape_cast %48 : vector<1x8x512xf32> to vector<8x512xf32>
      %50 = arith.truncf %49 : vector<8x512xf32> to vector<8x512xbf16>
      %c0_31 = arith.constant 0 : index
      %c1024 = arith.constant 1024 : index
      %c0_32 = arith.constant 0 : index
      %51 = vector.load %arg5[%c0_31, %c1024, %c0_32] : memref<1x2048x512xbf16, #tpu.memory_space<vmem>>, vector<1x512x512xbf16>
      %52 = vector.shape_cast %51 : vector<1x512x512xbf16> to vector<512x512xbf16>
      %cst_33 = arith.constant dense<0.000000e+00> : vector<8x512xf32>
      %53 = tpu.matmul %50, %52, %cst_33 {dimension_numbers = #tpu.dot_dimension_numbers<[1], [0], [0], [1], [0, 0, 1, 1], [], []>} : vector<8x512xbf16>, vector<512x512xbf16>, vector<8x512xf32> -> vector<8x512xf32>
      %54 = arith.addf %47, %53 : vector<8x512xf32>
      %c3 = arith.constant 3 : index
      %c0_34 = arith.constant 0 : index
      %c0_35 = arith.constant 0 : index
      %55 = vector.load %arg9[%c3, %c0_34, %c0_35] : memref<4x8x512xf32, #tpu.memory_space<vmem>>, vector<1x8x512xf32>
      %56 = vector.shape_cast %55 : vector<1x8x512xf32> to vector<8x512xf32>
      %57 = arith.truncf %56 : vector<8x512xf32> to vector<8x512xbf16>
      %c0_36 = arith.constant 0 : index
      %c1536 = arith.constant 1536 : index
      %c0_37 = arith.constant 0 : index
      %58 = vector.load %arg5[%c0_36, %c1536, %c0_37] : memref<1x2048x512xbf16, #tpu.memory_space<vmem>>, vector<1x512x512xbf16>
      %59 = vector.shape_cast %58 : vector<1x512x512xbf16> to vector<512x512xbf16>
      %cst_38 = arith.constant dense<0.000000e+00> : vector<8x512xf32>
      %60 = tpu.matmul %57, %59, %cst_38 {dimension_numbers = #tpu.dot_dimension_numbers<[1], [0], [0], [1], [0, 0, 1, 1], [], []>} : vector<8x512xbf16>, vector<512x512xbf16>, vector<8x512xf32> -> vector<8x512xf32>
      %61 = arith.addf %54, %60 : vector<8x512xf32>
      %c0_39 = arith.constant 0 : index
      %c0_40 = arith.constant 0 : index
      %c0_41 = arith.constant 0 : index
      %62 = vector.load %arg6[%c0_39, %c0_40, %c0_41] : memref<1x1x512xf32, #tpu.memory_space<vmem>>, vector<1x1x512xf32>
      %63 = vector.shape_cast %62 : vector<1x1x512xf32> to vector<1x512xf32>
      %64 = vector.broadcast %63 : vector<1x512xf32> to vector<8x512xf32>
      %65 = arith.addf %61, %64 : vector<8x512xf32>
      %cst_42 = arith.constant 0.000000e+00 : f32
      %66 = vector.broadcast %cst_42 : f32 to vector<8x512xf32>
      %67 = arith.cmpf oge, %65, %66 : vector<8x512xf32>
      %68 = vector.broadcast %6 : f32 to vector<8x512xf32>
      %69 = arith.mulf %68, %65 : vector<8x512xf32>
      %70 = arith.select %67, %65, %69 : vector<8x512xi1>, vector<8x512xf32>
      %71 = arith.index_cast %arg1 : i32 to index
      %c0_43 = arith.constant 0 : index
      %c0_44 = arith.constant 0 : index
      %72 = vector.load %arg8[%71, %c0_43, %c0_44] : memref<4x8x512xf32, #tpu.memory_space<vmem>>, vector<1x8x512xf32>
      %73 = vector.shape_cast %72 : vector<1x8x512xf32> to vector<8x512xf32>
      %74 = vector.shape_cast %70 : vector<8x512xf32> to vector<1x8x512xf32>
      tpu.vector_store %arg8[%71, %c0_43, %c0_44], %74 {strides = array<i32>} : memref<4x8x512xf32, #tpu.memory_space<vmem>>, vector<1x8x512xf32>,
      %c3_i32 = arith.constant 3 : i32
      %75 = arith.cmpi eq, %arg1, %c3_i32 : i32
      %76 = arith.andi %0, %75 : i1
      %77 = arith.extui %76 : i1 to i32
      %c0_i32_45 = arith.constant 0 : i32
      %78 = arith.cmpi ne, %77, %c0_i32_45 : i32
      scf.if %78 {
        %c0_46 = arith.constant 0 : index
        %c0_47 = arith.constant 0 : index
        %c0_48 = arith.constant 0 : index
        %79 = vector.load %arg8[%c0_46, %c0_47, %c0_48] : memref<4x8x512xf32, #tpu.memory_space<vmem>>, vector<1x8x512xf32>
        %80 = vector.shape_cast %79 : vector<1x8x512xf32> to vector<8x512xf32>
        %c0_49 = arith.constant 0 : index
        %c0_50 = arith.constant 0 : index
        %81 = vector.load %arg7[%c0_49, %c0_50] : memref<8x2048xf32, #tpu.memory_space<vmem>>, vector<8x512xf32>
        tpu.vector_store %arg7[%c0_49, %c0_50], %80 {strides = array<i32>} : memref<8x2048xf32, #tpu.memory_space<vmem>>, vector<8x512xf32>,
        %c1_51 = arith.constant 1 : index
        %c0_52 = arith.constant 0 : index
        %c0_53 = arith.constant 0 : index
        %82 = vector.load %arg8[%c1_51, %c0_52, %c0_53] : memref<4x8x512xf32, #tpu.memory_space<vmem>>, vector<1x8x512xf32>
        %83 = vector.shape_cast %82 : vector<1x8x512xf32> to vector<8x512xf32>
        %c0_54 = arith.constant 0 : index
        %c512_55 = arith.constant 512 : index
        %84 = vector.load %arg7[%c0_54, %c512_55] : memref<8x2048xf32, #tpu.memory_space<vmem>>, vector<8x512xf32>
        tpu.vector_store %arg7[%c0_54, %c512_55], %83 {strides = array<i32>} : memref<8x2048xf32, #tpu.memory_space<vmem>>, vector<8x512xf32>,
        %c2_56 = arith.constant 2 : index
        %c0_57 = arith.constant 0 : index
        %c0_58 = arith.constant 0 : index
        %85 = vector.load %arg8[%c2_56, %c0_57, %c0_58] : memref<4x8x512xf32, #tpu.memory_space<vmem>>, vector<1x8x512xf32>
        %86 = vector.shape_cast %85 : vector<1x8x512xf32> to vector<8x512xf32>
        %c0_59 = arith.constant 0 : index
        %c1024_60 = arith.constant 1024 : index
        %87 = vector.load %arg7[%c0_59, %c1024_60] : memref<8x2048xf32, #tpu.memory_space<vmem>>, vector<8x512xf32>
        tpu.vector_store %arg7[%c0_59, %c1024_60], %86 {strides = array<i32>} : memref<8x2048xf32, #tpu.memory_space<vmem>>, vector<8x512xf32>,
        %c0_61 = arith.constant 0 : index
        %c1536_62 = arith.constant 1536 : index
        %88 = vector.load %arg7[%c0_61, %c1536_62] : memref<8x2048xf32, #tpu.memory_space<vmem>>, vector<8x512xf32>
        tpu.vector_store %arg7[%c0_61, %c1536_62], %70 {strides = array<i32>} : memref<8x2048xf32, #tpu.memory_space<vmem>>, vector<8x512xf32>,
      } else {
      }
    } else {
    }
    return
  }
  func.func @transform_0(%arg0: i32, %arg1: i32) -> (i32, i32) {
    %c0_i32 = arith.constant 0 : i32
    %c0_i32_0 = arith.constant 0 : i32
    %c0_i32_1 = arith.constant 0 : i32
    return %c0_i32, %c0_i32_0 : i32, i32
  }
  func.func @transform_1(%arg0: i32, %arg1: i32) -> (i32, i32) {
    %c0_i32 = arith.constant 0 : i32
    %c0_i32_0 = arith.constant 0 : i32
    %c0_i32_1 = arith.constant 0 : i32
    return %c0_i32, %c0_i32_0 : i32, i32
  }
  func.func @transform_2(%arg0: i32, %arg1: i32) -> (i32, i32) {
    %c0_i32 = arith.constant 0 : i32
    %c0_i32_0 = arith.constant 0 : i32
    %c0_i32_1 = arith.constant 0 : i32
    return %c0_i32, %c0_i32_0 : i32, i32
  }
  func.func @transform_3(%arg0: i32, %arg1: i32) -> (i32, i32, i32) {
    %c0_i32 = arith.constant 0 : i32
    %c0_i32_0 = arith.constant 0 : i32
    return %arg0, %c0_i32, %arg1 : i32, i32, i32
  }
  func.func @transform_4(%arg0: i32, %arg1: i32) -> (i32, i32, i32) {
    %c0_i32 = arith.constant 0 : i32
    %c0_i32_0 = arith.constant 0 : i32
    return %arg0, %c0_i32, %arg1 : i32, i32, i32
  }
  func.func @transform_5(%arg0: i32, %arg1: i32) -> (i32, i32) {
    %c0_i32 = arith.constant 0 : i32
    %c0_i32_0 = arith.constant 0 : i32
    %c0_i32_1 = arith.constant 0 : i32
    return %c0_i32, %c0_i32_0 : i32, i32
  }
}

</mosaic_0001>

<bundles_post_ra>
// kernel: mlp_forward.1
= control target key start
LH: loop header
LB: loop body
LE: loop exit
PB: predicated region body
PF: predicated region fallthrough
CT: control target
= control target key end

     0   :  { %s14085_s0 = inlined_call_operand.vmem [shape: f32[8,128], index: 0, kind: input, shape index: {}]   ;;  %s14086_s1 = inlined_call_operand.hbm [shape: bf16[128,2048], index: 1, kind: input, shape index: {}]   ;;  %s14087_s2 = inlined_call_operand.hbm [shape: f32[1,2048], index: 2, kind: input, shape index: {}]   ;;  %s14088_s3 = inlined_call_operand.hbm [shape: bf16[6,2048,2048], index: 3, kind: input, shape index: {}]   ;;  %s14089_s4 = inlined_call_operand.hbm [shape: f32[6,1,2048], index: 4, kind: input, shape index: {}]   ;;  %s14090_s5 = inlined_call_operand.vmem [shape: f32[8,2048], index: 5, kind: output, shape index: {}]  }
   0x1   :  { %14109 = sst [smem:[#allocation16_spill]] %s14085_s0 }
   0x2   :  { %14110 = sst [smem:[#allocation17_spill]] %s14086_s1 }
   0x3   :  { %14111 = sst [smem:[#allocation18_spill]] %s14088_s3 }
   0x4   :  { %14112 = sst [smem:[#allocation19_spill]] %s14090_s5 }
   0x5   :  { %10 = vsyncpa [#allocation5], 0 }
   0x6   :  { %11 = vsyncpa [#allocation7], 0  ;;  %s12446_s18 = smov 0   ;;  %s12448_s19 = smov 0  }
   0x7   :  { %s12450_s20 = smov 0   ;;  %s12452_s21 = smov 0  }
   0x8   :  { %s12454_s22 = smov 0   ;;  %s12456_s23 = smov 0  }
   0x9   :  { %s12458_s24 = smov 0   ;;  %s12460_s25 = smov 0  }
   0xa LB: > { %14113 = sst [smem:[#allocation13_spill]] %s12389_s21  ;;  %s14096_s26 = sadd.s32 4294967295, %s12405_s25   ;;  %s12405_s25 = sphi %s12460_s25, %s17_s25   ;;  %s12401_s24 = sphi %s12458_s24, %s14153_s24   ;;  %s12397_s23 = sphi %s12456_s23, %s14152_s23   ;;  %s12393_s22 = sphi %s12454_s22, %s14151_s22   ;;  %s12389_s21 = sphi %s12452_s21, %s14150_s21   ;;  %s12385_s20 = sphi %s12450_s20, %s14149_s20   ;;  %s12381_s19 = sphi %s12448_s19, %s14148_s19   ;;  %s12377_s18 = sphi %s12446_s18, %s14147_s18  }
   0xb   : > { %p108_p0 = scmp.ne.s32.totalorder %s12385_s20, %s12381_s19  ;;  %p109_p1 = scmp.eq.s32.totalorder %s12405_s25, 0 }
   0xc   : > { %p114_p2 = scmp.ne.s32.totalorder %s12381_s19, %s12377_s18  ;;  %p12492_p3 = scmp.eq.s32.totalorder %s14096_s26, 0 }
   0xd   : > { %p110_p4 = por %p109_p1, %p108_p0  ;;  %p9395_p5 = scmp.ge.s32.totalorder %s12405_s25, 1 }
   0xe   : > { %s14114_s28 = scalar_select %p12492_p3, 1, 0 }
   0xf   : > { %p12499_p6 = por %p12492_p3, %p114_p2  ;;  %p174_p7 = scmp.lt.s32.totalorder %s12405_s25, 25 }
  0x10   : > { %s12407_s6 = smov [#allocation4]   ;;  %p10605_p10 = scmp.lt.s32.totalorder %s12405_s25, 24 }
  0x11   : > { %s14115_s29 = scalar_select %p12499_p6, 1, 0 }
  0x12   : > { %p12504_p8 = pnand %p9395_p5, %p174_p7  ;;  %s189_s7 = sshll.u32 %s12407_s6, 4  ;;  %s190_s7 = int_to_ptr.vmem [resolvable:$true] %s189_s7 }
  0x13   : > { %p12517_p12 = pnand %p10605_p10, %p110_p4  ;;  %s14119_s1 = sld [smem:[#allocation17_spill]] }
  0x14   : > { %s14116_s30 = scalar_select %p12504_p8, 1, 0 }
  0x15   : > { %p10589_p9 = pneg %p12504_p8 }
  0x16   : > { %s14118_s9 = scalar_select %p12517_p12, 1, 0 }
  0x17   : > { %p12513_p11 = pnand %p10589_p9, %p12492_p3 }
  0x19   : > { %s12215_s12 = scalar_lea.hbm %s14119_s1, 16384  ;;  %p14104_p0 = pneg %p12513_p11 }
  0x1a   : > { %p12216_p13 = scmp.ne.s32.totalorder %s14119_s1, %s12215_s12  ;;  %p12222_p4 = scmp.lt.u32.totalorder %s12215_s12, %s14119_s1 }
  0x1c   : > { %p12218_p1 = pnand %p14104_p0, %p12216_p13 }
  0x1e   : > { %p12219_p2 = pneg %p12218_p1 }
  0x20   : > { %p12224_p5 = pnand %p12222_p4, %p12219_p2 }
  0x22   : > { %12227 = shalt.err (!%p12224_p5)
}
  0x23   : > { %s12228_s17 = scalar_lea.vmem %s190_s7, 16384  ;;  %p12236_p6 = scmp.lt.s32.totalorder %s190_s7, %s190_s7 }
  0x24   : > { %p12229_p7 = scmp.ne.s32.totalorder %s190_s7, %s12228_s17  ;;  %p12237_p3 = scmp.lt.s32.totalorder %s12228_s17, %s12228_s17 }
  0x26   : > { %p12231_p9 = pnand %p12229_p7, %p14104_p0  ;;  %p12238_p8 = por %p12237_p3, %p12236_p6 }
  0x28   : > { %p12232_p10 = pneg %p12231_p9 }
  0x2a   : > { %p12239_p12 = pnand %p12238_p8, %p12232_p10 }
  0x2c   : > { %12242 = shalt.err (!%p12239_p12)
}
  0x2d   : > { %s14097_s18 = smov 1024   ;;  %s12409_s6 = smov 64  }
  0x2e   : > { %10592 = dma.hbm_to_vmem [thread:$0]  (!%p12513_p11), %s14119_s1, 16384, %s190_s7, [#allocation5], %s14097_s18, %s14097_s18, %s12409_s6  }
  0x2f   : > { %s26_s12 = sadd.s32 1, %s12397_s23  ;;  %s29_s13 = sadd.s32 1, %s12401_s24 }
  0x30   : > { %p27_p3 = scmp.ge.s32.totalorder %s26_s12, 4  ;;  %s214_s14 = sand.u32 1, %s12405_s25  }
  0x31   : > { %s14101_s15 = sand.u32 1, %s12385_s20   ;;  %s14105_s26 = sshll.u32 %s12397_s23, 2 }
  0x32   : > { %s14155_s12 = smov (%p27_p3, %s26_s12), 0  ;;  %s14157_s13 = smov (!%p27_p3, %s29_s13), %s12401_s24 }
  0x33   : > { %14120 = sst [smem:[#allocation14_spill]] %s14155_s12  ;;  %s97_s16 = ssub.s32 %s12397_s23, %s14155_s12 }
  0x34   : > { %s9399_s17 = sshll.u32 %s14101_s15, 12  ;;  %p31_p6 = scmp.ge.s32.totalorder %s14157_s13, 6 }
  0x35   : > { %s9401_s10 = sshll.u32 %s12401_s24, 12  ;;  %s218_s6 = scalar_lea.vmem [#allocation8], %s9399_s17 }
  0x36   : > { %s14159_s13 = smov (%p31_p6, %s14157_s13), 0  ;;  %s224_s7 = sadd.s32 %s9401_s10, %s14105_s26 }
  0x37   : > { %14121 = sst [smem:[#allocation15_spill]] %s14159_s13  ;;  %s227_s11 = sshll.u32 %s218_s6, 4  ;;  %s12569_s11 = int_to_ptr.vmem [resolvable:$true] %s227_s11 }
  0x38   : > { %s96_s18 = ssub.s32 %s12401_s24, %s14159_s13  ;;  %s9402_s27 = sshll.u32 %s224_s7, 6 }
  0x39   : > { %s98_s1 = sor.u32 %s97_s16, %s96_s18  ;;  %s14122_s3 = sld [smem:[#allocation18_spill]] }
  0x3a   : > { %p99_p8 = scmp.eq.s32.totalorder %s98_s1, 0  ;;  %s14123_s15 = sadd.s32 1, %s12385_s20 }
  0x3b   : > { %s12576_s17 = scalar_lea.sflag [#allocation5], %s214_s14  ;;  %p14124_p13 = scmp.ne.s32.totalorder %s14118_s9, 0 }
  0x3c   : > { %s12574_s21 = scalar_select %p99_p8, %s12385_s20, %s14123_s15  }
  0x3d   : > { %p14107_p1 = pneg %p14124_p13 }
  0x3f   : > { %s12567_s12 = scalar_lea.hbm %s14122_s3, %s9402_s27  ;;  %s12248_s27 = scalar_lea.hbm %s14122_s3, 1572864 }
  0x40   : > { %s12243_s10 = scalar_lea.hbm %s12567_s12, 65536  ;;  %p12249_p5 = scmp.lt.u32.totalorder %s12567_s12, %s14122_s3 }
  0x41   : > { %p12244_p12 = scmp.ne.s32.totalorder %s12567_s12, %s12243_s10  ;;  %p12250_p7 = scmp.lt.u32.totalorder %s12248_s27, %s12243_s10 }
  0x42   : > { %p12252_p10 = scmp.lt.u32.totalorder %s12243_s10, %s12567_s12 }
  0x43   : > { %p12246_p2 = pnand %p14107_p1, %p12244_p12  ;;  %p12251_p9 = por %p12250_p7, %p12249_p5 }
  0x45   : > { %p12247_p4 = pneg %p12246_p2  ;;  %p12253_p3 = por %p12252_p10, %p12251_p9 }
  0x47   : > { %p12254_p6 = pnand %p12253_p3, %p12247_p4 }
  0x49   : > { %12257 = shalt.err (!%p12254_p6)
}
  0x4a   : > { %s12258_s14 = scalar_lea.vmem %s12569_s11, 65536  ;;  %s12410_s15 = smov [#allocation8]  }
  0x4b   : > { %p12259_p8 = scmp.ne.s32.totalorder %s12569_s11, %s12258_s14  ;;  %s12263_s16 = sshll.u32 %s12410_s15, 4  ;;  %s12264_s16 = int_to_ptr.vmem [resolvable:$false] %s12263_s16 }
  0x4c   : > { %s12265_s7 = scalar_lea.vmem %s12264_s16, 131072  ;;  %p12266_p0 = scmp.lt.s32.totalorder %s12569_s11, %s12264_s16 }
  0x4d   : > { %p12261_p12 = pnand %p12259_p8, %p14107_p1  ;;  %p12267_p5 = scmp.lt.s32.totalorder %s12265_s7, %s12258_s14 }
  0x4f   : > { %p12262_p2 = pneg %p12261_p12  ;;  %p12268_p7 = por %p12267_p5, %p12266_p0 }
  0x51   : > { %p12269_p9 = pnand %p12268_p7, %p12262_p2 }
  0x53   : > { %12272 = shalt.err (!%p12269_p9)
}
  0x54   : > { %s12411_s6 = smov 256   ;;  %s12412_s10 = smov 16  }
  0x55   : > { %s14125_s0 = smov 1024   ;;  %s14126_s5 = sand.u32 1, %s12385_s20  }
  0x56   : > { %10599 = dma.hbm_to_vmem [thread:$0]  (!%p14124_p13), %s12567_s12, 65536, %s12569_s11, %s12576_s17, %s14125_s0, %s12411_s6, %s12412_s10  }
  0x57   : > { %s9403_s27 = sshll.u32 %s14126_s5, 2  ;;  %s12413_s1 = smov [#allocation6]  }
  0x58   : > { %s203_s18 = sshll.u32 %s12413_s1, 4  ;;  %s9405_s14 = sshll.u32 %s12401_s24, 4  ;;  %s204_s18 = int_to_ptr.vmem [resolvable:$true] %s203_s18 }
  0x59   : > { %s12273_s7 = scalar_lea.hbm %s14087_s2, 256  ;;  %p14127_p4 = pneg %p12513_p11 }
  0x5a   : > { %p12274_p0 = scmp.ne.s32.totalorder %s14087_s2, %s12273_s7  ;;  %p12280_p6 = scmp.lt.u32.totalorder %s12273_s7, %s14087_s2 }
  0x5c   : > { %p12276_p10 = pnand %p12274_p0, %p14127_p4 }
  0x5e   : > { %p12277_p3 = pneg %p12276_p10 }
  0x60   : > { %p12282_p8 = pnand %p12280_p6, %p12277_p3 }
  0x62   : > { %12285 = shalt.err (!%p12282_p8)
}
  0x63   : > { %s12286_s11 = scalar_lea.vmem %s204_s18, 256  ;;  %p14128_p2 = pmov %p14127_p4 }
  0x64   : > { %p12287_p12 = scmp.ne.s32.totalorder %s204_s18, %s12286_s11  ;;  %p12294_p9 = scmp.lt.s32.totalorder %s204_s18, %s204_s18 }
  0x65   : > { %p12295_p1 = scmp.lt.s32.totalorder %s12286_s11, %s12286_s11 }
  0x66   : > { %p12289_p5 = pnand %p12287_p12, %p14128_p2 }
  0x67   : > { %p12296_p13 = por %p12295_p1, %p12294_p9 }
  0x68   : > { %p12290_p7 = pneg %p12289_p5 }
  0x6a   : > { %p12297_p0 = pnand %p12296_p13, %p12290_p7 }
  0x6c   : > { %12300 = shalt.err (!%p12297_p0)
}
  0x6d   : > { %10595 = dma.hbm_to_vmem [thread:$0]  (!%p12513_p11), %s14087_s2, 256, %s204_s18, [#allocation7]  }
  0x6e   : > { %s14129_s13 = sshll.u32 %s12397_s23, 2  ;;  %s241_s10 = scalar_lea.vmem [#allocation9], %s9403_s27 }
  0x6f   : > { %s247_s6 = sadd.s32 %s9405_s14, %s14129_s13  ;;  %s251_s0 = sshll.u32 %s241_s10, 4  ;;  %s252_s0 = int_to_ptr.vmem [resolvable:$true] %s251_s0 }
  0x70   : > { %s9406_s5 = sshll.u32 %s247_s6, 4  ;;  %p14130_p1 = scmp.ne.s32.totalorder %s14118_s9, 0 }
  0x71   : > { %s249_s16 = scalar_lea.hbm %s14089_s4, %s9406_s5  ;;  %s12306_s18 = scalar_lea.hbm %s14089_s4, 1536 }
  0x72   : > { %s12301_s7 = scalar_lea.hbm %s249_s16, 64  ;;  %p14131_p4 = pneg %p14130_p1 }
  0x73   : > { %p12302_p13 = scmp.ne.s32.totalorder %s249_s16, %s12301_s7  ;;  %p12307_p11 = scmp.lt.u32.totalorder %s249_s16, %s14089_s4 }
  0x74   : > { %p12308_p6 = scmp.lt.u32.totalorder %s12306_s18, %s12301_s7  ;;  %p12310_p12 = scmp.lt.u32.totalorder %s12301_s7, %s249_s16 }
  0x75   : > { %p12304_p10 = pnand %p12302_p13, %p14131_p4 }
  0x76   : > { %p12309_p8 = por %p12308_p6, %p12307_p11 }
  0x77   : > { %p12305_p3 = pneg %p12304_p10 }
  0x78   : > { %p12311_p2 = por %p12310_p12, %p12309_p8 }
  0x7a   : > { %p12312_p5 = pnand %p12311_p2, %p12305_p3 }
  0x7c   : > { %12315 = shalt.err (!%p12312_p5)
}
  0x7d   : > { %s12316_s27 = scalar_lea.vmem %s252_s0, 64  ;;  %p14132_p9 = pmov %p14131_p4 }
  0x7e   : > { %p12317_p7 = scmp.ne.s32.totalorder %s252_s0, %s12316_s27  ;;  %s12414_s3 = smov [#allocation9]  }
  0x7f   : > { %s12321_s26 = sshll.u32 %s12414_s3, 4  ;;  %s12322_s26 = int_to_ptr.vmem [resolvable:$false] %s12321_s26 }
  0x80   : > { %p12319_p0 = pnand %p12317_p7, %p14132_p9  ;;  %s12323_s13 = scalar_lea.vmem %s12322_s26, 128 }
  0x81   : > { %p12324_p4 = scmp.lt.s32.totalorder %s252_s0, %s12322_s26  ;;  %p12325_p10 = scmp.lt.s32.totalorder %s12323_s13, %s12316_s27 }
  0x82   : > { %p12320_p13 = pneg %p12319_p0 }
  0x83   : > { %p12326_p6 = por %p12325_p10, %p12324_p4 }
  0x85   : > { %p12327_p11 = pnand %p12326_p6, %p12320_p13 }
  0x87   : > { %12330 = shalt.err (!%p12327_p11)
}
  0x88   : > { %10602 = dma.hbm_to_vmem [thread:$0]  (!%p14130_p1), %s249_s16, 64, %s252_s0, %s12576_s17  }
  0x89   : > { %p14133_p3 = scmp.ne.s32.totalorder %s14116_s30, 0 }
  0x8a   : > { %p14134_p8 = scmp.ne.s32.totalorder (!%p14133_p3), %s14114_s28, 0 }
  0x8b   : > { %260 = sbr.rel (%p14133_p3) target bundleno = 2027 (0x7eb), region = 40 }
  0x92   : > { %12364 = dma.done.wait (%p14134_p8), [#allocation5], 16384  }
  0x93   : > { %12366 = vsyncadd (%p14134_p8), [#allocation5], 4294950912 }
  0x94   : > { %12368 = dma.done.wait (%p14134_p8), [#allocation7], 256  }
  0x95   : > { %12370 = vsyncadd (%p14134_p8), [#allocation7], 4294967040  ;;  %s14135_s6 = sadd.s32 4294967295, %s12405_s25   ;;  %s272_s17 = sand.u32 1, %s12381_s19  }
  0x96   : > { %s270_s9 = sand.u32 1, %s14135_s6   ;;  %s9410_s30 = sshll.u32 %s272_s17, 12 }
  0x97   : > { %s271_s10 = scalar_lea.sflag [#allocation5], %s270_s9  ;;  %s12661_s0 = scalar_lea.vmem [#allocation8], %s9410_s30 }
  0x98   : > { %p14136_p1 = scmp.ne.s32.totalorder %s14115_s29, 0 }
  0x9a   : > { %12372 = dma.done.wait (%p14136_p1), %s271_s10, 65600  }
  0x9b   : > { %12374 = vsyncadd (%p14136_p1), %s271_s10, 4294901696  ;;  %s14137_s5 = sld [smem:[#allocation13_spill]]  ;;  %s12667_s28 = sshll.u32 %s272_s17, 2 }
  0x9c   : > { %p313_p12 = scmp.eq.s32.totalorder %s12393_s22, 5  ;;  %p314_p2 = scmp.eq.s32.totalorder %s12393_s22, 0 }
  0x9d   : > { %s283_s1 = scalar_lea.vmem [#allocation9], %s12667_s28 }
  0xa1   : > { %p315_p5 = scmp.eq.s32.totalorder %s14137_s5, 0 }
  0xa3   : > { %p316_p7 = pnand %p315_p5, %p314_p2 }
  0xa4   : > { %v322_v0 = vld [vmem:[#allocation4] sm:$0xff] (!%p316_p7)  ;;  %v323_v2 = vld [vmem:[#allocation4 + $0x8] sm:$0xff] (!%p316_p7)  ;;  %v12415_v8 = vmov (!%p316_p7), 0   ;;  %v324_v63 = vld [vmem:[#allocation4 + $0x10] sm:$0xff] (!%p316_p7)  ;;  %s14138_s16 = sld [smem:[#allocation16_spill]] (!%p316_p7) }
  0xa5   : > { %319 = sbr.rel (%p316_p7) target bundleno = 516 (0x204), region = 60  ;;  %v330_v1 = vld [vmem:[#allocation4 + $0x40] sm:$0xff] (!%p316_p7)  ;;  %v331_v4 = vld [vmem:[#allocation4 + $0x48] sm:$0xff] (!%p316_p7)  ;;  %1206 = vmatprep.mubr.bf16.mxu0 (!%p316_p7), %v12415_v8  ;;  %1247 = vmatprep.mubr.bf16.mxu1 (!%p316_p7), %v12415_v8 }
  0xa6   : > { %v9413_v3 = vcombine.high (!%p316_p7), %v322_v0, %v330_v1  ;;  %v9412_v5 = vcombine.low (!%p316_p7), %v322_v0, %v330_v1  ;;  %v338_v6 = vld [vmem:[#allocation4 + $0x80] sm:$0xff] (!%p316_p7)  ;;  %v9415_v9 = vcombine.high (!%p316_p7), %v323_v2, %v331_v4  ;;  %v9414_v10 = vcombine.low (!%p316_p7), %v323_v2, %v331_v4  ;;  %v339_v12 = vld [vmem:[#allocation4 + $0x88] sm:$0xff] (!%p316_p7)  ;;  %v332_v0 = vld [vmem:[#allocation4 + $0x50] sm:$0xff] (!%p316_p7) }
  0xa7   : > { %v346_v7 = vld [vmem:[#allocation4 + $0xc0] sm:$0xff] (!%p316_p7)  ;;  %v347_v13 = vld [vmem:[#allocation4 + $0xc8] sm:$0xff] (!%p316_p7)  ;;  %v325_v1 = vld [vmem:[#allocation4 + $0x18] sm:$0xff] (!%p316_p7) }
  0xa8   : > { %v9429_v11 = vcombine.high (!%p316_p7), %v338_v6, %v346_v7  ;;  %v354_v14 = vld [vmem:[#allocation4 + $0x100] sm:$0xff] (!%p316_p7)  ;;  %1174 = vmatprep.subr.bf16.mxu0 (!%p316_p7), %v9413_v3  ;;  %v9431_v15 = vcombine.high (!%p316_p7), %v339_v12, %v347_v13  ;;  %v355_v17 = vld [vmem:[#allocation4 + $0x108] sm:$0xff] (!%p316_p7)  ;;  %1215 = vmatprep.subr.bf16.mxu1 (!%p316_p7), %v9415_v9  ;;  %v9428_v19 = vcombine.low (!%p316_p7), %v338_v6, %v346_v7  ;;  %v333_v2 = vld [vmem:[#allocation4 + $0x58] sm:$0xff] (!%p316_p7) }
  0xa9   : > { %v362_v16 = vld [vmem:[#allocation4 + $0x140] sm:$0xff] (!%p316_p7)  ;;  %v363_v18 = vld [vmem:[#allocation4 + $0x148] sm:$0xff] (!%p316_p7)  ;;  %1175 = vmatpush1.bf16.msra.mxu0 (!%p316_p7), %v9412_v5  ;;  %1216 = vmatpush1.bf16.msra.mxu1 (!%p316_p7), %v9414_v10  ;;  %v9430_v20 = vcombine.low (!%p316_p7), %v339_v12, %v347_v13  ;;  %v9417_v6 = vcombine.high (!%p316_p7), %v324_v63, %v332_v0  ;;  %v9419_v7 = vcombine.high (!%p316_p7), %v325_v1, %v333_v2  ;;  %v340_v9 = vld [vmem:[#allocation4 + $0x90] sm:$0xff] (!%p316_p7) }
  0xaa   : > { %1176 = vmatprep.subr.bf16.mxu0 (!%p316_p7), %v9429_v11  ;;  %v9445_v21 = vcombine.high (!%p316_p7), %v354_v14, %v362_v16  ;;  %1217 = vmatprep.subr.bf16.mxu1 (!%p316_p7), %v9431_v15  ;;  %v9447_v22 = vcombine.high (!%p316_p7), %v355_v17, %v363_v18  ;;  %v370_v23 = vld [vmem:[#allocation4 + $0x180] sm:$0xff] (!%p316_p7)  ;;  %v371_v25 = vld [vmem:[#allocation4 + $0x188] sm:$0xff] (!%p316_p7)  ;;  %v9444_v27 = vcombine.low (!%p316_p7), %v354_v14, %v362_v16  ;;  %v348_v10 = vld [vmem:[#allocation4 + $0xd0] sm:$0xff] (!%p316_p7) }
  0xab   : > { %v378_v24 = vld [vmem:[#allocation4 + $0x1c0] sm:$0xff] (!%p316_p7)  ;;  %v379_v26 = vld [vmem:[#allocation4 + $0x1c8] sm:$0xff] (!%p316_p7)  ;;  %v9446_v28 = vcombine.low (!%p316_p7), %v355_v17, %v363_v18  ;;  %v341_v12 = vld [vmem:[#allocation4 + $0x98] sm:$0xff] (!%p316_p7)  ;;  %v9416_v14 = vcombine.low (!%p316_p7), %v324_v63, %v332_v0  ;;  %v9418_v15 = vcombine.low (!%p316_p7), %v325_v1, %v333_v2  ;;  %v9433_v16 = vcombine.high (!%p316_p7), %v340_v9, %v348_v10 }
  0xac   : > { %v9461_v29 = vcombine.high %v370_v23, %v378_v24  ;;  %v9463_v30 = vcombine.high %v371_v25, %v379_v26  ;;  %v386_v31 = vld [vmem:[#allocation4 + $0x200] sm:$0xff]  ;;  %v387_v33 = vld [vmem:[#allocation4 + $0x208] sm:$0xff]  ;;  %v9460_v35 = vcombine.low %v370_v23, %v378_v24  ;;  %v9462_v36 = vcombine.low %v371_v25, %v379_v26  ;;  %v349_v13 = vld [vmem:[#allocation4 + $0xd8] sm:$0xff] }
  0xad   : > { %1177 = vmatpush1.bf16.msra.mxu0 %v9428_v19  ;;  %1218 = vmatpush1.bf16.msra.mxu1 %v9430_v20  ;;  %v394_v32 = vld [vmem:[#allocation4 + $0x240] sm:$0xff]  ;;  %v395_v34 = vld [vmem:[#allocation4 + $0x248] sm:$0xff]  ;;  %v9435_v17 = vcombine.high %v341_v12, %v349_v13  ;;  %v356_v18 = vld [vmem:[#allocation4 + $0x110] sm:$0xff]  ;;  %v9434_v23 = vcombine.low %v341_v12, %v349_v13 }
  0xae   : > { %1178 = vmatprep.subr.bf16.mxu0 %v9445_v21  ;;  %1219 = vmatprep.subr.bf16.mxu1 %v9447_v22  ;;  %v9477_v37 = vcombine.high %v386_v31, %v394_v32  ;;  %v9479_v38 = vcombine.high %v387_v33, %v395_v34  ;;  %v402_v39 = vld [vmem:[#allocation4 + $0x280] sm:$0xff]  ;;  %v403_v41 = vld [vmem:[#allocation4 + $0x288] sm:$0xff]  ;;  %v9476_v43 = vcombine.low %v386_v31, %v394_v32  ;;  %v364_v19 = vld [vmem:[#allocation4 + $0x150] sm:$0xff] }
  0xaf   : > { %v410_v40 = vld [vmem:[#allocation4 + $0x2c0] sm:$0xff]  ;;  %v411_v42 = vld [vmem:[#allocation4 + $0x2c8] sm:$0xff]  ;;  %v9478_v44 = vcombine.low %v387_v33, %v395_v34  ;;  %v357_v20 = vld [vmem:[#allocation4 + $0x118] sm:$0xff]  ;;  %v9432_v22 = vcombine.low %v340_v9, %v348_v10  ;;  %v9449_v24 = vcombine.high %v356_v18, %v364_v19 }
  0xb0   : > { %v9493_v45 = vcombine.high %v402_v39, %v410_v40  ;;  %v9495_v46 = vcombine.high %v403_v41, %v411_v42  ;;  %v418_v47 = vld [vmem:[#allocation4 + $0x300] sm:$0xff]  ;;  %v419_v49 = vld [vmem:[#allocation4 + $0x308] sm:$0xff]  ;;  %v9492_v51 = vcombine.low %v402_v39, %v410_v40  ;;  %v9494_v52 = vcombine.low %v403_v41, %v411_v42  ;;  %v365_v21 = vld [vmem:[#allocation4 + $0x158] sm:$0xff] }
  0xb1   : > { %1179 = vmatpush1.bf16.msra.mxu0 %v9444_v27  ;;  %1220 = vmatpush1.bf16.msra.mxu1 %v9446_v28  ;;  %v426_v48 = vld [vmem:[#allocation4 + $0x340] sm:$0xff]  ;;  %v427_v50 = vld [vmem:[#allocation4 + $0x348] sm:$0xff]  ;;  %v9451_v25 = vcombine.high %v357_v20, %v365_v21  ;;  %v372_v26 = vld [vmem:[#allocation4 + $0x190] sm:$0xff]  ;;  %v9450_v31 = vcombine.low %v357_v20, %v365_v21 }
  0xb2   : > { %1180 = vmatprep.subr.bf16.mxu0 %v9461_v29  ;;  %1221 = vmatprep.subr.bf16.mxu1 %v9463_v30  ;;  %v9509_v53 = vcombine.high %v418_v47, %v426_v48  ;;  %v9511_v54 = vcombine.high %v419_v49, %v427_v50  ;;  %v434_v55 = vld [vmem:[#allocation4 + $0x380] sm:$0xff]  ;;  %v435_v57 = vld [vmem:[#allocation4 + $0x388] sm:$0xff]  ;;  %v9508_v59 = vcombine.low %v418_v47, %v426_v48  ;;  %v380_v27 = vld [vmem:[#allocation4 + $0x1d0] sm:$0xff] }
  0xb3   : > { %v442_v56 = vld [vmem:[#allocation4 + $0x3c0] sm:$0xff]  ;;  %v443_v58 = vld [vmem:[#allocation4 + $0x3c8] sm:$0xff]  ;;  %v9510_v60 = vcombine.low %v419_v49, %v427_v50  ;;  %v373_v28 = vld [vmem:[#allocation4 + $0x198] sm:$0xff]  ;;  %v9448_v30 = vcombine.low %v356_v18, %v364_v19  ;;  %v9465_v32 = vcombine.high %v372_v26, %v380_v27 }
  0xb4   : > { %v9525_v61 = vcombine.high %v434_v55, %v442_v56  ;;  %v9527_v62 = vcombine.high %v435_v57, %v443_v58  ;;  %v9524_v3 = vcombine.low %v434_v55, %v442_v56  ;;  %v320_v4 = vld [vmem:[%s14138_s16] sm:$0xff]  ;;  %v9526_v5 = vcombine.low %v435_v57, %v443_v58  ;;  %v381_v29 = vld [vmem:[#allocation4 + $0x1d8] sm:$0xff]  ;;  %v388_v34 = vld [vmem:[#allocation4 + $0x210] sm:$0xff] }
  0xb5   : > { %1181 = vmatpush1.bf16.msra.mxu0 %v9460_v35  ;;  %1222 = vmatpush1.bf16.msra.mxu1 %v9462_v36  ;;  %v12678_v11 = vpack.c.bf16 %v320_v4, %v320_v4  ;;  %v9467_v33 = vcombine.high %v373_v28, %v381_v29  ;;  %v396_v35 = vld [vmem:[#allocation4 + $0x250] sm:$0xff]  ;;  %v389_v36 = vld [vmem:[#allocation4 + $0x218] sm:$0xff]  ;;  %v9466_v39 = vcombine.low %v373_v28, %v381_v29  ;;  %v326_v2 = vld [vmem:[#allocation4 + $0x20] sm:$0xff] }
  0xb6   : > { %1182 = vmatprep.subr.bf16.mxu0 %v9477_v37  ;;  %1223 = vmatprep.subr.bf16.mxu1 %v9479_v38  ;;  %v397_v37 = vld [vmem:[#allocation4 + $0x258] sm:$0xff]  ;;  %v9464_v38 = vcombine.low %v372_v26, %v380_v27  ;;  %v9481_v40 = vcombine.high %v388_v34, %v396_v35  ;;  %v404_v42 = vld [vmem:[#allocation4 + $0x290] sm:$0xff]  ;;  %v327_v4 = vld [vmem:[#allocation4 + $0x28] sm:$0xff] }
  0xb7   : > { %v9483_v41 = vcombine.high %v389_v36, %v397_v37  ;;  %v9482_v47 = vcombine.low %v389_v36, %v397_v37  ;;  %v420_v50 = vld [vmem:[#allocation4 + $0x310] sm:$0xff]  ;;  %v342_v12 = vld [vmem:[#allocation4 + $0xa0] sm:$0xff] }
  0xb8   : > { %v436_v58 = vld [vmem:[#allocation4 + $0x390] sm:$0xff]  ;;  %v350_v13 = vld [vmem:[#allocation4 + $0xe0] sm:$0xff] }
  0xb9   : > { %1183 = vmatpush1.bf16.msra.mxu0 %v9476_v43  ;;  %1224 = vmatpush1.bf16.msra.mxu1 %v9478_v44  ;;  %v412_v43 = vld [vmem:[#allocation4 + $0x2d0] sm:$0xff]  ;;  %v405_v44 = vld [vmem:[#allocation4 + $0x298] sm:$0xff]  ;;  %v9437_v18 = vcombine.high %v342_v12, %v350_v13  ;;  %v358_v20 = vld [vmem:[#allocation4 + $0x120] sm:$0xff] }
  0xba   : > { %1184 = vmatprep.subr.bf16.mxu0 %v9493_v45  ;;  %1225 = vmatprep.subr.bf16.mxu1 %v9495_v46  ;;  %v413_v45 = vld [vmem:[#allocation4 + $0x2d8] sm:$0xff]  ;;  %v9480_v46 = vcombine.low %v388_v34, %v396_v35  ;;  %v9497_v48 = vcombine.high %v404_v42, %v412_v43  ;;  %v366_v21 = vld [vmem:[#allocation4 + $0x160] sm:$0xff] }
  0xbb   : > { %v9499_v49 = vcombine.high %v405_v44, %v413_v45  ;;  %v9498_v55 = vcombine.low %v405_v44, %v413_v45  ;;  %v9453_v26 = vcombine.high %v358_v20, %v366_v21  ;;  %v374_v28 = vld [vmem:[#allocation4 + $0x1a0] sm:$0xff] }
  0xbc   : > { %v382_v29 = vld [vmem:[#allocation4 + $0x1e0] sm:$0xff] }
  0xbd   : > { %1185 = vmatpush1.bf16.msra.mxu0 %v9492_v51  ;;  %1226 = vmatpush1.bf16.msra.mxu1 %v9494_v52  ;;  %v428_v51 = vld [vmem:[#allocation4 + $0x350] sm:$0xff]  ;;  %v421_v52 = vld [vmem:[#allocation4 + $0x318] sm:$0xff]  ;;  %v9469_v34 = vcombine.high %v374_v28, %v382_v29  ;;  %v390_v36 = vld [vmem:[#allocation4 + $0x220] sm:$0xff] }
  0xbe   : > { %1186 = vmatprep.subr.bf16.mxu0 %v9509_v53  ;;  %1227 = vmatprep.subr.bf16.mxu1 %v9511_v54  ;;  %v429_v53 = vld [vmem:[#allocation4 + $0x358] sm:$0xff]  ;;  %v9496_v54 = vcombine.low %v404_v42, %v412_v43  ;;  %v9513_v56 = vcombine.high %v420_v50, %v428_v51  ;;  %v398_v37 = vld [vmem:[#allocation4 + $0x260] sm:$0xff] }
  0xbf   : > { %v9515_v57 = vcombine.high %v421_v52, %v429_v53  ;;  %v9514_v63 = vcombine.low %v421_v52, %v429_v53  ;;  %v9485_v42 = vcombine.high %v390_v36, %v398_v37  ;;  %v406_v44 = vld [vmem:[#allocation4 + $0x2a0] sm:$0xff] }
  0xc0   : > { %v414_v45 = vld [vmem:[#allocation4 + $0x2e0] sm:$0xff] }
  0xc1   : > { %1187 = vmatpush1.bf16.msra.mxu0 %v9508_v59  ;;  %1228 = vmatpush1.bf16.msra.mxu1 %v9510_v60  ;;  %v444_v59 = vld [vmem:[#allocation4 + $0x3d0] sm:$0xff]  ;;  %v437_v60 = vld [vmem:[#allocation4 + $0x398] sm:$0xff]  ;;  %v422_v52 = vld [vmem:[#allocation4 + $0x320] sm:$0xff] }
  0xc2   : > { %1188 = vmatprep.subr.bf16.mxu0 %v9525_v61  ;;  %1229 = vmatprep.subr.bf16.mxu1 %v9527_v62  ;;  %v445_v61 = vld [vmem:[#allocation4 + $0x3d8] sm:$0xff]  ;;  %v9512_v62 = vcombine.low %v420_v50, %v428_v51  ;;  %v9529_v0 = vcombine.high %v436_v58, %v444_v59  ;;  %v9501_v50 = vcombine.high %v406_v44, %v414_v45  ;;  %v430_v53 = vld [vmem:[#allocation4 + $0x360] sm:$0xff] }
  0xc3   : > { %v9531_v1 = vcombine.high %v437_v60, %v445_v61 }
  0xc5   : > { %1189 = vmatpush1.bf16.msra.mxu0 %v9524_v3  ;;  %1230 = vmatpush1.bf16.msra.mxu1 %v9526_v5  ;;  %v334_v3 = vld [vmem:[#allocation4 + $0x60] sm:$0xff]  ;;  %v335_v5 = vld [vmem:[#allocation4 + $0x68] sm:$0xff] }
  0xc6   : > { %1256 = vmatprep.subr.bf16.mxu0 %v9417_v6  ;;  %1297 = vmatprep.subr.bf16.mxu1 %v9419_v7  ;;  %v9528_v6 = vcombine.low %v436_v58, %v444_v59  ;;  %v9530_v7 = vcombine.low %v437_v60, %v445_v61  ;;  %v9421_v9 = vcombine.high %v326_v2, %v334_v3  ;;  %v438_v60 = vld [vmem:[#allocation4 + $0x3a0] sm:$0xff] }
  0xc7   : > { %v9423_v10 = vcombine.high %v327_v4, %v335_v5  ;;  %v9517_v58 = vcombine.high %v422_v52, %v430_v53  ;;  %v446_v61 = vld [vmem:[#allocation4 + $0x3e0] sm:$0xff] }
  0xc8   : > { %1207 = vmatmul.mubr.bf16.vlgmr.msra.gmra.mrb[0].mxu0 %v12678_v11  ;;  %1248 = vmatmul.mubr.bf16.vlgmr.msra.gmra.mrb[0].mxu1 %v12678_v11 }
  0xc9   : > { %1257 = vmatpush1.bf16.msra.mxu0 %v9416_v14  ;;  %1298 = vmatpush1.bf16.msra.mxu1 %v9418_v15  ;;  %v343_v14 = vld [vmem:[#allocation4 + $0xa8] sm:$0xff] }
  0xca   : > { %1258 = vmatprep.subr.bf16.mxu0 %v9433_v16  ;;  %1299 = vmatprep.subr.bf16.mxu1 %v9435_v17  ;;  %v351_v15 = vld [vmem:[#allocation4 + $0xe8] sm:$0xff]  ;;  %v9420_v16 = vcombine.low %v326_v2, %v334_v3  ;;  %v9422_v17 = vcombine.low %v327_v4, %v335_v5  ;;  %v9533_v2 = vcombine.high %v438_v60, %v446_v61  ;;  %v328_v4 = vld [vmem:[#allocation4 + $0x30] sm:$0xff] }
  0xcb   : > { %1288 = vmatprep.mubr.bf16.mxu0 %v12415_v8  ;;  %1329 = vmatprep.mubr.bf16.mxu1 %v12415_v8  ;;  %v9439_v19 = vcombine.high %v343_v14, %v351_v15  ;;  %v336_v5 = vld [vmem:[#allocation4 + $0x70] sm:$0xff] }
  0xcd   : > { %1259 = vmatpush1.bf16.msra.mxu0 %v9432_v22  ;;  %1300 = vmatpush1.bf16.msra.mxu1 %v9434_v23  ;;  %v359_v22 = vld [vmem:[#allocation4 + $0x128] sm:$0xff] }
  0xce   : > { %1260 = vmatprep.subr.bf16.mxu0 %v9449_v24  ;;  %1301 = vmatprep.subr.bf16.mxu1 %v9451_v25  ;;  %v367_v23 = vld [vmem:[#allocation4 + $0x168] sm:$0xff]  ;;  %v9436_v24 = vcombine.low %v342_v12, %v350_v13  ;;  %v9438_v25 = vcombine.low %v343_v14, %v351_v15  ;;  %v9425_v12 = vcombine.high %v328_v4, %v336_v5  ;;  %v344_v14 = vld [vmem:[#allocation4 + $0xb0] sm:$0xff] }
  0xcf   : > { %v9455_v27 = vcombine.high %v359_v22, %v367_v23  ;;  %v352_v15 = vld [vmem:[#allocation4 + $0xf0] sm:$0xff] }
  0xd1   : > { %1261 = vmatpush1.bf16.msra.mxu0 %v9448_v30  ;;  %1302 = vmatpush1.bf16.msra.mxu1 %v9450_v31  ;;  %v375_v30 = vld [vmem:[#allocation4 + $0x1a8] sm:$0xff] }
  0xd2   : > { %1262 = vmatprep.subr.bf16.mxu0 %v9465_v32  ;;  %1303 = vmatprep.subr.bf16.mxu1 %v9467_v33  ;;  %v383_v31 = vld [vmem:[#allocation4 + $0x1e8] sm:$0xff]  ;;  %v9452_v32 = vcombine.low %v358_v20, %v366_v21  ;;  %v9454_v33 = vcombine.low %v359_v22, %v367_v23  ;;  %v9441_v20 = vcombine.high %v344_v14, %v352_v15  ;;  %v360_v22 = vld [vmem:[#allocation4 + $0x130] sm:$0xff] }
  0xd3   : > { %v9471_v35 = vcombine.high %v375_v30, %v383_v31  ;;  %v368_v23 = vld [vmem:[#allocation4 + $0x170] sm:$0xff] }
  0xd5   : > { %1263 = vmatpush1.bf16.msra.mxu0 %v9464_v38  ;;  %1304 = vmatpush1.bf16.msra.mxu1 %v9466_v39  ;;  %v391_v38 = vld [vmem:[#allocation4 + $0x228] sm:$0xff] }
  0xd6   : > { %1264 = vmatprep.subr.bf16.mxu0 %v9481_v40  ;;  %1305 = vmatprep.subr.bf16.mxu1 %v9483_v41  ;;  %v399_v39 = vld [vmem:[#allocation4 + $0x268] sm:$0xff]  ;;  %v9468_v40 = vcombine.low %v374_v28, %v382_v29  ;;  %v9470_v41 = vcombine.low %v375_v30, %v383_v31  ;;  %v9457_v28 = vcombine.high %v360_v22, %v368_v23  ;;  %v376_v30 = vld [vmem:[#allocation4 + $0x1b0] sm:$0xff] }
  0xd7   : > { %v9487_v43 = vcombine.high %v391_v38, %v399_v39  ;;  %v384_v31 = vld [vmem:[#allocation4 + $0x1f0] sm:$0xff] }
  0xd9   : > { %1265 = vmatpush1.bf16.msra.mxu0 %v9480_v46  ;;  %1306 = vmatpush1.bf16.msra.mxu1 %v9482_v47  ;;  %v407_v46 = vld [vmem:[#allocation4 + $0x2a8] sm:$0xff] }
  0xda   : > { %1266 = vmatprep.subr.bf16.mxu0 %v9497_v48  ;;  %1307 = vmatprep.subr.bf16.mxu1 %v9499_v49  ;;  %v415_v47 = vld [vmem:[#allocation4 + $0x2e8] sm:$0xff]  ;;  %v9484_v48 = vcombine.low %v390_v36, %v398_v37  ;;  %v9486_v49 = vcombine.low %v391_v38, %v399_v39  ;;  %v9473_v36 = vcombine.high %v376_v30, %v384_v31  ;;  %v392_v38 = vld [vmem:[#allocation4 + $0x230] sm:$0xff] }
  0xdb   : > { %v9503_v51 = vcombine.high %v407_v46, %v415_v47  ;;  %v400_v39 = vld [vmem:[#allocation4 + $0x270] sm:$0xff] }
  0xdd   : > { %1267 = vmatpush1.bf16.msra.mxu0 %v9496_v54  ;;  %1308 = vmatpush1.bf16.msra.mxu1 %v9498_v55  ;;  %v423_v54 = vld [vmem:[#allocation4 + $0x328] sm:$0xff] }
  0xde   : > { %1268 = vmatprep.subr.bf16.mxu0 %v9513_v56  ;;  %1309 = vmatprep.subr.bf16.mxu1 %v9515_v57  ;;  %v431_v55 = vld [vmem:[#allocation4 + $0x368] sm:$0xff]  ;;  %v9500_v56 = vcombine.low %v406_v44, %v414_v45  ;;  %v9502_v57 = vcombine.low %v407_v46, %v415_v47  ;;  %v9489_v44 = vcombine.high %v392_v38, %v400_v39  ;;  %v408_v45 = vld [vmem:[#allocation4 + $0x2b0] sm:$0xff]  ;;  %v409_v47 = vld [vmem:[#allocation4 + $0x2b8] sm:$0xff] }
  0xdf   : > { %v9519_v59 = vcombine.high %v423_v54, %v431_v55  ;;  %v416_v46 = vld [vmem:[#allocation4 + $0x2f0] sm:$0xff] }
  0xe1   : > { %1269 = vmatpush1.bf16.msra.mxu0 %v9512_v62  ;;  %1310 = vmatpush1.bf16.msra.mxu1 %v9514_v63  ;;  %v439_v62 = vld [vmem:[#allocation4 + $0x3a8] sm:$0xff] }
  0xe2   : > { %1270 = vmatprep.subr.bf16.mxu0 %v9529_v0  ;;  %1311 = vmatprep.subr.bf16.mxu1 %v9531_v1  ;;  %v447_v63 = vld [vmem:[#allocation4 + $0x3e8] sm:$0xff]  ;;  %v9516_v0 = vcombine.low %v422_v52, %v430_v53  ;;  %v9518_v1 = vcombine.low %v423_v54, %v431_v55  ;;  %v424_v53 = vld [vmem:[#allocation4 + $0x330] sm:$0xff]  ;;  %v425_v55 = vld [vmem:[#allocation4 + $0x338] sm:$0xff] }
  0xe3   : > { %v9535_v3 = vcombine.high %v439_v62, %v447_v63  ;;  %v432_v54 = vld [vmem:[#allocation4 + $0x370] sm:$0xff] }
  0xe5   : > { %1271 = vmatpush1.bf16.msra.mxu0 %v9528_v6  ;;  %1312 = vmatpush1.bf16.msra.mxu1 %v9530_v7  ;;  %v329_v6 = vld [vmem:[#allocation4 + $0x38] sm:$0xff] }
  0xe6   : > { %1338 = vmatprep.subr.bf16.mxu0 %v9421_v9  ;;  %1379 = vmatprep.subr.bf16.mxu1 %v9423_v10  ;;  %v337_v7 = vld [vmem:[#allocation4 + $0x78] sm:$0xff]  ;;  %v9532_v9 = vcombine.low %v438_v60, %v446_v61  ;;  %v9534_v10 = vcombine.low %v439_v62, %v447_v63  ;;  %v440_v61 = vld [vmem:[#allocation4 + $0x3b0] sm:$0xff] }
  0xe7   : > { %v9427_v13 = vcombine.high %v329_v6, %v337_v7  ;;  %v448_v62 = vld [vmem:[#allocation4 + $0x3f0] sm:$0xff]  ;;  %v441_v63 = vld [vmem:[#allocation4 + $0x3b8] sm:$0xff] }
  0xe8   : > { %1289 = vmatmul.mubr.bf16.vlgmr.msra.gmra.mrb[4].mxu0 %v12678_v11  ;;  %1330 = vmatmul.mubr.bf16.vlgmr.msra.gmra.mrb[4].mxu1 %v12678_v11 }
  0xe9   : > { %1339 = vmatpush1.bf16.msra.mxu0 %v9420_v16  ;;  %1380 = vmatpush1.bf16.msra.mxu1 %v9422_v17  ;;  %v345_v16 = vld [vmem:[#allocation4 + $0xb8] sm:$0xff] }
  0xea   : > { %1340 = vmatprep.subr.bf16.mxu0 %v9437_v18  ;;  %1381 = vmatprep.subr.bf16.mxu1 %v9439_v19  ;;  %v353_v17 = vld [vmem:[#allocation4 + $0xf8] sm:$0xff]  ;;  %v9424_v18 = vcombine.low %v328_v4, %v336_v5  ;;  %v9426_v19 = vcombine.low %v329_v6, %v337_v7  ;;  %v9536_v5 = vcombine.low %v440_v61, %v448_v62  ;;  %v454_v7 = vlaneseq }
  0xeb   : > { %1370 = vmatprep.mubr.bf16.mxu0 %v12415_v8  ;;  %1411 = vmatprep.mubr.bf16.mxu1 %v12415_v8  ;;  %v9443_v21 = vcombine.high %v345_v16, %v353_v17 }
  0xed   : > { %1341 = vmatpush1.bf16.msra.mxu0 %v9436_v24  ;;  %1382 = vmatpush1.bf16.msra.mxu1 %v9438_v25  ;;  %v361_v24 = vld [vmem:[#allocation4 + $0x138] sm:$0xff] }
  0xee   : > { %1342 = vmatprep.subr.bf16.mxu0 %v9453_v26  ;;  %1383 = vmatprep.subr.bf16.mxu1 %v9455_v27  ;;  %v369_v25 = vld [vmem:[#allocation4 + $0x178] sm:$0xff]  ;;  %v9440_v26 = vcombine.low %v344_v14, %v352_v15  ;;  %v9442_v27 = vcombine.low %v345_v16, %v353_v17 }
  0xef   : > { %v9459_v29 = vcombine.high %v361_v24, %v369_v25 }
  0xf1   : > { %1343 = vmatpush1.bf16.msra.mxu0 %v9452_v32  ;;  %1384 = vmatpush1.bf16.msra.mxu1 %v9454_v33  ;;  %v377_v32 = vld [vmem:[#allocation4 + $0x1b8] sm:$0xff] }
  0xf2   : > { %1344 = vmatprep.subr.bf16.mxu0 %v9469_v34  ;;  %1385 = vmatprep.subr.bf16.mxu1 %v9471_v35  ;;  %v385_v33 = vld [vmem:[#allocation4 + $0x1f8] sm:$0xff]  ;;  %v9456_v34 = vcombine.low %v360_v22, %v368_v23  ;;  %v9458_v35 = vcombine.low %v361_v24, %v369_v25 }
  0xf3   : > { %v9475_v37 = vcombine.high %v377_v32, %v385_v33 }
  0xf5   : > { %1345 = vmatpush1.bf16.msra.mxu0 %v9468_v40  ;;  %1386 = vmatpush1.bf16.msra.mxu1 %v9470_v41  ;;  %v393_v40 = vld [vmem:[#allocation4 + $0x238] sm:$0xff] }
  0xf6   : > { %1346 = vmatprep.subr.bf16.mxu0 %v9485_v42  ;;  %1387 = vmatprep.subr.bf16.mxu1 %v9487_v43  ;;  %v401_v41 = vld [vmem:[#allocation4 + $0x278] sm:$0xff]  ;;  %v9472_v42 = vcombine.low %v376_v30, %v384_v31  ;;  %v9474_v43 = vcombine.low %v377_v32, %v385_v33 }
  0xf9   : > { %1347 = vmatpush1.bf16.msra.mxu0 %v9484_v48  ;;  %1388 = vmatpush1.bf16.msra.mxu1 %v9486_v49  ;;  %v417_v48 = vld [vmem:[#allocation4 + $0x2f8] sm:$0xff]  ;;  %v9488_v49 = vcombine.low %v392_v38, %v400_v39 }
  0xfa   : > { %1348 = vmatprep.subr.bf16.mxu0 %v9501_v50  ;;  %1389 = vmatprep.subr.bf16.mxu1 %v9503_v51  ;;  %v9490_v50 = vcombine.low %v393_v40, %v401_v41  ;;  %v9505_v51 = vcombine.high %v408_v45, %v416_v46  ;;  %v9507_v52 = vcombine.high %v409_v47, %v417_v48 }
  0xfd   : > { %1349 = vmatpush1.bf16.msra.mxu0 %v9500_v56  ;;  %1390 = vmatpush1.bf16.msra.mxu1 %v9502_v57  ;;  %v433_v56 = vld [vmem:[#allocation4 + $0x378] sm:$0xff]  ;;  %v9504_v57 = vcombine.low %v408_v45, %v416_v46 }
  0xfe   : > { %1350 = vmatprep.subr.bf16.mxu0 %v9517_v58  ;;  %1391 = vmatprep.subr.bf16.mxu1 %v9519_v59  ;;  %v9506_v58 = vcombine.low %v409_v47, %v417_v48  ;;  %v9521_v59 = vcombine.high %v424_v53, %v432_v54  ;;  %v9523_v60 = vcombine.high %v425_v55, %v433_v56 }
 0x101   : > { %1351 = vmatpush1.bf16.msra.mxu0 %v9516_v0  ;;  %1392 = vmatpush1.bf16.msra.mxu1 %v9518_v1  ;;  %v449_v0 = vld [vmem:[#allocation4 + $0x3f8] sm:$0xff]  ;;  %v9520_v1 = vcombine.low %v424_v53, %v432_v54 }
 0x102   : > { %1352 = vmatprep.subr.bf16.mxu0 %v9533_v2  ;;  %1393 = vmatprep.subr.bf16.mxu1 %v9535_v3  ;;  %v9522_v2 = vcombine.low %v425_v55, %v433_v56  ;;  %v9537_v3 = vcombine.high %v440_v61, %v448_v62  ;;  %v9539_v4 = vcombine.high %v441_v63, %v449_v0 }
 0x103   : > { %v9538_v6 = vcombine.low %v441_v63, %v449_v0 }
 0x105   : > { %1353 = vmatpush1.bf16.msra.mxu0 %v9532_v9  ;;  %1394 = vmatpush1.bf16.msra.mxu1 %v9534_v10  ;;  %v12694_v9 = vshrl.u32 %v454_v7, 7 }
 0x106   : > { %1420 = vmatprep.subr.bf16.mxu0 %v9425_v12  ;;  %1461 = vmatprep.subr.bf16.mxu1 %v9427_v13  ;;  %v450_v12 = vld [vmem:[#allocation6] sm:$0xff] }
 0x107   : > { %v456_v10 = vsub.s32 0, %v12694_v9  ;;  %v464_v13 = vsub.s32 2, %v12694_v9  ;;  %v460_v14 = vsub.s32 1, %v12694_v9  ;;  %v468_v15 = vsub.s32 3, %v12694_v9 }
 0x108   : > { %1371 = vmatmul.mubr.bf16.vlgmr.msra.gmra.mrb[8].mxu0 %v12678_v11  ;;  %1412 = vmatmul.mubr.bf16.vlgmr.msra.gmra.mrb[8].mxu1 %v12678_v11  ;;  %v472_v39 = vsub.s32 4, %v12694_v9 }
 0x109   : > { %1421 = vmatpush1.bf16.msra.mxu0 %v9424_v18  ;;  %1462 = vmatpush1.bf16.msra.mxu1 %v9426_v19  ;;  %v457_v16 = vrot.slane %v450_v12, %v456_v10  ;;  %v465_v17 = vrot.slane %v450_v12, %v464_v13  ;;  %v469_v18 = vrot.slane %v450_v12, %v468_v15 }
 0x10a   : > { %1422 = vmatprep.subr.bf16.mxu0 %v9441_v20  ;;  %1463 = vmatprep.subr.bf16.mxu1 %v9443_v21 }
 0x10b   : > { %1452 = vmatprep.mubr.bf16.mxu0 %v12415_v8  ;;  %1493 = vmatprep.mubr.bf16.mxu1 %v12415_v8  ;;  %v9491_v8 = vcombine.high %v393_v40, %v401_v41  ;;  %v480_v40 = vsub.s32 6, %v12694_v9  ;;  %v476_v41 = vsub.s32 5, %v12694_v9 }
 0x10d   : > { %1423 = vmatpush1.bf16.msra.mxu0 %v9440_v26  ;;  %1464 = vmatpush1.bf16.msra.mxu1 %v9442_v27 }
 0x10e   : > { %1424 = vmatprep.subr.bf16.mxu0 %v9457_v28  ;;  %1465 = vmatprep.subr.bf16.mxu1 %v9459_v29 }
 0x111   : > { %1425 = vmatpush1.bf16.msra.mxu0 %v9456_v34  ;;  %1466 = vmatpush1.bf16.msra.mxu1 %v9458_v35 }
 0x112   : > { %1426 = vmatprep.subr.bf16.mxu0 %v9473_v36  ;;  %1467 = vmatprep.subr.bf16.mxu1 %v9475_v37 }
 0x115   : > { %1427 = vmatpush1.bf16.msra.mxu0 %v9472_v42  ;;  %1468 = vmatpush1.bf16.msra.mxu1 %v9474_v43  ;;  %v484_v42 = vsub.s32 7, %v12694_v9  ;;  %v473_v43 = vrot.slane %v450_v12, %v472_v39 }
 0x116   : > { %1428 = vmatprep.subr.bf16.mxu0 %v9489_v44  ;;  %1469 = vmatprep.subr.bf16.mxu1 %v9491_v8  ;;  %v481_v44 = vrot.slane %v450_v12, %v480_v40  ;;  %v477_v8 = vrot.slane %v450_v12, %v476_v41 }
 0x117   : > { %v485_v45 = vrot.slane %v450_v12, %v484_v42 }
 0x119   : > { %1429 = vmatpush1.bf16.msra.mxu0 %v9488_v49  ;;  %1470 = vmatpush1.bf16.msra.mxu1 %v9490_v50 }
 0x11a   : > { %1430 = vmatprep.subr.bf16.mxu0 %v9505_v51  ;;  %1471 = vmatprep.subr.bf16.mxu1 %v9507_v52 }
 0x11d   : > { %1431 = vmatpush1.bf16.msra.mxu0 %v9504_v57  ;;  %1472 = vmatpush1.bf16.msra.mxu1 %v9506_v58 }
 0x11e   : > { %1432 = vmatprep.subr.bf16.mxu0 %v9521_v59  ;;  %1473 = vmatprep.subr.bf16.mxu1 %v9523_v60 }
 0x121   : > { %1433 = vmatpush1.bf16.msra.mxu0 %v9520_v1  ;;  %1474 = vmatpush1.bf16.msra.mxu1 %v9522_v2  ;;  %v451_v2 = vld [vmem:[#allocation6 + $0x8] sm:$0xff] }
 0x122   : > { %1434 = vmatprep.subr.bf16.mxu0 %v9537_v3  ;;  %1475 = vmatprep.subr.bf16.mxu1 %v9539_v4  ;;  %v489_v3 = vrot.slane %v451_v2, %v456_v10  ;;  %v497_v4 = vrot.slane %v451_v2, %v464_v13 }
 0x125   : > { %1435 = vmatpush1.bf16.msra.mxu0 %v9536_v5  ;;  %1476 = vmatpush1.bf16.msra.mxu1 %v9538_v6  ;;  %v493_v5 = vrot.slane %v451_v2, %v460_v14  ;;  %v501_v6 = vrot.slane %v451_v2, %v468_v15 }
 0x128   : > { %1453 = vmatmul.mubr.bf16.vlgmr.msra.gmra.mrb[12].mxu0 %v12678_v11  ;;  %1494 = vmatmul.mubr.bf16.vlgmr.msra.gmra.mrb[12].mxu1 %v12678_v11  ;;  %v461_v11 = vrot.slane %v450_v12, %v460_v14 }
 0x19b   : > { %v1208_v19 = vpop.f32.mrb[0].mxu0  ;;  %v1249_v21 = vpop.f32.mrb[0].mxu1 }
 0x19c   : > { %v1209_v20 = vadd.f32 %v1208_v19, %v457_v16  ;;  %v1210_v22 = vpop.f32.mrb[1].mxu0  ;;  %v1250_v23 = vadd.f32 %v1249_v21, %v465_v17  ;;  %v1251_v25 = vpop.f32.mrb[1].mxu1 }
 0x19d   : > { %v1211_v24 = vadd.f32 %v1210_v22, %v461_v11  ;;  %v1212_v26 = vpop.f32.mrb[2].mxu0  ;;  %v1252_v28 = vadd.f32 %v1251_v25, %v469_v18  ;;  %v1253_v29 = vpop.f32.mrb[2].mxu1 }
 0x19e   : > { %vm1502_vm0 = vcmp.ge.f32.partialorder %v1209_v20, 0.0  ;;  %v1518_v27 = vmul.f32 0.01, %v1209_v20  ;;  %v1213_v30 = vpop.f32.mrb[3].mxu0  ;;  %vm1504_vm1 = vcmp.ge.f32.partialorder %v1250_v23, 0.0  ;;  %v1254_v35 = vpop.f32.mrb[3].mxu1  ;;  %v505_v29 = vrot.slane %v451_v2, %v472_v39 }
 0x19f   : > { %v1520_v31 = vmul.f32 0.01, %v1250_v23  ;;  %vm1503_vm2 = vcmp.ge.f32.partialorder %v1211_v24, 0.0  ;;  %v1519_v32 = vmul.f32 0.01, %v1211_v24  ;;  %vm1505_vm3 = vcmp.ge.f32.partialorder %v1252_v28, 0.0 }
 0x1a0   : > { %v1534_v33 = vsel %vm1502_vm0, %v1209_v20, %v1518_v27  ;;  %v1521_v34 = vmul.f32 0.01, %v1252_v28  ;;  %v513_v30 = vrot.slane %v451_v2, %v480_v40 }
 0x1a1   : > { %1550 = vst [vmem:[#allocation2] sm:$0xff] %v1534_v33  ;;  %v1536_v36 = vsel %vm1504_vm1, %v1250_v23, %v1520_v31  ;;  %v1535_v37 = vsel %vm1503_vm2, %v1211_v24, %v1519_v32  ;;  %v509_v31 = vrot.slane %v451_v2, %v476_v41  ;;  %v517_v32 = vrot.slane %v451_v2, %v484_v42 }
 0x1a2   : > { %1552 = vst [vmem:[#allocation2 + $0x10] sm:$0xff] %v1536_v36  ;;  %1551 = vst [vmem:[#allocation2 + $0x8] sm:$0xff] %v1535_v37  ;;  %v1537_v38 = vsel %vm1505_vm3, %v1252_v28, %v1521_v34 }
 0x1a3   : > { %1553 = vst [vmem:[#allocation2 + $0x18] sm:$0xff] %v1537_v38 }
 0x1bb   : > { %v1290_v46 = vpop.f32.mrb[4].mxu0  ;;  %v1331_v48 = vpop.f32.mrb[4].mxu1 }
 0x1bc   : > { %v1291_v47 = vadd.f32 %v1290_v46, %v473_v43  ;;  %v1292_v49 = vpop.f32.mrb[5].mxu0  ;;  %v1332_v50 = vadd.f32 %v1331_v48, %v481_v44  ;;  %v1333_v52 = vpop.f32.mrb[5].mxu1 }
 0x1bd   : > { %v1293_v51 = vadd.f32 %v1292_v49, %v477_v8  ;;  %v1294_v53 = vpop.f32.mrb[6].mxu0  ;;  %v1334_v55 = vadd.f32 %v1333_v52, %v485_v45  ;;  %v1335_v56 = vpop.f32.mrb[6].mxu1 }
 0x1be   : > { %vm1506_vm4 = vcmp.ge.f32.partialorder %v1291_v47, 0.0  ;;  %v1522_v54 = vmul.f32 0.01, %v1291_v47  ;;  %v1295_v57 = vpop.f32.mrb[7].mxu0  ;;  %vm1508_vm5 = vcmp.ge.f32.partialorder %v1332_v50, 0.0  ;;  %v1336_v62 = vpop.f32.mrb[7].mxu1 }
 0x1bf   : > { %v1524_v58 = vmul.f32 0.01, %v1332_v50  ;;  %vm1507_vm6 = vcmp.ge.f32.partialorder %v1293_v51, 0.0  ;;  %v1523_v59 = vmul.f32 0.01, %v1293_v51  ;;  %vm1509_vm7 = vcmp.ge.f32.partialorder %v1334_v55, 0.0 }
 0x1c0   : > { %v1538_v60 = vsel %vm1506_vm4, %v1291_v47, %v1522_v54  ;;  %v1525_v61 = vmul.f32 0.01, %v1334_v55 }
 0x1c1   : > { %1555 = vst [vmem:[#allocation2 + $0x20] sm:$0xff] %v1538_v60  ;;  %v1540_v63 = vsel %vm1508_vm5, %v1332_v50, %v1524_v58  ;;  %v1539_v0 = vsel %vm1507_vm6, %v1293_v51, %v1523_v59 }
 0x1c2   : > { %1557 = vst [vmem:[#allocation2 + $0x30] sm:$0xff] %v1540_v63  ;;  %1556 = vst [vmem:[#allocation2 + $0x28] sm:$0xff] %v1539_v0  ;;  %v1541_v1 = vsel %vm1509_vm7, %v1334_v55, %v1525_v61 }
 0x1c3   : > { %1558 = vst [vmem:[#allocation2 + $0x38] sm:$0xff] %v1541_v1 }
 0x1db   : > { %v1372_v7 = vpop.f32.mrb[8].mxu0  ;;  %v1413_v16 = vpop.f32.mrb[8].mxu1 }
 0x1dc   : > { %v1373_v12 = vadd.f32 %v1372_v7, %v489_v3  ;;  %v1374_v17 = vpop.f32.mrb[9].mxu0  ;;  %v1414_v11 = vadd.f32 %v1413_v16, %v497_v4  ;;  %v1415_v19 = vpop.f32.mrb[9].mxu1 }
 0x1dd   : > { %v1375_v18 = vadd.f32 %v1374_v17, %v493_v5  ;;  %v1376_v20 = vpop.f32.mrb[10].mxu0  ;;  %v1416_v10 = vadd.f32 %v1415_v19, %v501_v6  ;;  %v1417_v22 = vpop.f32.mrb[10].mxu1 }
 0x1de   : > { %vm1510_vm8 = vcmp.ge.f32.partialorder %v1373_v12, 0.0  ;;  %v1526_v21 = vmul.f32 0.01, %v1373_v12  ;;  %v1377_v23 = vpop.f32.mrb[11].mxu0  ;;  %vm1512_vm9 = vcmp.ge.f32.partialorder %v1414_v11, 0.0  ;;  %v1418_v25 = vpop.f32.mrb[11].mxu1 }
 0x1df   : > { %v1528_v13 = vmul.f32 0.01, %v1414_v11  ;;  %vm1511_vm10 = vcmp.ge.f32.partialorder %v1375_v18, 0.0  ;;  %v1527_v14 = vmul.f32 0.01, %v1375_v18  ;;  %vm1513_vm11 = vcmp.ge.f32.partialorder %v1416_v10, 0.0 }
 0x1e0   : > { %v1542_v24 = vsel %vm1510_vm8, %v1373_v12, %v1526_v21  ;;  %v1529_v15 = vmul.f32 0.01, %v1416_v10 }
 0x1e1   : > { %1560 = vst [vmem:[#allocation2 + $0x40] sm:$0xff] %v1542_v24  ;;  %v1544_v26 = vsel %vm1512_vm9, %v1414_v11, %v1528_v13  ;;  %v1543_v27 = vsel %vm1511_vm10, %v1375_v18, %v1527_v14 }
 0x1e2   : > { %1562 = vst [vmem:[#allocation2 + $0x50] sm:$0xff] %v1544_v26  ;;  %1561 = vst [vmem:[#allocation2 + $0x48] sm:$0xff] %v1543_v27  ;;  %v1545_v28 = vsel %vm1513_vm11, %v1416_v10, %v1529_v15 }
 0x1e3   : > { %1563 = vst [vmem:[#allocation2 + $0x58] sm:$0xff] %v1545_v28 }
 0x1fb   : > { %v1454_v33 = vpop.f32.mrb[12].mxu0  ;;  %v1495_v35 = vpop.f32.mrb[12].mxu1 }
 0x1fc   : > { %v1455_v34 = vadd.f32 %v1454_v33, %v505_v29  ;;  %v1456_v36 = vpop.f32.mrb[13].mxu0  ;;  %v1496_v37 = vadd.f32 %v1495_v35, %v513_v30  ;;  %v1497_v43 = vpop.f32.mrb[13].mxu1 }
 0x1fd   : > { %v1457_v38 = vadd.f32 %v1456_v36, %v509_v31  ;;  %v1458_v44 = vpop.f32.mrb[14].mxu0  ;;  %v1498_v39 = vadd.f32 %v1497_v43, %v517_v32  ;;  %v1499_v45 = vpop.f32.mrb[14].mxu1 }
 0x1fe   : > { %vm1514_vm12 = vcmp.ge.f32.partialorder %v1455_v34, 0.0  ;;  %v1530_v8 = vmul.f32 0.01, %v1455_v34  ;;  %v1459_v46 = vpop.f32.mrb[15].mxu0  ;;  %vm1516_vm13 = vcmp.ge.f32.partialorder %v1496_v37, 0.0  ;;  %v1500_v42 = vpop.f32.mrb[15].mxu1 }
 0x1ff   : > { %v1532_v40 = vmul.f32 0.01, %v1496_v37  ;;  %vm1515_vm14 = vcmp.ge.f32.partialorder %v1457_v38, 0.0  ;;  %v1531_v41 = vmul.f32 0.01, %v1457_v38  ;;  %vm1517_vm15 = vcmp.ge.f32.partialorder %v1498_v39, 0.0 }
 0x200   : > { %v1546_v47 = vsel %vm1514_vm12, %v1455_v34, %v1530_v8  ;;  %v1533_v9 = vmul.f32 0.01, %v1498_v39 }
 0x201   : > { %1565 = vst [vmem:[#allocation2 + $0x60] sm:$0xff] %v1546_v47  ;;  %v1548_v48 = vsel %vm1516_vm13, %v1496_v37, %v1532_v40  ;;  %v1547_v49 = vsel %vm1515_vm14, %v1457_v38, %v1531_v41 }
 0x202   : > { %1567 = vst [vmem:[#allocation2 + $0x70] sm:$0xff] %v1548_v48  ;;  %1566 = vst [vmem:[#allocation2 + $0x68] sm:$0xff] %v1547_v49  ;;  %v1549_v50 = vsel %vm1517_vm15, %v1498_v39, %v1533_v9 }
 0x203   : > { %1568 = vst [vmem:[#allocation2 + $0x78] sm:$0xff] %v1549_v50 }
 0x204 PF: > { %s12738_s7 = scalar_select %p313_p12, 1.0, 0.01 }
 0x205   : > { %p1570_p9 = scmp.lt.s32.totalorder %s12393_s22, 0  ;;  %s1571_s8 = ssub.s32 0, %s12393_s22 }
 0x206   : > { %s9540_s12 = smin.u32 %s12393_s22, %s1571_s8 }
 0x207   : > { %s1573_s18 = sand.u32 1, %s9540_s12  }
 0x208   : > { %s1574_s11 = ssub.s32 0, %s1573_s18 }
 0x209   : > { %s14161_s11 = smov (!%p1570_p9, %s1574_s11), %s1573_s18 }
 0x20a   : > { %p9542_p0 = scmp.lt.s32.totalorder %s14161_s11, 0  ;;  %s1580_s14 = sadd.s32 2, %s14161_s11 }
 0x20c   : > { %s14163_s14 = smov (!%p9542_p0, %s1580_s14), %s14161_s11 }
 0x20d   : > { %p9543_p13 = scmp.ne.s32.totalorder %s14163_s14, 0 }
 0x20e   : > { %v10679_v51 = vld [vmem:[%s12661_s0 + $0x404] ss:$16 sps:$4 sm:$0xff] (!%p9543_p13)   ;;  %v10683_v53 = vld [vmem:[%s12661_s0 + $0x400] ss:$16 sps:$4 sm:$0xff] (!%p9543_p13)   ;;  %v1724_v35 = vld [vmem:[#allocation2 + $0x28] sm:$0xff] (!%p9543_p13)  ;;  %s14139_s27 = sld [smem:[#allocation13_spill]] (!%p9543_p13) }
 0x20f   : > { %1585 = sbr.rel (%p9543_p13) target bundleno = 1276 (0x4fc), region = 64  ;;  %v10681_v52 = vld [vmem:[%s12661_s0 + $0x604] ss:$16 sps:$4 sm:$0xff] (!%p9543_p13)   ;;  %2499 = vmatprep.subr.bf16.mxu0 (!%p9543_p13), %v10679_v51  ;;  %v10684_v54 = vld [vmem:[%s12661_s0 + $0x600] ss:$16 sps:$4 sm:$0xff] (!%p9543_p13)   ;;  %v12794_v38 = vpack.c.bf16 (!%p9543_p13), %v1724_v35, %v1724_v35  ;;  %v1726_v43 = vld [vmem:[#allocation2 + $0x38] sm:$0xff] (!%p9543_p13) }
 0x210   : > { %2540 = vmatprep.subr.bf16.mxu1 (!%p9543_p13), %v10681_v52  ;;  %v10685_v55 = vld [vmem:[%s12661_s0 + $0x424] ss:$16 sps:$4 sm:$0xff] (!%p9543_p13)   ;;  %2500 = vmatpush1.bf16.msra.mxu0 (!%p9543_p13), %v10683_v53  ;;  %v10689_v57 = vld [vmem:[%s12661_s0 + $0x420] ss:$16 sps:$4 sm:$0xff] (!%p9543_p13)   ;;  %v1730_v8 = vpack.c.bf16 (!%p9543_p13), %v1726_v43, %v1726_v43  ;;  %v10829_v35 = vld [vmem:[%s12661_s0 + $0x528] ss:$16 sps:$4 sm:$0xff] (!%p9543_p13)  }
 0x211   : > { %2541 = vmatpush1.bf16.msra.mxu1 (!%p9543_p13), %v10684_v54  ;;  %v10687_v56 = vld [vmem:[%s12661_s0 + $0x624] ss:$16 sps:$4 sm:$0xff] (!%p9543_p13)   ;;  %2501 = vmatprep.subr.bf16.mxu0 (!%p9543_p13), %v10685_v55  ;;  %v10690_v58 = vld [vmem:[%s12661_s0 + $0x620] ss:$16 sps:$4 sm:$0xff] (!%p9543_p13)   ;;  %v10835_v43 = vld [vmem:[%s12661_s0 + $0x548] ss:$16 sps:$4 sm:$0xff] (!%p9543_p13)  }
 0x212   : > { %2542 = vmatprep.subr.bf16.mxu1 (!%p9543_p13), %v10687_v56  ;;  %v10691_v59 = vld [vmem:[%s12661_s0 + $0x444] ss:$16 sps:$4 sm:$0xff] (!%p9543_p13)   ;;  %v10695_v61 = vld [vmem:[%s12661_s0 + $0x440] ss:$16 sps:$4 sm:$0xff] (!%p9543_p13)   ;;  %2531 = vmatprep.mubr.bf16.mxu0 (!%p9543_p13), %v12794_v38 }
 0x213   : > { %v10693_v60 = vld [vmem:[%s12661_s0 + $0x644] ss:$16 sps:$4 sm:$0xff] (!%p9543_p13)   ;;  %v10696_v62 = vld [vmem:[%s12661_s0 + $0x640] ss:$16 sps:$4 sm:$0xff] (!%p9543_p13)   ;;  %2572 = vmatprep.mubr.bf16.mxu1 (!%p9543_p13), %v1730_v8 }
 0x214   : > { %2502 = vmatpush1.bf16.msra.mxu0 (!%p9543_p13), %v10689_v57  ;;  %v10697_v63 = vld [vmem:[%s12661_s0 + $0x464] ss:$16 sps:$4 sm:$0xff] (!%p9543_p13)   ;;  %v10701_v1 = vld [vmem:[%s12661_s0 + $0x460] ss:$16 sps:$4 sm:$0xff] (!%p9543_p13)   ;;  %v10777_v57 = vld [vmem:[%s12661_s0 + $0x40c] ss:$16 sps:$4 sm:$0xff] (!%p9543_p13)  }
 0x215   : > { %2543 = vmatpush1.bf16.msra.mxu1 (!%p9543_p13), %v10690_v58  ;;  %2503 = vmatprep.subr.bf16.mxu0 (!%p9543_p13), %v10691_v59  ;;  %v10699_v0 = vld [vmem:[%s12661_s0 + $0x664] ss:$16 sps:$4 sm:$0xff] (!%p9543_p13)   ;;  %v10702_v2 = vld [vmem:[%s12661_s0 + $0x660] ss:$16 sps:$4 sm:$0xff] (!%p9543_p13)   ;;  %v10780_v58 = vld [vmem:[%s12661_s0 + $0x60c] ss:$16 sps:$4 sm:$0xff] (!%p9543_p13)  }
 0x216   : > { %2544 = vmatprep.subr.bf16.mxu1 %v10693_v60  ;;  %v10703_v3 = vld [vmem:[%s12661_s0 + $0x484] ss:$16 sps:$4 sm:$0xff]   ;;  %v10707_v5 = vld [vmem:[%s12661_s0 + $0x480] ss:$16 sps:$4 sm:$0xff]   ;;  %p5403_p4 = scmp.eq.s32.totalorder %s14139_s27, 3  ;;  %s10575_s26 = sshll.u32 %s14139_s27, 5 }
 0x217   : > { %v10705_v4 = vld [vmem:[%s12661_s0 + $0x684] ss:$16 sps:$4 sm:$0xff]   ;;  %v10708_v6 = vld [vmem:[%s12661_s0 + $0x680] ss:$16 sps:$4 sm:$0xff]   ;;  %s5398_s13 = scalar_lea.vmem [#allocation3], %s10575_s26 }
 0x218   : > { %2504 = vmatpush1.bf16.msra.mxu0 %v10695_v61  ;;  %v10709_v7 = vld [vmem:[%s12661_s0 + $0x4a4] ss:$16 sps:$4 sm:$0xff]   ;;  %v10713_v16 = vld [vmem:[%s12661_s0 + $0x4a0] ss:$16 sps:$4 sm:$0xff]   ;;  %v10775_v61 = vld [vmem:[%s12661_s0 + $0x408] ss:$16 sps:$4 sm:$0xff]   ;;  %p13345_p10 = pnand %p5403_p4, %p313_p12 }
 0x219   : > { %2545 = vmatpush1.bf16.msra.mxu1 %v10696_v62  ;;  %2505 = vmatprep.subr.bf16.mxu0 %v10697_v63  ;;  %v10711_v12 = vld [vmem:[%s12661_s0 + $0x6a4] ss:$16 sps:$4 sm:$0xff]   ;;  %v10714_v17 = vld [vmem:[%s12661_s0 + $0x6a0] ss:$16 sps:$4 sm:$0xff]   ;;  %v10778_v62 = vld [vmem:[%s12661_s0 + $0x608] ss:$16 sps:$4 sm:$0xff]  }
 0x21a   : > { %2546 = vmatprep.subr.bf16.mxu1 %v10699_v0  ;;  %v10715_v11 = vld [vmem:[%s12661_s0 + $0x4c4] ss:$16 sps:$4 sm:$0xff]   ;;  %v10719_v19 = vld [vmem:[%s12661_s0 + $0x4c0] ss:$16 sps:$4 sm:$0xff]   ;;  %v10783_v63 = vld [vmem:[%s12661_s0 + $0x42c] ss:$16 sps:$4 sm:$0xff]  }
 0x21b   : > { %v10717_v18 = vld [vmem:[%s12661_s0 + $0x6c4] ss:$16 sps:$4 sm:$0xff]   ;;  %v10720_v20 = vld [vmem:[%s12661_s0 + $0x6c0] ss:$16 sps:$4 sm:$0xff]   ;;  %v10786_v0 = vld [vmem:[%s12661_s0 + $0x62c] ss:$16 sps:$4 sm:$0xff]  }
 0x21c   : > { %2506 = vmatpush1.bf16.msra.mxu0 %v10701_v1  ;;  %v10721_v21 = vld [vmem:[%s12661_s0 + $0x4e4] ss:$16 sps:$4 sm:$0xff]   ;;  %v10725_v22 = vld [vmem:[%s12661_s0 + $0x4e0] ss:$16 sps:$4 sm:$0xff]   ;;  %v10781_v1 = vld [vmem:[%s12661_s0 + $0x428] ss:$16 sps:$4 sm:$0xff]  }
 0x21d   : > { %2547 = vmatpush1.bf16.msra.mxu1 %v10702_v2  ;;  %2507 = vmatprep.subr.bf16.mxu0 %v10703_v3  ;;  %v10723_v10 = vld [vmem:[%s12661_s0 + $0x6e4] ss:$16 sps:$4 sm:$0xff]   ;;  %v10726_v23 = vld [vmem:[%s12661_s0 + $0x6e0] ss:$16 sps:$4 sm:$0xff]   ;;  %v10784_v2 = vld [vmem:[%s12661_s0 + $0x628] ss:$16 sps:$4 sm:$0xff]  }
 0x21e   : > { %2548 = vmatprep.subr.bf16.mxu1 %v10705_v4  ;;  %v10727_v13 = vld [vmem:[%s12661_s0 + $0x504] ss:$16 sps:$4 sm:$0xff]   ;;  %v10731_v24 = vld [vmem:[%s12661_s0 + $0x500] ss:$16 sps:$4 sm:$0xff]   ;;  %v10789_v3 = vld [vmem:[%s12661_s0 + $0x44c] ss:$16 sps:$4 sm:$0xff]  }
 0x21f   : > { %v10729_v14 = vld [vmem:[%s12661_s0 + $0x704] ss:$16 sps:$4 sm:$0xff]   ;;  %v10732_v15 = vld [vmem:[%s12661_s0 + $0x700] ss:$16 sps:$4 sm:$0xff]   ;;  %v10792_v4 = vld [vmem:[%s12661_s0 + $0x64c] ss:$16 sps:$4 sm:$0xff]  }
 0x220   : > { %2508 = vmatpush1.bf16.msra.mxu0 %v10707_v5  ;;  %v10733_v25 = vld [vmem:[%s12661_s0 + $0x524] ss:$16 sps:$4 sm:$0xff]   ;;  %v10737_v27 = vld [vmem:[%s12661_s0 + $0x520] ss:$16 sps:$4 sm:$0xff]   ;;  %v10787_v5 = vld [vmem:[%s12661_s0 + $0x448] ss:$16 sps:$4 sm:$0xff]  }
 0x221   : > { %2549 = vmatpush1.bf16.msra.mxu1 %v10708_v6  ;;  %2509 = vmatprep.subr.bf16.mxu0 %v10709_v7  ;;  %v10735_v26 = vld [vmem:[%s12661_s0 + $0x724] ss:$16 sps:$4 sm:$0xff]   ;;  %v10738_v28 = vld [vmem:[%s12661_s0 + $0x720] ss:$16 sps:$4 sm:$0xff]   ;;  %v10790_v6 = vld [vmem:[%s12661_s0 + $0x648] ss:$16 sps:$4 sm:$0xff]  }
 0x222   : > { %2550 = vmatprep.subr.bf16.mxu1 %v10711_v12  ;;  %v10739_v29 = vld [vmem:[%s12661_s0 + $0x544] ss:$16 sps:$4 sm:$0xff]   ;;  %v10743_v31 = vld [vmem:[%s12661_s0 + $0x540] ss:$16 sps:$4 sm:$0xff]   ;;  %v10795_v7 = vld [vmem:[%s12661_s0 + $0x46c] ss:$16 sps:$4 sm:$0xff]  }
 0x223   : > { %v10741_v30 = vld [vmem:[%s12661_s0 + $0x744] ss:$16 sps:$4 sm:$0xff]   ;;  %v10744_v32 = vld [vmem:[%s12661_s0 + $0x740] ss:$16 sps:$4 sm:$0xff]   ;;  %v10798_v12 = vld [vmem:[%s12661_s0 + $0x66c] ss:$16 sps:$4 sm:$0xff]  }
 0x224   : > { %2510 = vmatpush1.bf16.msra.mxu0 %v10713_v16  ;;  %v10745_v33 = vld [vmem:[%s12661_s0 + $0x564] ss:$16 sps:$4 sm:$0xff]   ;;  %v10749_v36 = vld [vmem:[%s12661_s0 + $0x560] ss:$16 sps:$4 sm:$0xff]   ;;  %v10793_v16 = vld [vmem:[%s12661_s0 + $0x468] ss:$16 sps:$4 sm:$0xff]  }
 0x225   : > { %2551 = vmatpush1.bf16.msra.mxu1 %v10714_v17  ;;  %2511 = vmatprep.subr.bf16.mxu0 %v10715_v11  ;;  %v10747_v34 = vld [vmem:[%s12661_s0 + $0x764] ss:$16 sps:$4 sm:$0xff]   ;;  %v10750_v37 = vld [vmem:[%s12661_s0 + $0x760] ss:$16 sps:$4 sm:$0xff]   ;;  %v10796_v17 = vld [vmem:[%s12661_s0 + $0x668] ss:$16 sps:$4 sm:$0xff]  }
 0x226   : > { %2552 = vmatprep.subr.bf16.mxu1 %v10717_v18  ;;  %v10751_v44 = vld [vmem:[%s12661_s0 + $0x584] ss:$16 sps:$4 sm:$0xff]   ;;  %v10755_v45 = vld [vmem:[%s12661_s0 + $0x580] ss:$16 sps:$4 sm:$0xff]   ;;  %v10801_v11 = vld [vmem:[%s12661_s0 + $0x48c] ss:$16 sps:$4 sm:$0xff]  }
 0x227   : > { %v10753_v39 = vld [vmem:[%s12661_s0 + $0x784] ss:$16 sps:$4 sm:$0xff]   ;;  %v10756_v46 = vld [vmem:[%s12661_s0 + $0x780] ss:$16 sps:$4 sm:$0xff]   ;;  %v10804_v18 = vld [vmem:[%s12661_s0 + $0x68c] ss:$16 sps:$4 sm:$0xff]  }
 0x228   : > { %2512 = vmatpush1.bf16.msra.mxu0 %v10719_v19  ;;  %v10757_v40 = vld [vmem:[%s12661_s0 + $0x5a4] ss:$16 sps:$4 sm:$0xff]   ;;  %v10761_v47 = vld [vmem:[%s12661_s0 + $0x5a0] ss:$16 sps:$4 sm:$0xff]   ;;  %v10799_v19 = vld [vmem:[%s12661_s0 + $0x488] ss:$16 sps:$4 sm:$0xff]  }
 0x229   : > { %2553 = vmatpush1.bf16.msra.mxu1 %v10720_v20  ;;  %2513 = vmatprep.subr.bf16.mxu0 %v10721_v21  ;;  %v10759_v41 = vld [vmem:[%s12661_s0 + $0x7a4] ss:$16 sps:$4 sm:$0xff]   ;;  %v10762_v9 = vld [vmem:[%s12661_s0 + $0x7a0] ss:$16 sps:$4 sm:$0xff]   ;;  %v10802_v20 = vld [vmem:[%s12661_s0 + $0x688] ss:$16 sps:$4 sm:$0xff]  }
 0x22a   : > { %2554 = vmatprep.subr.bf16.mxu1 %v10723_v10  ;;  %v10763_v42 = vld [vmem:[%s12661_s0 + $0x5c4] ss:$16 sps:$4 sm:$0xff]   ;;  %v10767_v49 = vld [vmem:[%s12661_s0 + $0x5c0] ss:$16 sps:$4 sm:$0xff]   ;;  %v10807_v21 = vld [vmem:[%s12661_s0 + $0x4ac] ss:$16 sps:$4 sm:$0xff]  }
 0x22b   : > { %v10765_v48 = vld [vmem:[%s12661_s0 + $0x7c4] ss:$16 sps:$4 sm:$0xff]   ;;  %v10768_v50 = vld [vmem:[%s12661_s0 + $0x7c0] ss:$16 sps:$4 sm:$0xff]   ;;  %v10810_v10 = vld [vmem:[%s12661_s0 + $0x6ac] ss:$16 sps:$4 sm:$0xff]  }
 0x22c   : > { %2514 = vmatpush1.bf16.msra.mxu0 %v10725_v22  ;;  %v10769_v51 = vld [vmem:[%s12661_s0 + $0x5e4] ss:$16 sps:$4 sm:$0xff]   ;;  %v10773_v53 = vld [vmem:[%s12661_s0 + $0x5e0] ss:$16 sps:$4 sm:$0xff]   ;;  %v10805_v22 = vld [vmem:[%s12661_s0 + $0x4a8] ss:$16 sps:$4 sm:$0xff]  }
 0x22d   : > { %2555 = vmatpush1.bf16.msra.mxu1 %v10726_v23  ;;  %2515 = vmatprep.subr.bf16.mxu0 %v10727_v13  ;;  %v10771_v52 = vld [vmem:[%s12661_s0 + $0x7e4] ss:$16 sps:$4 sm:$0xff]   ;;  %v10774_v54 = vld [vmem:[%s12661_s0 + $0x7e0] ss:$16 sps:$4 sm:$0xff]   ;;  %v10808_v23 = vld [vmem:[%s12661_s0 + $0x6a8] ss:$16 sps:$4 sm:$0xff]  }
 0x22e   : > { %2556 = vmatprep.subr.bf16.mxu1 %v10729_v14  ;;  %v1723_v55 = vld [vmem:[#allocation2 + $0x20] sm:$0xff]  ;;  %v1725_v56 = vld [vmem:[#allocation2 + $0x30] sm:$0xff]  ;;  %v10813_v13 = vld [vmem:[%s12661_s0 + $0x4cc] ss:$16 sps:$4 sm:$0xff]   ;;  %s14141_s17 = sld [smem:[#allocation19_spill]] (!%p13345_p10) }
 0x22f   : > { %v12815_v59 = vpack.c.bf16 %v1723_v55, %v1723_v55  ;;  %v12817_v60 = vpack.c.bf16 %v1725_v56, %v1725_v56  ;;  %v10816_v14 = vld [vmem:[%s12661_s0 + $0x6cc] ss:$16 sps:$4 sm:$0xff]  }
 0x230   : > { %2516 = vmatpush1.bf16.msra.mxu0 %v10731_v24  ;;  %v10811_v24 = vld [vmem:[%s12661_s0 + $0x4c8] ss:$16 sps:$4 sm:$0xff]   ;;  %v10867_v55 = vld [vmem:[%s12661_s0 + $0x5ec] ss:$16 sps:$4 sm:$0xff]  }
 0x231   : > { %2557 = vmatpush1.bf16.msra.mxu1 %v10732_v15  ;;  %2517 = vmatprep.subr.bf16.mxu0 %v10733_v25  ;;  %v10814_v15 = vld [vmem:[%s12661_s0 + $0x6c8] ss:$16 sps:$4 sm:$0xff]   ;;  %v10819_v25 = vld [vmem:[%s12661_s0 + $0x4ec] ss:$16 sps:$4 sm:$0xff]  }
 0x232   : > { %2558 = vmatprep.subr.bf16.mxu1 %v10735_v26  ;;  %v10822_v26 = vld [vmem:[%s12661_s0 + $0x6ec] ss:$16 sps:$4 sm:$0xff]  }
 0x233   : > { %v10870_v56 = vld [vmem:[%s12661_s0 + $0x7ec] ss:$16 sps:$4 sm:$0xff]  }
 0x234   : > { %2518 = vmatpush1.bf16.msra.mxu0 %v10737_v27  ;;  %v10817_v27 = vld [vmem:[%s12661_s0 + $0x4e8] ss:$16 sps:$4 sm:$0xff]  }
 0x235   : > { %2559 = vmatpush1.bf16.msra.mxu1 %v10738_v28  ;;  %2519 = vmatprep.subr.bf16.mxu0 %v10739_v29  ;;  %v10820_v28 = vld [vmem:[%s12661_s0 + $0x6e8] ss:$16 sps:$4 sm:$0xff]   ;;  %v10825_v29 = vld [vmem:[%s12661_s0 + $0x50c] ss:$16 sps:$4 sm:$0xff]  }
 0x236   : > { %2560 = vmatprep.subr.bf16.mxu1 %v10741_v30  ;;  %v10828_v30 = vld [vmem:[%s12661_s0 + $0x70c] ss:$16 sps:$4 sm:$0xff]  }
 0x238   : > { %2520 = vmatpush1.bf16.msra.mxu0 %v10743_v31  ;;  %v10823_v31 = vld [vmem:[%s12661_s0 + $0x508] ss:$16 sps:$4 sm:$0xff]  }
 0x239   : > { %2561 = vmatpush1.bf16.msra.mxu1 %v10744_v32  ;;  %2521 = vmatprep.subr.bf16.mxu0 %v10745_v33  ;;  %v10826_v32 = vld [vmem:[%s12661_s0 + $0x708] ss:$16 sps:$4 sm:$0xff]   ;;  %v10831_v33 = vld [vmem:[%s12661_s0 + $0x52c] ss:$16 sps:$4 sm:$0xff]  }
 0x23a   : > { %2562 = vmatprep.subr.bf16.mxu1 %v10747_v34  ;;  %v10834_v34 = vld [vmem:[%s12661_s0 + $0x72c] ss:$16 sps:$4 sm:$0xff]  }
 0x23c   : > { %2522 = vmatpush1.bf16.msra.mxu0 %v10749_v36  ;;  %v10832_v36 = vld [vmem:[%s12661_s0 + $0x728] ss:$16 sps:$4 sm:$0xff]  }
 0x23d   : > { %2563 = vmatpush1.bf16.msra.mxu1 %v10750_v37  ;;  %2523 = vmatprep.subr.bf16.mxu0 %v10751_v44  ;;  %v10837_v37 = vld [vmem:[%s12661_s0 + $0x54c] ss:$16 sps:$4 sm:$0xff]   ;;  %v10838_v44 = vld [vmem:[%s12661_s0 + $0x748] ss:$16 sps:$4 sm:$0xff]  }
 0x23e   : > { %2564 = vmatprep.subr.bf16.mxu1 %v10753_v39  ;;  %v10846_v39 = vld [vmem:[%s12661_s0 + $0x76c] ss:$16 sps:$4 sm:$0xff]  }
 0x240   : > { %2524 = vmatpush1.bf16.msra.mxu0 %v10755_v45  ;;  %v10841_v45 = vld [vmem:[%s12661_s0 + $0x568] ss:$16 sps:$4 sm:$0xff]  }
 0x241   : > { %2565 = vmatpush1.bf16.msra.mxu1 %v10756_v46  ;;  %2525 = vmatprep.subr.bf16.mxu0 %v10757_v40  ;;  %v10844_v46 = vld [vmem:[%s12661_s0 + $0x768] ss:$16 sps:$4 sm:$0xff]   ;;  %v10849_v40 = vld [vmem:[%s12661_s0 + $0x58c] ss:$16 sps:$4 sm:$0xff]  }
 0x242   : > { %2566 = vmatprep.subr.bf16.mxu1 %v10759_v41  ;;  %v10852_v41 = vld [vmem:[%s12661_s0 + $0x78c] ss:$16 sps:$4 sm:$0xff]  }
 0x244   : > { %2526 = vmatpush1.bf16.msra.mxu0 %v10761_v47  ;;  %v10847_v47 = vld [vmem:[%s12661_s0 + $0x588] ss:$16 sps:$4 sm:$0xff]  }
 0x245   : > { %2567 = vmatpush1.bf16.msra.mxu1 %v10762_v9  ;;  %2527 = vmatprep.subr.bf16.mxu0 %v10763_v42  ;;  %v10850_v9 = vld [vmem:[%s12661_s0 + $0x788] ss:$16 sps:$4 sm:$0xff]   ;;  %v10855_v42 = vld [vmem:[%s12661_s0 + $0x5ac] ss:$16 sps:$4 sm:$0xff]  }
 0x246   : > { %2568 = vmatprep.subr.bf16.mxu1 %v10765_v48  ;;  %v10858_v48 = vld [vmem:[%s12661_s0 + $0x7ac] ss:$16 sps:$4 sm:$0xff]  }
 0x248   : > { %2528 = vmatpush1.bf16.msra.mxu0 %v10767_v49  ;;  %v10853_v49 = vld [vmem:[%s12661_s0 + $0x5a8] ss:$16 sps:$4 sm:$0xff]  }
 0x249   : > { %2569 = vmatpush1.bf16.msra.mxu1 %v10768_v50  ;;  %2529 = vmatprep.subr.bf16.mxu0 %v10769_v51  ;;  %v10856_v50 = vld [vmem:[%s12661_s0 + $0x7a8] ss:$16 sps:$4 sm:$0xff]   ;;  %v10861_v51 = vld [vmem:[%s12661_s0 + $0x5cc] ss:$16 sps:$4 sm:$0xff]  }
 0x24a   : > { %2570 = vmatprep.subr.bf16.mxu1 %v10771_v52  ;;  %v10864_v52 = vld [vmem:[%s12661_s0 + $0x7cc] ss:$16 sps:$4 sm:$0xff]  }
 0x24c   : > { %2530 = vmatpush1.bf16.msra.mxu0 %v10773_v53  ;;  %v10859_v53 = vld [vmem:[%s12661_s0 + $0x5c8] ss:$16 sps:$4 sm:$0xff]  }
 0x24d   : > { %2571 = vmatpush1.bf16.msra.mxu1 %v10774_v54  ;;  %2581 = vmatprep.subr.bf16.mxu0 %v10777_v57  ;;  %v10862_v54 = vld [vmem:[%s12661_s0 + $0x7c8] ss:$16 sps:$4 sm:$0xff]  }
 0x24e   : > { %2622 = vmatprep.subr.bf16.mxu1 %v10780_v58  ;;  %v10865_v57 = vld [vmem:[%s12661_s0 + $0x5e8] ss:$16 sps:$4 sm:$0xff]  }
 0x24f   : > { %2532 = vmatmul.mubr.bf16.vlgmr.msra.gmra.mrb[0].mxu0 %v12815_v59  ;;  %v10868_v58 = vld [vmem:[%s12661_s0 + $0x7e8] ss:$16 sps:$4 sm:$0xff]  }
 0x250   : > { %2573 = vmatmul.mubr.bf16.vlgmr.msra.gmra.mrb[0].mxu1 %v12817_v60  ;;  %2582 = vmatpush1.bf16.msra.mxu0 %v10775_v61  ;;  %v10873_v61 = vld [vmem:[%s12661_s0 + $0x4] ss:$16 sps:$4 sm:$0xff]  }
 0x251   : > { %2623 = vmatpush1.bf16.msra.mxu1 %v10778_v62  ;;  %2583 = vmatprep.subr.bf16.mxu0 %v10783_v63  ;;  %v10876_v62 = vld [vmem:[%s12661_s0 + $0x204] ss:$16 sps:$4 sm:$0xff]   ;;  %v10871_v63 = vld [vmem:[%s12661_s0] ss:$16 sps:$4 sm:$0xff]  }
 0x252   : > { %2624 = vmatprep.subr.bf16.mxu1 %v10786_v0  ;;  %2613 = vmatprep.mubr.bf16.mxu0 %v12794_v38  ;;  %v10840_v38 = vld [vmem:[%s12661_s0 + $0x74c] ss:$16 sps:$4 sm:$0xff]   ;;  %v10874_v0 = vld [vmem:[%s12661_s0 + $0x200] ss:$16 sps:$4 sm:$0xff]  }
 0x253   : > { %2654 = vmatprep.mubr.bf16.mxu1 %v1730_v8  ;;  %v10843_v8 = vld [vmem:[%s12661_s0 + $0x56c] ss:$16 sps:$4 sm:$0xff]  }
 0x254   : > { %2584 = vmatpush1.bf16.msra.mxu0 %v10781_v1  ;;  %v10879_v1 = vld [vmem:[%s12661_s0 + $0x24] ss:$16 sps:$4 sm:$0xff]  }
 0x255   : > { %2625 = vmatpush1.bf16.msra.mxu1 %v10784_v2  ;;  %2585 = vmatprep.subr.bf16.mxu0 %v10789_v3  ;;  %v10882_v2 = vld [vmem:[%s12661_s0 + $0x224] ss:$16 sps:$4 sm:$0xff]   ;;  %v1587_v3 = vld [vmem:[#allocation2 + $0x8] sm:$0xff] }
 0x256   : > { %2626 = vmatprep.subr.bf16.mxu1 %v10792_v4  ;;  %v1589_v4 = vld [vmem:[#allocation2 + $0x18] sm:$0xff] }
 0x258   : > { %2586 = vmatpush1.bf16.msra.mxu0 %v10787_v5  ;;  %v12890_v5 = vpack.c.bf16 %v1587_v3, %v1587_v3  ;;  %v10969_v3 = vld [vmem:[%s12661_s0 + $0xc] ss:$16 sps:$4 sm:$0xff]  }
 0x259   : > { %2627 = vmatpush1.bf16.msra.mxu1 %v10790_v6  ;;  %2587 = vmatprep.subr.bf16.mxu0 %v10795_v7  ;;  %v12892_v6 = vpack.c.bf16 %v1589_v4, %v1589_v4  ;;  %v10877_v7 = vld [vmem:[%s12661_s0 + $0x20] ss:$16 sps:$4 sm:$0xff]   ;;  %v10972_v4 = vld [vmem:[%s12661_s0 + $0x20c] ss:$16 sps:$4 sm:$0xff]  }
 0x25a   : > { %2628 = vmatprep.subr.bf16.mxu1 %v10798_v12  ;;  %v10880_v12 = vld [vmem:[%s12661_s0 + $0x220] ss:$16 sps:$4 sm:$0xff]  }
 0x25c   : > { %2588 = vmatpush1.bf16.msra.mxu0 %v10793_v16  ;;  %v10885_v16 = vld [vmem:[%s12661_s0 + $0x44] ss:$16 sps:$4 sm:$0xff]  }
 0x25d   : > { %2629 = vmatpush1.bf16.msra.mxu1 %v10796_v17  ;;  %2589 = vmatprep.subr.bf16.mxu0 %v10801_v11  ;;  %v10888_v17 = vld [vmem:[%s12661_s0 + $0x244] ss:$16 sps:$4 sm:$0xff]  }
 0x25e   : > { %2630 = vmatprep.subr.bf16.mxu1 %v10804_v18  ;;  %v10891_v11 = vld [vmem:[%s12661_s0 + $0x64] ss:$16 sps:$4 sm:$0xff]  }
 0x25f   : > { %v10894_v18 = vld [vmem:[%s12661_s0 + $0x264] ss:$16 sps:$4 sm:$0xff]  }
 0x260   : > { %2590 = vmatpush1.bf16.msra.mxu0 %v10799_v19  ;;  %v10889_v19 = vld [vmem:[%s12661_s0 + $0x60] ss:$16 sps:$4 sm:$0xff]  }
 0x261   : > { %2631 = vmatpush1.bf16.msra.mxu1 %v10802_v20  ;;  %2591 = vmatprep.subr.bf16.mxu0 %v10807_v21  ;;  %v10892_v20 = vld [vmem:[%s12661_s0 + $0x260] ss:$16 sps:$4 sm:$0xff]   ;;  %v10897_v21 = vld [vmem:[%s12661_s0 + $0x84] ss:$16 sps:$4 sm:$0xff]  }
 0x262   : > { %2632 = vmatprep.subr.bf16.mxu1 %v10810_v10  ;;  %v10900_v10 = vld [vmem:[%s12661_s0 + $0x284] ss:$16 sps:$4 sm:$0xff]  }
 0x264   : > { %2592 = vmatpush1.bf16.msra.mxu0 %v10805_v22  ;;  %v10895_v22 = vld [vmem:[%s12661_s0 + $0x80] ss:$16 sps:$4 sm:$0xff]  }
 0x265   : > { %2633 = vmatpush1.bf16.msra.mxu1 %v10808_v23  ;;  %2593 = vmatprep.subr.bf16.mxu0 %v10813_v13  ;;  %v10898_v23 = vld [vmem:[%s12661_s0 + $0x280] ss:$16 sps:$4 sm:$0xff]   ;;  %v10903_v13 = vld [vmem:[%s12661_s0 + $0xa4] ss:$16 sps:$4 sm:$0xff]  }
 0x266   : > { %2634 = vmatprep.subr.bf16.mxu1 %v10816_v14  ;;  %v10906_v14 = vld [vmem:[%s12661_s0 + $0x2a4] ss:$16 sps:$4 sm:$0xff]  }
 0x268   : > { %2594 = vmatpush1.bf16.msra.mxu0 %v10811_v24  ;;  %v10901_v24 = vld [vmem:[%s12661_s0 + $0xa0] ss:$16 sps:$4 sm:$0xff]  }
 0x269   : > { %2635 = vmatpush1.bf16.msra.mxu1 %v10814_v15  ;;  %2595 = vmatprep.subr.bf16.mxu0 %v10819_v25  ;;  %v10904_v15 = vld [vmem:[%s12661_s0 + $0x2a0] ss:$16 sps:$4 sm:$0xff]   ;;  %v10909_v25 = vld [vmem:[%s12661_s0 + $0xc4] ss:$16 sps:$4 sm:$0xff]  }
 0x26a   : > { %2636 = vmatprep.subr.bf16.mxu1 %v10822_v26  ;;  %v10912_v26 = vld [vmem:[%s12661_s0 + $0x2c4] ss:$16 sps:$4 sm:$0xff]  }
 0x26c   : > { %2596 = vmatpush1.bf16.msra.mxu0 %v10817_v27  ;;  %v10907_v27 = vld [vmem:[%s12661_s0 + $0xc0] ss:$16 sps:$4 sm:$0xff]  }
 0x26d   : > { %2637 = vmatpush1.bf16.msra.mxu1 %v10820_v28  ;;  %2597 = vmatprep.subr.bf16.mxu0 %v10825_v29  ;;  %v10910_v28 = vld [vmem:[%s12661_s0 + $0x2c0] ss:$16 sps:$4 sm:$0xff]   ;;  %v10915_v29 = vld [vmem:[%s12661_s0 + $0xe4] ss:$16 sps:$4 sm:$0xff]  }
 0x26e   : > { %2638 = vmatprep.subr.bf16.mxu1 %v10828_v30  ;;  %v10918_v30 = vld [vmem:[%s12661_s0 + $0x2e4] ss:$16 sps:$4 sm:$0xff]  }
 0x270   : > { %2598 = vmatpush1.bf16.msra.mxu0 %v10823_v31  ;;  %v10913_v31 = vld [vmem:[%s12661_s0 + $0xe0] ss:$16 sps:$4 sm:$0xff]  }
 0x271   : > { %2639 = vmatpush1.bf16.msra.mxu1 %v10826_v32  ;;  %2599 = vmatprep.subr.bf16.mxu0 %v10831_v33  ;;  %v10916_v32 = vld [vmem:[%s12661_s0 + $0x2e0] ss:$16 sps:$4 sm:$0xff]   ;;  %v10921_v33 = vld [vmem:[%s12661_s0 + $0x104] ss:$16 sps:$4 sm:$0xff]  }
 0x272   : > { %2640 = vmatprep.subr.bf16.mxu1 %v10834_v34  ;;  %v10924_v34 = vld [vmem:[%s12661_s0 + $0x304] ss:$16 sps:$4 sm:$0xff]  }
 0x274   : > { %2600 = vmatpush1.bf16.msra.mxu0 %v10829_v35  ;;  %v10919_v35 = vld [vmem:[%s12661_s0 + $0x100] ss:$16 sps:$4 sm:$0xff]  }
 0x275   : > { %2641 = vmatpush1.bf16.msra.mxu1 %v10832_v36  ;;  %2601 = vmatprep.subr.bf16.mxu0 %v10837_v37  ;;  %v10922_v36 = vld [vmem:[%s12661_s0 + $0x300] ss:$16 sps:$4 sm:$0xff]   ;;  %v10927_v37 = vld [vmem:[%s12661_s0 + $0x124] ss:$16 sps:$4 sm:$0xff]  }
 0x276   : > { %2642 = vmatprep.subr.bf16.mxu1 %v10840_v38  ;;  %v10930_v38 = vld [vmem:[%s12661_s0 + $0x324] ss:$16 sps:$4 sm:$0xff]  }
 0x278   : > { %2602 = vmatpush1.bf16.msra.mxu0 %v10835_v43  ;;  %v10925_v43 = vld [vmem:[%s12661_s0 + $0x120] ss:$16 sps:$4 sm:$0xff]  }
 0x279   : > { %2643 = vmatpush1.bf16.msra.mxu1 %v10838_v44  ;;  %2603 = vmatprep.subr.bf16.mxu0 %v10843_v8  ;;  %v10928_v44 = vld [vmem:[%s12661_s0 + $0x320] ss:$16 sps:$4 sm:$0xff]   ;;  %v10933_v8 = vld [vmem:[%s12661_s0 + $0x144] ss:$16 sps:$4 sm:$0xff]  }
 0x27a   : > { %2644 = vmatprep.subr.bf16.mxu1 %v10846_v39  ;;  %v10936_v39 = vld [vmem:[%s12661_s0 + $0x344] ss:$16 sps:$4 sm:$0xff]  }
 0x27c   : > { %2604 = vmatpush1.bf16.msra.mxu0 %v10841_v45  ;;  %v10931_v45 = vld [vmem:[%s12661_s0 + $0x140] ss:$16 sps:$4 sm:$0xff]  }
 0x27d   : > { %2645 = vmatpush1.bf16.msra.mxu1 %v10844_v46  ;;  %2605 = vmatprep.subr.bf16.mxu0 %v10849_v40  ;;  %v10934_v46 = vld [vmem:[%s12661_s0 + $0x340] ss:$16 sps:$4 sm:$0xff]   ;;  %v10939_v40 = vld [vmem:[%s12661_s0 + $0x164] ss:$16 sps:$4 sm:$0xff]  }
 0x27e   : > { %2646 = vmatprep.subr.bf16.mxu1 %v10852_v41  ;;  %v10942_v41 = vld [vmem:[%s12661_s0 + $0x364] ss:$16 sps:$4 sm:$0xff]  }
 0x280   : > { %2606 = vmatpush1.bf16.msra.mxu0 %v10847_v47  ;;  %v10937_v47 = vld [vmem:[%s12661_s0 + $0x160] ss:$16 sps:$4 sm:$0xff]  }
 0x281   : > { %2647 = vmatpush1.bf16.msra.mxu1 %v10850_v9  ;;  %2607 = vmatprep.subr.bf16.mxu0 %v10855_v42  ;;  %v10940_v9 = vld [vmem:[%s12661_s0 + $0x360] ss:$16 sps:$4 sm:$0xff]   ;;  %v10945_v42 = vld [vmem:[%s12661_s0 + $0x184] ss:$16 sps:$4 sm:$0xff]  }
 0x282   : > { %2648 = vmatprep.subr.bf16.mxu1 %v10858_v48  ;;  %v10948_v48 = vld [vmem:[%s12661_s0 + $0x384] ss:$16 sps:$4 sm:$0xff]  }
 0x284   : > { %2608 = vmatpush1.bf16.msra.mxu0 %v10853_v49  ;;  %v10943_v49 = vld [vmem:[%s12661_s0 + $0x180] ss:$16 sps:$4 sm:$0xff]  }
 0x285   : > { %2649 = vmatpush1.bf16.msra.mxu1 %v10856_v50  ;;  %2609 = vmatprep.subr.bf16.mxu0 %v10861_v51  ;;  %v10946_v50 = vld [vmem:[%s12661_s0 + $0x380] ss:$16 sps:$4 sm:$0xff]   ;;  %v10951_v51 = vld [vmem:[%s12661_s0 + $0x1a4] ss:$16 sps:$4 sm:$0xff]  }
 0x286   : > { %2650 = vmatprep.subr.bf16.mxu1 %v10864_v52  ;;  %v10954_v52 = vld [vmem:[%s12661_s0 + $0x3a4] ss:$16 sps:$4 sm:$0xff]  }
 0x288   : > { %2610 = vmatpush1.bf16.msra.mxu0 %v10859_v53  ;;  %v10949_v53 = vld [vmem:[%s12661_s0 + $0x1a0] ss:$16 sps:$4 sm:$0xff]  }
 0x289   : > { %2651 = vmatpush1.bf16.msra.mxu1 %v10862_v54  ;;  %2611 = vmatprep.subr.bf16.mxu0 %v10867_v55  ;;  %v10952_v54 = vld [vmem:[%s12661_s0 + $0x3a0] ss:$16 sps:$4 sm:$0xff]   ;;  %v10957_v55 = vld [vmem:[%s12661_s0 + $0x1c4] ss:$16 sps:$4 sm:$0xff]  }
 0x28a   : > { %2652 = vmatprep.subr.bf16.mxu1 %v10870_v56  ;;  %v10960_v56 = vld [vmem:[%s12661_s0 + $0x3c4] ss:$16 sps:$4 sm:$0xff]  }
 0x28c   : > { %2612 = vmatpush1.bf16.msra.mxu0 %v10865_v57  ;;  %v10955_v57 = vld [vmem:[%s12661_s0 + $0x1c0] ss:$16 sps:$4 sm:$0xff]  }
 0x28d   : > { %2653 = vmatpush1.bf16.msra.mxu1 %v10868_v58  ;;  %3303 = vmatprep.subr.bf16.mxu0 %v10873_v61  ;;  %v10958_v58 = vld [vmem:[%s12661_s0 + $0x3c0] ss:$16 sps:$4 sm:$0xff]   ;;  %v10963_v61 = vld [vmem:[%s12661_s0 + $0x1e4] ss:$16 sps:$4 sm:$0xff]  }
 0x28e   : > { %3344 = vmatprep.subr.bf16.mxu1 %v10876_v62  ;;  %v10966_v62 = vld [vmem:[%s12661_s0 + $0x3e4] ss:$16 sps:$4 sm:$0xff]  }
 0x28f   : > { %2614 = vmatmul.mubr.bf16.vlgmr.msra.gmra.mrb[4].mxu0 %v12815_v59  ;;  %v10883_v59 = vld [vmem:[%s12661_s0 + $0x40] ss:$16 sps:$4 sm:$0xff]  }
 0x290   : > { %2655 = vmatmul.mubr.bf16.vlgmr.msra.gmra.mrb[4].mxu1 %v12817_v60  ;;  %3304 = vmatpush1.bf16.msra.mxu0 %v10871_v63  ;;  %v10886_v60 = vld [vmem:[%s12661_s0 + $0x240] ss:$16 sps:$4 sm:$0xff]  }
 0x291   : > { %3345 = vmatpush1.bf16.msra.mxu1 %v10874_v0  ;;  %3305 = vmatprep.subr.bf16.mxu0 %v10879_v1  ;;  %v10961_v63 = vld [vmem:[%s12661_s0 + $0x1e0] ss:$16 sps:$4 sm:$0xff]  }
 0x292   : > { %3346 = vmatprep.subr.bf16.mxu1 %v10882_v2  ;;  %3335 = vmatprep.mubr.bf16.mxu0 %v12890_v5  ;;  %v10964_v0 = vld [vmem:[%s12661_s0 + $0x3e0] ss:$16 sps:$4 sm:$0xff]  }
 0x293   : > { %3376 = vmatprep.mubr.bf16.mxu1 %v12892_v6  ;;  %v1586_v1 = vld [vmem:[#allocation2] sm:$0xff]  ;;  %v1588_v2 = vld [vmem:[#allocation2 + $0x10] sm:$0xff] }
 0x294   : > { %3306 = vmatpush1.bf16.msra.mxu0 %v10877_v7  ;;  %v12958_v7 = vpack.c.bf16 %v1586_v1, %v1586_v1  ;;  %v11059_v1 = vld [vmem:[%s12661_s0 + $0x1ec] ss:$16 sps:$4 sm:$0xff]  }
 0x295   : > { %3347 = vmatpush1.bf16.msra.mxu1 %v10880_v12  ;;  %3307 = vmatprep.subr.bf16.mxu0 %v10885_v16  ;;  %v12960_v12 = vpack.c.bf16 %v1588_v2, %v1588_v2  ;;  %v10967_v16 = vld [vmem:[%s12661_s0 + $0x8] ss:$16 sps:$4 sm:$0xff]   ;;  %v11062_v2 = vld [vmem:[%s12661_s0 + $0x3ec] ss:$16 sps:$4 sm:$0xff]  }
 0x296   : > { %3348 = vmatprep.subr.bf16.mxu1 %v10888_v17  ;;  %v10970_v17 = vld [vmem:[%s12661_s0 + $0x208] ss:$16 sps:$4 sm:$0xff]  }
 0x298   : > { %3308 = vmatpush1.bf16.msra.mxu0 %v10883_v59  ;;  %v10975_v59 = vld [vmem:[%s12661_s0 + $0x2c] ss:$16 sps:$4 sm:$0xff]  }
 0x299   : > { %3349 = vmatpush1.bf16.msra.mxu1 %v10886_v60  ;;  %3309 = vmatprep.subr.bf16.mxu0 %v10891_v11  ;;  %v10978_v60 = vld [vmem:[%s12661_s0 + $0x22c] ss:$16 sps:$4 sm:$0xff]   ;;  %v10973_v11 = vld [vmem:[%s12661_s0 + $0x28] ss:$16 sps:$4 sm:$0xff]  }
 0x29a   : > { %3350 = vmatprep.subr.bf16.mxu1 %v10894_v18  ;;  %v10976_v18 = vld [vmem:[%s12661_s0 + $0x228] ss:$16 sps:$4 sm:$0xff]  }
 0x29c   : > { %3310 = vmatpush1.bf16.msra.mxu0 %v10889_v19  ;;  %v10981_v19 = vld [vmem:[%s12661_s0 + $0x4c] ss:$16 sps:$4 sm:$0xff]  }
 0x29d   : > { %3351 = vmatpush1.bf16.msra.mxu1 %v10892_v20  ;;  %3311 = vmatprep.subr.bf16.mxu0 %v10897_v21  ;;  %v10984_v20 = vld [vmem:[%s12661_s0 + $0x24c] ss:$16 sps:$4 sm:$0xff]   ;;  %v10979_v21 = vld [vmem:[%s12661_s0 + $0x48] ss:$16 sps:$4 sm:$0xff]  }
 0x29e   : > { %3352 = vmatprep.subr.bf16.mxu1 %v10900_v10  ;;  %v10982_v10 = vld [vmem:[%s12661_s0 + $0x248] ss:$16 sps:$4 sm:$0xff]  }
 0x2a0   : > { %3312 = vmatpush1.bf16.msra.mxu0 %v10895_v22  ;;  %v10987_v22 = vld [vmem:[%s12661_s0 + $0x6c] ss:$16 sps:$4 sm:$0xff]  }
 0x2a1   : > { %3353 = vmatpush1.bf16.msra.mxu1 %v10898_v23  ;;  %3313 = vmatprep.subr.bf16.mxu0 %v10903_v13  ;;  %v10990_v23 = vld [vmem:[%s12661_s0 + $0x26c] ss:$16 sps:$4 sm:$0xff]   ;;  %v10985_v13 = vld [vmem:[%s12661_s0 + $0x68] ss:$16 sps:$4 sm:$0xff]  }
 0x2a2   : > { %3354 = vmatprep.subr.bf16.mxu1 %v10906_v14  ;;  %v10988_v14 = vld [vmem:[%s12661_s0 + $0x268] ss:$16 sps:$4 sm:$0xff]  }
 0x2a4   : > { %3314 = vmatpush1.bf16.msra.mxu0 %v10901_v24  ;;  %v10991_v24 = vld [vmem:[%s12661_s0 + $0x88] ss:$16 sps:$4 sm:$0xff]  }
 0x2a5   : > { %3355 = vmatpush1.bf16.msra.mxu1 %v10904_v15  ;;  %3315 = vmatprep.subr.bf16.mxu0 %v10909_v25  ;;  %v10994_v15 = vld [vmem:[%s12661_s0 + $0x288] ss:$16 sps:$4 sm:$0xff]   ;;  %v10999_v25 = vld [vmem:[%s12661_s0 + $0xac] ss:$16 sps:$4 sm:$0xff]  }
 0x2a6   : > { %3356 = vmatprep.subr.bf16.mxu1 %v10912_v26  ;;  %v11002_v26 = vld [vmem:[%s12661_s0 + $0x2ac] ss:$16 sps:$4 sm:$0xff]  }
 0x2a8   : > { %3316 = vmatpush1.bf16.msra.mxu0 %v10907_v27  ;;  %v10997_v27 = vld [vmem:[%s12661_s0 + $0xa8] ss:$16 sps:$4 sm:$0xff]  }
 0x2a9   : > { %3357 = vmatpush1.bf16.msra.mxu1 %v10910_v28  ;;  %3317 = vmatprep.subr.bf16.mxu0 %v10915_v29  ;;  %v11000_v28 = vld [vmem:[%s12661_s0 + $0x2a8] ss:$16 sps:$4 sm:$0xff]   ;;  %v11005_v29 = vld [vmem:[%s12661_s0 + $0xcc] ss:$16 sps:$4 sm:$0xff]  }
 0x2aa   : > { %3358 = vmatprep.subr.bf16.mxu1 %v10918_v30  ;;  %v11008_v30 = vld [vmem:[%s12661_s0 + $0x2cc] ss:$16 sps:$4 sm:$0xff]  }
 0x2ac   : > { %3318 = vmatpush1.bf16.msra.mxu0 %v10913_v31  ;;  %v11003_v31 = vld [vmem:[%s12661_s0 + $0xc8] ss:$16 sps:$4 sm:$0xff]  }
 0x2ad   : > { %3359 = vmatpush1.bf16.msra.mxu1 %v10916_v32  ;;  %3319 = vmatprep.subr.bf16.mxu0 %v10921_v33  ;;  %v11006_v32 = vld [vmem:[%s12661_s0 + $0x2c8] ss:$16 sps:$4 sm:$0xff]   ;;  %v11011_v33 = vld [vmem:[%s12661_s0 + $0xec] ss:$16 sps:$4 sm:$0xff]  }
 0x2ae   : > { %3360 = vmatprep.subr.bf16.mxu1 %v10924_v34  ;;  %v11014_v34 = vld [vmem:[%s12661_s0 + $0x2ec] ss:$16 sps:$4 sm:$0xff]  }
 0x2b0   : > { %3320 = vmatpush1.bf16.msra.mxu0 %v10919_v35  ;;  %v11009_v35 = vld [vmem:[%s12661_s0 + $0xe8] ss:$16 sps:$4 sm:$0xff]  }
 0x2b1   : > { %3361 = vmatpush1.bf16.msra.mxu1 %v10922_v36  ;;  %3321 = vmatprep.subr.bf16.mxu0 %v10927_v37  ;;  %v11012_v36 = vld [vmem:[%s12661_s0 + $0x2e8] ss:$16 sps:$4 sm:$0xff]   ;;  %v11017_v37 = vld [vmem:[%s12661_s0 + $0x10c] ss:$16 sps:$4 sm:$0xff]  }
 0x2b2   : > { %3362 = vmatprep.subr.bf16.mxu1 %v10930_v38  ;;  %v11020_v38 = vld [vmem:[%s12661_s0 + $0x30c] ss:$16 sps:$4 sm:$0xff]  }
 0x2b4   : > { %3322 = vmatpush1.bf16.msra.mxu0 %v10925_v43  ;;  %v11015_v43 = vld [vmem:[%s12661_s0 + $0x108] ss:$16 sps:$4 sm:$0xff]  }
 0x2b5   : > { %3363 = vmatpush1.bf16.msra.mxu1 %v10928_v44  ;;  %3323 = vmatprep.subr.bf16.mxu0 %v10933_v8  ;;  %v11018_v44 = vld [vmem:[%s12661_s0 + $0x308] ss:$16 sps:$4 sm:$0xff]   ;;  %v11023_v8 = vld [vmem:[%s12661_s0 + $0x12c] ss:$16 sps:$4 sm:$0xff]  }
 0x2b6   : > { %3364 = vmatprep.subr.bf16.mxu1 %v10936_v39  ;;  %v11026_v39 = vld [vmem:[%s12661_s0 + $0x32c] ss:$16 sps:$4 sm:$0xff]  }
 0x2b8   : > { %3324 = vmatpush1.bf16.msra.mxu0 %v10931_v45  ;;  %v11021_v45 = vld [vmem:[%s12661_s0 + $0x128] ss:$16 sps:$4 sm:$0xff]  }
 0x2b9   : > { %3365 = vmatpush1.bf16.msra.mxu1 %v10934_v46  ;;  %3325 = vmatprep.subr.bf16.mxu0 %v10939_v40  ;;  %v11024_v46 = vld [vmem:[%s12661_s0 + $0x328] ss:$16 sps:$4 sm:$0xff]   ;;  %v11029_v40 = vld [vmem:[%s12661_s0 + $0x14c] ss:$16 sps:$4 sm:$0xff]  }
 0x2ba   : > { %3366 = vmatprep.subr.bf16.mxu1 %v10942_v41  ;;  %v11032_v41 = vld [vmem:[%s12661_s0 + $0x34c] ss:$16 sps:$4 sm:$0xff]  }
 0x2bc   : > { %3326 = vmatpush1.bf16.msra.mxu0 %v10937_v47  ;;  %v11027_v47 = vld [vmem:[%s12661_s0 + $0x148] ss:$16 sps:$4 sm:$0xff]  }
 0x2bd   : > { %3367 = vmatpush1.bf16.msra.mxu1 %v10940_v9  ;;  %3327 = vmatprep.subr.bf16.mxu0 %v10945_v42  ;;  %v11030_v9 = vld [vmem:[%s12661_s0 + $0x348] ss:$16 sps:$4 sm:$0xff]   ;;  %v11035_v42 = vld [vmem:[%s12661_s0 + $0x16c] ss:$16 sps:$4 sm:$0xff]  }
 0x2be   : > { %3368 = vmatprep.subr.bf16.mxu1 %v10948_v48  ;;  %v11038_v48 = vld [vmem:[%s12661_s0 + $0x36c] ss:$16 sps:$4 sm:$0xff]  }
 0x2c0   : > { %3328 = vmatpush1.bf16.msra.mxu0 %v10943_v49  ;;  %v11033_v49 = vld [vmem:[%s12661_s0 + $0x168] ss:$16 sps:$4 sm:$0xff]  }
 0x2c1   : > { %3369 = vmatpush1.bf16.msra.mxu1 %v10946_v50  ;;  %3329 = vmatprep.subr.bf16.mxu0 %v10951_v51  ;;  %v11036_v50 = vld [vmem:[%s12661_s0 + $0x368] ss:$16 sps:$4 sm:$0xff]   ;;  %v11041_v51 = vld [vmem:[%s12661_s0 + $0x18c] ss:$16 sps:$4 sm:$0xff]  }
 0x2c2   : > { %3370 = vmatprep.subr.bf16.mxu1 %v10954_v52  ;;  %v11044_v52 = vld [vmem:[%s12661_s0 + $0x38c] ss:$16 sps:$4 sm:$0xff]  }
 0x2c4   : > { %3330 = vmatpush1.bf16.msra.mxu0 %v10949_v53  ;;  %v11039_v53 = vld [vmem:[%s12661_s0 + $0x188] ss:$16 sps:$4 sm:$0xff]  }
 0x2c5   : > { %3371 = vmatpush1.bf16.msra.mxu1 %v10952_v54  ;;  %3331 = vmatprep.subr.bf16.mxu0 %v10957_v55  ;;  %v11042_v54 = vld [vmem:[%s12661_s0 + $0x388] ss:$16 sps:$4 sm:$0xff]   ;;  %v11047_v55 = vld [vmem:[%s12661_s0 + $0x1ac] ss:$16 sps:$4 sm:$0xff]  }
 0x2c6   : > { %3372 = vmatprep.subr.bf16.mxu1 %v10960_v56  ;;  %v11050_v56 = vld [vmem:[%s12661_s0 + $0x3ac] ss:$16 sps:$4 sm:$0xff]  }
 0x2c8   : > { %3332 = vmatpush1.bf16.msra.mxu0 %v10955_v57  ;;  %v11045_v57 = vld [vmem:[%s12661_s0 + $0x1a8] ss:$16 sps:$4 sm:$0xff]  }
 0x2c9   : > { %3373 = vmatpush1.bf16.msra.mxu1 %v10958_v58  ;;  %3333 = vmatprep.subr.bf16.mxu0 %v10963_v61  ;;  %v11048_v58 = vld [vmem:[%s12661_s0 + $0x3a8] ss:$16 sps:$4 sm:$0xff]   ;;  %v11053_v61 = vld [vmem:[%s12661_s0 + $0x1cc] ss:$16 sps:$4 sm:$0xff]  }
 0x2ca   : > { %3374 = vmatprep.subr.bf16.mxu1 %v10966_v62  ;;  %v11056_v62 = vld [vmem:[%s12661_s0 + $0x3cc] ss:$16 sps:$4 sm:$0xff]  }
 0x2cc   : > { %3334 = vmatpush1.bf16.msra.mxu0 %v10961_v63  ;;  %v11051_v63 = vld [vmem:[%s12661_s0 + $0x1c8] ss:$16 sps:$4 sm:$0xff]  }
 0x2cd   : > { %3375 = vmatpush1.bf16.msra.mxu1 %v10964_v0  ;;  %3385 = vmatprep.subr.bf16.mxu0 %v10969_v3  ;;  %v11054_v0 = vld [vmem:[%s12661_s0 + $0x3c8] ss:$16 sps:$4 sm:$0xff]  }
 0x2ce   : > { %3426 = vmatprep.subr.bf16.mxu1 %v10972_v4  ;;  %v11057_v3 = vld [vmem:[%s12661_s0 + $0x1e8] ss:$16 sps:$4 sm:$0xff]  }
 0x2cf   : > { %3336 = vmatmul.mubr.bf16.vlgmr.msra.gmra.mrb[8].mxu0 %v12958_v7  ;;  %v11060_v4 = vld [vmem:[%s12661_s0 + $0x3e8] ss:$16 sps:$4 sm:$0xff]  }
 0x2d0   : > { %3377 = vmatmul.mubr.bf16.vlgmr.msra.gmra.mrb[8].mxu1 %v12960_v12  ;;  %3386 = vmatpush1.bf16.msra.mxu0 %v10967_v16  ;;  %v11065_v16 = vld [vmem:[%s12661_s0 + $0x804] ss:$16 sps:$4 sm:$0xff]  }
 0x2d1   : > { %3427 = vmatpush1.bf16.msra.mxu1 %v10970_v17  ;;  %3387 = vmatprep.subr.bf16.mxu0 %v10975_v59  ;;  %v11068_v17 = vld [vmem:[%s12661_s0 + $0xa04] ss:$16 sps:$4 sm:$0xff]   ;;  %v11063_v59 = vld [vmem:[%s12661_s0 + $0x800] ss:$16 sps:$4 sm:$0xff]  }
 0x2d2   : > { %3428 = vmatprep.subr.bf16.mxu1 %v10978_v60  ;;  %3417 = vmatprep.mubr.bf16.mxu0 %v12890_v5  ;;  %v10993_v5 = vld [vmem:[%s12661_s0 + $0x8c] ss:$16 sps:$4 sm:$0xff]   ;;  %v11066_v60 = vld [vmem:[%s12661_s0 + $0xa00] ss:$16 sps:$4 sm:$0xff]  }
 0x2d3   : > { %3458 = vmatprep.mubr.bf16.mxu1 %v12892_v6  ;;  %v10996_v6 = vld [vmem:[%s12661_s0 + $0x28c] ss:$16 sps:$4 sm:$0xff]  }
 0x2d4   : > { %3388 = vmatpush1.bf16.msra.mxu0 %v10973_v11  ;;  %v3469_v11 = vld [vmem:[#allocation2 + $0x48] sm:$0xff] }
 0x2d5   : > { %3429 = vmatpush1.bf16.msra.mxu1 %v10976_v18  ;;  %3389 = vmatprep.subr.bf16.mxu0 %v10981_v19  ;;  %v3471_v18 = vld [vmem:[#allocation2 + $0x58] sm:$0xff]  ;;  %v11071_v19 = vld [vmem:[%s12661_s0 + $0x824] ss:$16 sps:$4 sm:$0xff]  }
 0x2d6   : > { %3430 = vmatprep.subr.bf16.mxu1 %v10984_v20  ;;  %v11074_v20 = vld [vmem:[%s12661_s0 + $0xa24] ss:$16 sps:$4 sm:$0xff]  }
 0x2d8   : > { %3390 = vmatpush1.bf16.msra.mxu0 %v10979_v21  ;;  %v13034_v21 = vpack.c.bf16 %v3469_v11, %v3469_v11  ;;  %v11141_v11 = vld [vmem:[%s12661_s0 + $0x9a0] ss:$16 sps:$4 sm:$0xff]  }
 0x2d9   : > { %3431 = vmatpush1.bf16.msra.mxu1 %v10982_v10  ;;  %3391 = vmatprep.subr.bf16.mxu0 %v10987_v22  ;;  %v13036_v10 = vpack.c.bf16 %v3471_v18, %v3471_v18  ;;  %v11069_v22 = vld [vmem:[%s12661_s0 + $0x820] ss:$16 sps:$4 sm:$0xff]  }
 0x2da   : > { %3432 = vmatprep.subr.bf16.mxu1 %v10990_v23  ;;  %v11072_v23 = vld [vmem:[%s12661_s0 + $0xa20] ss:$16 sps:$4 sm:$0xff]  }
 0x2db   : > { %v11144_v18 = vld [vmem:[%s12661_s0 + $0xba0] ss:$16 sps:$4 sm:$0xff]  }
 0x2dc   : > { %3392 = vmatpush1.bf16.msra.mxu0 %v10985_v13  ;;  %v11077_v13 = vld [vmem:[%s12661_s0 + $0x844] ss:$16 sps:$4 sm:$0xff]  }
 0x2dd   : > { %3433 = vmatpush1.bf16.msra.mxu1 %v10988_v14  ;;  %3393 = vmatprep.subr.bf16.mxu0 %v10993_v5  ;;  %v11080_v14 = vld [vmem:[%s12661_s0 + $0xa44] ss:$16 sps:$4 sm:$0xff]   ;;  %v11078_v5 = vld [vmem:[%s12661_s0 + $0xa40] ss:$16 sps:$4 sm:$0xff]  }
 0x2de   : > { %3434 = vmatprep.subr.bf16.mxu1 %v10996_v6  ;;  %v11086_v6 = vld [vmem:[%s12661_s0 + $0xa64] ss:$16 sps:$4 sm:$0xff]  }
 0x2e0   : > { %3394 = vmatpush1.bf16.msra.mxu0 %v10991_v24  ;;  %v11081_v24 = vld [vmem:[%s12661_s0 + $0x860] ss:$16 sps:$4 sm:$0xff]  }
 0x2e1   : > { %3435 = vmatpush1.bf16.msra.mxu1 %v10994_v15  ;;  %3395 = vmatprep.subr.bf16.mxu0 %v10999_v25  ;;  %v11084_v15 = vld [vmem:[%s12661_s0 + $0xa60] ss:$16 sps:$4 sm:$0xff]   ;;  %v11089_v25 = vld [vmem:[%s12661_s0 + $0x884] ss:$16 sps:$4 sm:$0xff]  }
 0x2e2   : > { %3436 = vmatprep.subr.bf16.mxu1 %v11002_v26  ;;  %v11092_v26 = vld [vmem:[%s12661_s0 + $0xa84] ss:$16 sps:$4 sm:$0xff]  }
 0x2e4   : > { %3396 = vmatpush1.bf16.msra.mxu0 %v10997_v27  ;;  %v11087_v27 = vld [vmem:[%s12661_s0 + $0x880] ss:$16 sps:$4 sm:$0xff]  }
 0x2e5   : > { %3437 = vmatpush1.bf16.msra.mxu1 %v11000_v28  ;;  %3397 = vmatprep.subr.bf16.mxu0 %v11005_v29  ;;  %v11090_v28 = vld [vmem:[%s12661_s0 + $0xa80] ss:$16 sps:$4 sm:$0xff]   ;;  %v11095_v29 = vld [vmem:[%s12661_s0 + $0x8a4] ss:$16 sps:$4 sm:$0xff]  }
 0x2e6   : > { %3438 = vmatprep.subr.bf16.mxu1 %v11008_v30  ;;  %v11098_v30 = vld [vmem:[%s12661_s0 + $0xaa4] ss:$16 sps:$4 sm:$0xff]  }
 0x2e8   : > { %3398 = vmatpush1.bf16.msra.mxu0 %v11003_v31  ;;  %v11093_v31 = vld [vmem:[%s12661_s0 + $0x8a0] ss:$16 sps:$4 sm:$0xff]  }
 0x2e9   : > { %3439 = vmatpush1.bf16.msra.mxu1 %v11006_v32  ;;  %3399 = vmatprep.subr.bf16.mxu0 %v11011_v33  ;;  %v11096_v32 = vld [vmem:[%s12661_s0 + $0xaa0] ss:$16 sps:$4 sm:$0xff]   ;;  %v11101_v33 = vld [vmem:[%s12661_s0 + $0x8c4] ss:$16 sps:$4 sm:$0xff]  }
 0x2ea   : > { %3440 = vmatprep.subr.bf16.mxu1 %v11014_v34  ;;  %v11104_v34 = vld [vmem:[%s12661_s0 + $0xac4] ss:$16 sps:$4 sm:$0xff]  }
 0x2ec   : > { %3400 = vmatpush1.bf16.msra.mxu0 %v11009_v35 }
 0x2ed   : > { %3441 = vmatpush1.bf16.msra.mxu1 %v11012_v36  ;;  %3401 = vmatprep.subr.bf16.mxu0 %v11017_v37  ;;  %v11099_v37 = vld [vmem:[%s12661_s0 + $0x8c0] ss:$16 sps:$4 sm:$0xff]  }
 0x2ee   : > { %3442 = vmatprep.subr.bf16.mxu1 %v11020_v38  ;;  %v11102_v38 = vld [vmem:[%s12661_s0 + $0xac0] ss:$16 sps:$4 sm:$0xff]  }
 0x2f0   : > { %3402 = vmatpush1.bf16.msra.mxu0 %v11015_v43 }
 0x2f1   : > { %3443 = vmatpush1.bf16.msra.mxu1 %v11018_v44  ;;  %3403 = vmatprep.subr.bf16.mxu0 %v11023_v8 }
 0x2f2   : > { %3444 = vmatprep.subr.bf16.mxu1 %v11026_v39 }
 0x2f4   : > { %3404 = vmatpush1.bf16.msra.mxu0 %v11021_v45 }
 0x2f5   : > { %3445 = vmatpush1.bf16.msra.mxu1 %v11024_v46  ;;  %3405 = vmatprep.subr.bf16.mxu0 %v11029_v40 }
 0x2f6   : > { %3446 = vmatprep.subr.bf16.mxu1 %v11032_v41 }
 0x2f8   : > { %3406 = vmatpush1.bf16.msra.mxu0 %v11027_v47  ;;  %v11107_v47 = vld [vmem:[%s12661_s0 + $0x8e4] ss:$16 sps:$4 sm:$0xff]  }
 0x2f9   : > { %3447 = vmatpush1.bf16.msra.mxu1 %v11030_v9  ;;  %3407 = vmatprep.subr.bf16.mxu0 %v11035_v42  ;;  %v11110_v9 = vld [vmem:[%s12661_s0 + $0xae4] ss:$16 sps:$4 sm:$0xff]   ;;  %v11105_v42 = vld [vmem:[%s12661_s0 + $0x8e0] ss:$16 sps:$4 sm:$0xff]  }
 0x2fa   : > { %3448 = vmatprep.subr.bf16.mxu1 %v11038_v48  ;;  %v11108_v48 = vld [vmem:[%s12661_s0 + $0xae0] ss:$16 sps:$4 sm:$0xff]  }
 0x2fc   : > { %3408 = vmatpush1.bf16.msra.mxu0 %v11033_v49  ;;  %v11113_v49 = vld [vmem:[%s12661_s0 + $0x904] ss:$16 sps:$4 sm:$0xff]  }
 0x2fd   : > { %3449 = vmatpush1.bf16.msra.mxu1 %v11036_v50  ;;  %3409 = vmatprep.subr.bf16.mxu0 %v11041_v51  ;;  %v11116_v50 = vld [vmem:[%s12661_s0 + $0xb04] ss:$16 sps:$4 sm:$0xff]   ;;  %v11111_v51 = vld [vmem:[%s12661_s0 + $0x900] ss:$16 sps:$4 sm:$0xff]  }
 0x2fe   : > { %3450 = vmatprep.subr.bf16.mxu1 %v11044_v52  ;;  %v11114_v52 = vld [vmem:[%s12661_s0 + $0xb00] ss:$16 sps:$4 sm:$0xff]  }
 0x300   : > { %3410 = vmatpush1.bf16.msra.mxu0 %v11039_v53  ;;  %v11119_v53 = vld [vmem:[%s12661_s0 + $0x924] ss:$16 sps:$4 sm:$0xff]  }
 0x301   : > { %3451 = vmatpush1.bf16.msra.mxu1 %v11042_v54  ;;  %3411 = vmatprep.subr.bf16.mxu0 %v11047_v55  ;;  %v11122_v54 = vld [vmem:[%s12661_s0 + $0xb24] ss:$16 sps:$4 sm:$0xff]   ;;  %v11117_v55 = vld [vmem:[%s12661_s0 + $0x920] ss:$16 sps:$4 sm:$0xff]  }
 0x302   : > { %3452 = vmatprep.subr.bf16.mxu1 %v11050_v56  ;;  %v11120_v56 = vld [vmem:[%s12661_s0 + $0xb20] ss:$16 sps:$4 sm:$0xff]  }
 0x304   : > { %3412 = vmatpush1.bf16.msra.mxu0 %v11045_v57  ;;  %v11125_v57 = vld [vmem:[%s12661_s0 + $0x944] ss:$16 sps:$4 sm:$0xff]  }
 0x305   : > { %3453 = vmatpush1.bf16.msra.mxu1 %v11048_v58  ;;  %3413 = vmatprep.subr.bf16.mxu0 %v11053_v61  ;;  %v11128_v58 = vld [vmem:[%s12661_s0 + $0xb44] ss:$16 sps:$4 sm:$0xff]   ;;  %v11123_v61 = vld [vmem:[%s12661_s0 + $0x940] ss:$16 sps:$4 sm:$0xff]  }
 0x306   : > { %3454 = vmatprep.subr.bf16.mxu1 %v11056_v62  ;;  %v11126_v62 = vld [vmem:[%s12661_s0 + $0xb40] ss:$16 sps:$4 sm:$0xff]  }
 0x308   : > { %3414 = vmatpush1.bf16.msra.mxu0 %v11051_v63  ;;  %v11131_v63 = vld [vmem:[%s12661_s0 + $0x964] ss:$16 sps:$4 sm:$0xff]  }
 0x309   : > { %3455 = vmatpush1.bf16.msra.mxu1 %v11054_v0  ;;  %3415 = vmatprep.subr.bf16.mxu0 %v11059_v1  ;;  %v11134_v0 = vld [vmem:[%s12661_s0 + $0xb64] ss:$16 sps:$4 sm:$0xff]   ;;  %v11129_v1 = vld [vmem:[%s12661_s0 + $0x960] ss:$16 sps:$4 sm:$0xff]  }
 0x30a   : > { %3456 = vmatprep.subr.bf16.mxu1 %v11062_v2  ;;  %v11132_v2 = vld [vmem:[%s12661_s0 + $0xb60] ss:$16 sps:$4 sm:$0xff]  }
 0x30c   : > { %3416 = vmatpush1.bf16.msra.mxu0 %v11057_v3  ;;  %v11137_v3 = vld [vmem:[%s12661_s0 + $0x984] ss:$16 sps:$4 sm:$0xff]  }
 0x30d   : > { %3457 = vmatpush1.bf16.msra.mxu1 %v11060_v4  ;;  %4244 = vmatprep.subr.bf16.mxu0 %v11065_v16  ;;  %v11140_v4 = vld [vmem:[%s12661_s0 + $0xb84] ss:$16 sps:$4 sm:$0xff]   ;;  %v11135_v16 = vld [vmem:[%s12661_s0 + $0x980] ss:$16 sps:$4 sm:$0xff]  }
 0x30e   : > { %4285 = vmatprep.subr.bf16.mxu1 %v11068_v17  ;;  %v11138_v17 = vld [vmem:[%s12661_s0 + $0xb80] ss:$16 sps:$4 sm:$0xff]  }
 0x30f   : > { %3418 = vmatmul.mubr.bf16.vlgmr.msra.gmra.mrb[12].mxu0 %v12958_v7  ;;  %v11075_v7 = vld [vmem:[%s12661_s0 + $0x840] ss:$16 sps:$4 sm:$0xff]  }
 0x310   : > { %3459 = vmatmul.mubr.bf16.vlgmr.msra.gmra.mrb[12].mxu1 %v12960_v12  ;;  %4245 = vmatpush1.bf16.msra.mxu0 %v11063_v59  ;;  %v11083_v12 = vld [vmem:[%s12661_s0 + $0x864] ss:$16 sps:$4 sm:$0xff]  }
 0x311   : > { %4286 = vmatpush1.bf16.msra.mxu1 %v11066_v60  ;;  %4246 = vmatprep.subr.bf16.mxu0 %v11071_v19  ;;  %v11143_v59 = vld [vmem:[%s12661_s0 + $0x9a4] ss:$16 sps:$4 sm:$0xff]  }
 0x312   : > { %4287 = vmatprep.subr.bf16.mxu1 %v11074_v20  ;;  %4276 = vmatprep.mubr.bf16.mxu0 %v13034_v21  ;;  %v11146_v60 = vld [vmem:[%s12661_s0 + $0xba4] ss:$16 sps:$4 sm:$0xff]  }
 0x313   : > { %4317 = vmatprep.mubr.bf16.mxu1 %v13036_v10  ;;  %v11149_v19 = vld [vmem:[%s12661_s0 + $0x9c4] ss:$16 sps:$4 sm:$0xff]  }
 0x314   : > { %4247 = vmatpush1.bf16.msra.mxu0 %v11069_v22  ;;  %v11152_v20 = vld [vmem:[%s12661_s0 + $0xbc4] ss:$16 sps:$4 sm:$0xff]   ;;  %v11147_v22 = vld [vmem:[%s12661_s0 + $0x9c0] ss:$16 sps:$4 sm:$0xff]  }
 0x315   : > { %4288 = vmatpush1.bf16.msra.mxu1 %v11072_v23  ;;  %4248 = vmatprep.subr.bf16.mxu0 %v11077_v13  ;;  %v11150_v23 = vld [vmem:[%s12661_s0 + $0xbc0] ss:$16 sps:$4 sm:$0xff]   ;;  %v11155_v13 = vld [vmem:[%s12661_s0 + $0x9e4] ss:$16 sps:$4 sm:$0xff]  }
 0x316   : > { %4289 = vmatprep.subr.bf16.mxu1 %v11080_v14  ;;  %v11158_v14 = vld [vmem:[%s12661_s0 + $0xbe4] ss:$16 sps:$4 sm:$0xff]  }
 0x318   : > { %4249 = vmatpush1.bf16.msra.mxu0 %v11075_v7  ;;  %v11153_v7 = vld [vmem:[%s12661_s0 + $0x9e0] ss:$16 sps:$4 sm:$0xff]  }
 0x319   : > { %4290 = vmatpush1.bf16.msra.mxu1 %v11078_v5  ;;  %4250 = vmatprep.subr.bf16.mxu0 %v11083_v12  ;;  %v11156_v5 = vld [vmem:[%s12661_s0 + $0xbe0] ss:$16 sps:$4 sm:$0xff]  }
 0x31a   : > { %4291 = vmatprep.subr.bf16.mxu1 %v11086_v6  ;;  %v3468_v12 = vld [vmem:[#allocation2 + $0x40] sm:$0xff]  ;;  %v3470_v6 = vld [vmem:[#allocation2 + $0x50] sm:$0xff] }
 0x31c   : > { %4251 = vmatpush1.bf16.msra.mxu0 %v11081_v24  ;;  %v11161_v24 = vld [vmem:[%s12661_s0 + $0x80c] ss:$16 sps:$4 sm:$0xff]  }
 0x31d   : > { %4292 = vmatpush1.bf16.msra.mxu1 %v11084_v15  ;;  %4252 = vmatprep.subr.bf16.mxu0 %v11089_v25  ;;  %v11164_v15 = vld [vmem:[%s12661_s0 + $0xa0c] ss:$16 sps:$4 sm:$0xff]   ;;  %v13106_v25 = vpack.c.bf16 %v3468_v12, %v3468_v12 }
 0x31e   : > { %4293 = vmatprep.subr.bf16.mxu1 %v11092_v26  ;;  %v13108_v26 = vpack.c.bf16 %v3470_v6, %v3470_v6  ;;  %v11233_v12 = vld [vmem:[%s12661_s0 + $0x98c] ss:$16 sps:$4 sm:$0xff]  }
 0x31f   : > { %v11236_v6 = vld [vmem:[%s12661_s0 + $0xb8c] ss:$16 sps:$4 sm:$0xff]  }
 0x320   : > { %4253 = vmatpush1.bf16.msra.mxu0 %v11087_v27  ;;  %v11159_v27 = vld [vmem:[%s12661_s0 + $0x808] ss:$16 sps:$4 sm:$0xff]  }
 0x321   : > { %4294 = vmatpush1.bf16.msra.mxu1 %v11090_v28  ;;  %4254 = vmatprep.subr.bf16.mxu0 %v11095_v29  ;;  %v11162_v28 = vld [vmem:[%s12661_s0 + $0xa08] ss:$16 sps:$4 sm:$0xff]   ;;  %v11167_v29 = vld [vmem:[%s12661_s0 + $0x82c] ss:$16 sps:$4 sm:$0xff]  }
 0x322   : > { %4295 = vmatprep.subr.bf16.mxu1 %v11098_v30  ;;  %v2533_v35 = vpop.f32.mrb[0].mxu0  ;;  %v11170_v30 = vld [vmem:[%s12661_s0 + $0xa2c] ss:$16 sps:$4 sm:$0xff]  }
 0x323   : > { %v2574_v36 = vpop.f32.mrb[0].mxu1  ;;  %v2535_v44 = vpop.f32.mrb[1].mxu0 }
 0x324   : > { %v13064_v43 = vadd.f32 %v2574_v36, %v2533_v35  ;;  %v2576_v8 = vpop.f32.mrb[1].mxu1  ;;  %v2537_v45 = vpop.f32.mrb[2].mxu0  ;;  %4255 = vmatpush1.bf16.msra.mxu0 %v11093_v31  ;;  %v11165_v31 = vld [vmem:[%s12661_s0 + $0x828] ss:$16 sps:$4 sm:$0xff]  }
 0x325   : > { %v13066_v39 = vadd.f32 %v2576_v8, %v2535_v44  ;;  %v2578_v46 = vpop.f32.mrb[2].mxu1  ;;  %4296 = vmatpush1.bf16.msra.mxu1 %v11096_v32  ;;  %v2538_v40 = vpop.f32.mrb[3].mxu0  ;;  %4256 = vmatprep.subr.bf16.mxu0 %v11101_v33  ;;  %v11168_v32 = vld [vmem:[%s12661_s0 + $0xa28] ss:$16 sps:$4 sm:$0xff]   ;;  %v11173_v33 = vld [vmem:[%s12661_s0 + $0x84c] ss:$16 sps:$4 sm:$0xff]  }
 0x326   : > { %v2579_v41 = vpop.f32.mrb[3].mxu1  ;;  %4297 = vmatprep.subr.bf16.mxu1 %v11104_v34  ;;  %v11176_v34 = vld [vmem:[%s12661_s0 + $0xa4c] ss:$16 sps:$4 sm:$0xff]   ;;  %v11171_v35 = vld [vmem:[%s12661_s0 + $0x848] ss:$16 sps:$4 sm:$0xff]  }
 0x327   : > { %v11174_v36 = vld [vmem:[%s12661_s0 + $0xa48] ss:$16 sps:$4 sm:$0xff]   ;;  %v11188_v8 = vld [vmem:[%s12661_s0 + $0xa8c] ss:$16 sps:$4 sm:$0xff]  }
 0x328   : > { %4257 = vmatpush1.bf16.msra.mxu0 %v11099_v37  ;;  %v11179_v37 = vld [vmem:[%s12661_s0 + $0x86c] ss:$16 sps:$4 sm:$0xff]   ;;  %v11177_v44 = vld [vmem:[%s12661_s0 + $0x868] ss:$16 sps:$4 sm:$0xff]  }
 0x329   : > { %4298 = vmatpush1.bf16.msra.mxu1 %v11102_v38  ;;  %4258 = vmatprep.subr.bf16.mxu0 %v11107_v47  ;;  %v11182_v38 = vld [vmem:[%s12661_s0 + $0xa6c] ss:$16 sps:$4 sm:$0xff]   ;;  %v11183_v45 = vld [vmem:[%s12661_s0 + $0x888] ss:$16 sps:$4 sm:$0xff]  }
 0x32a   : > { %4299 = vmatprep.subr.bf16.mxu1 %v11110_v9  ;;  %v11186_v46 = vld [vmem:[%s12661_s0 + $0xa88] ss:$16 sps:$4 sm:$0xff]   ;;  %v11191_v40 = vld [vmem:[%s12661_s0 + $0x8ac] ss:$16 sps:$4 sm:$0xff]  }
 0x32b   : > { %v11194_v41 = vld [vmem:[%s12661_s0 + $0xaac] ss:$16 sps:$4 sm:$0xff]   ;;  %v11189_v47 = vld [vmem:[%s12661_s0 + $0x8a8] ss:$16 sps:$4 sm:$0xff]  }
 0x32c   : > { %4259 = vmatpush1.bf16.msra.mxu0 %v11105_v42  ;;  %v11192_v9 = vld [vmem:[%s12661_s0 + $0xaa8] ss:$16 sps:$4 sm:$0xff]   ;;  %v11197_v42 = vld [vmem:[%s12661_s0 + $0x8cc] ss:$16 sps:$4 sm:$0xff]  }
 0x32d   : > { %4300 = vmatpush1.bf16.msra.mxu1 %v11108_v48  ;;  %4260 = vmatprep.subr.bf16.mxu0 %v11113_v49  ;;  %v11200_v48 = vld [vmem:[%s12661_s0 + $0xacc] ss:$16 sps:$4 sm:$0xff]  }
 0x32e   : > { %4301 = vmatprep.subr.bf16.mxu1 %v11116_v50 }
 0x330   : > { %4261 = vmatpush1.bf16.msra.mxu0 %v11111_v51 }
 0x331   : > { %4302 = vmatpush1.bf16.msra.mxu1 %v11114_v52  ;;  %4262 = vmatprep.subr.bf16.mxu0 %v11119_v53 }
 0x332   : > { %4303 = vmatprep.subr.bf16.mxu1 %v11122_v54 }
 0x334   : > { %4263 = vmatpush1.bf16.msra.mxu0 %v11117_v55 }
 0x335   : > { %4304 = vmatpush1.bf16.msra.mxu1 %v11120_v56  ;;  %4264 = vmatprep.subr.bf16.mxu0 %v11125_v57  ;;  %v11195_v57 = vld [vmem:[%s12661_s0 + $0x8c8] ss:$16 sps:$4 sm:$0xff]  }
 0x336   : > { %4305 = vmatprep.subr.bf16.mxu1 %v11128_v58  ;;  %v11198_v58 = vld [vmem:[%s12661_s0 + $0xac8] ss:$16 sps:$4 sm:$0xff]  }
 0x338   : > { %4265 = vmatpush1.bf16.msra.mxu0 %v11123_v61 }
 0x339   : > { %4306 = vmatpush1.bf16.msra.mxu1 %v11126_v62  ;;  %4266 = vmatprep.subr.bf16.mxu0 %v11131_v63  ;;  %v11203_v63 = vld [vmem:[%s12661_s0 + $0x8ec] ss:$16 sps:$4 sm:$0xff]  }
 0x33a   : > { %4307 = vmatprep.subr.bf16.mxu1 %v11134_v0  ;;  %v11206_v0 = vld [vmem:[%s12661_s0 + $0xaec] ss:$16 sps:$4 sm:$0xff]  }
 0x33c   : > { %4267 = vmatpush1.bf16.msra.mxu0 %v11129_v1  ;;  %v11201_v1 = vld [vmem:[%s12661_s0 + $0x8e8] ss:$16 sps:$4 sm:$0xff]  }
 0x33d   : > { %4308 = vmatpush1.bf16.msra.mxu1 %v11132_v2  ;;  %4268 = vmatprep.subr.bf16.mxu0 %v11137_v3  ;;  %v11204_v2 = vld [vmem:[%s12661_s0 + $0xae8] ss:$16 sps:$4 sm:$0xff]   ;;  %v11209_v3 = vld [vmem:[%s12661_s0 + $0x90c] ss:$16 sps:$4 sm:$0xff]  }
 0x33e   : > { %4309 = vmatprep.subr.bf16.mxu1 %v11140_v4  ;;  %v11212_v4 = vld [vmem:[%s12661_s0 + $0xb0c] ss:$16 sps:$4 sm:$0xff]  }
 0x340   : > { %4269 = vmatpush1.bf16.msra.mxu0 %v11135_v16  ;;  %v11207_v16 = vld [vmem:[%s12661_s0 + $0x908] ss:$16 sps:$4 sm:$0xff]  }
 0x341   : > { %4310 = vmatpush1.bf16.msra.mxu1 %v11138_v17  ;;  %4270 = vmatprep.subr.bf16.mxu0 %v11143_v59  ;;  %v11210_v17 = vld [vmem:[%s12661_s0 + $0xb08] ss:$16 sps:$4 sm:$0xff]   ;;  %v11215_v59 = vld [vmem:[%s12661_s0 + $0x92c] ss:$16 sps:$4 sm:$0xff]  }
 0x342   : > { %4311 = vmatprep.subr.bf16.mxu1 %v11146_v60  ;;  %v11218_v60 = vld [vmem:[%s12661_s0 + $0xb2c] ss:$16 sps:$4 sm:$0xff]  }
 0x344   : > { %4271 = vmatpush1.bf16.msra.mxu0 %v11141_v11  ;;  %v11213_v11 = vld [vmem:[%s12661_s0 + $0x928] ss:$16 sps:$4 sm:$0xff]  }
 0x345   : > { %4312 = vmatpush1.bf16.msra.mxu1 %v11144_v18  ;;  %4272 = vmatprep.subr.bf16.mxu0 %v11149_v19  ;;  %v11216_v18 = vld [vmem:[%s12661_s0 + $0xb28] ss:$16 sps:$4 sm:$0xff]   ;;  %v11221_v19 = vld [vmem:[%s12661_s0 + $0x94c] ss:$16 sps:$4 sm:$0xff]  }
 0x346   : > { %4313 = vmatprep.subr.bf16.mxu1 %v11152_v20  ;;  %v11224_v20 = vld [vmem:[%s12661_s0 + $0xb4c] ss:$16 sps:$4 sm:$0xff]  }
 0x348   : > { %4273 = vmatpush1.bf16.msra.mxu0 %v11147_v22  ;;  %v11219_v22 = vld [vmem:[%s12661_s0 + $0x948] ss:$16 sps:$4 sm:$0xff]  }
 0x349   : > { %4314 = vmatpush1.bf16.msra.mxu1 %v11150_v23  ;;  %4274 = vmatprep.subr.bf16.mxu0 %v11155_v13  ;;  %v11222_v23 = vld [vmem:[%s12661_s0 + $0xb48] ss:$16 sps:$4 sm:$0xff]   ;;  %v11227_v13 = vld [vmem:[%s12661_s0 + $0x96c] ss:$16 sps:$4 sm:$0xff]  }
 0x34a   : > { %4315 = vmatprep.subr.bf16.mxu1 %v11158_v14  ;;  %v11230_v14 = vld [vmem:[%s12661_s0 + $0xb6c] ss:$16 sps:$4 sm:$0xff]  }
 0x34c   : > { %4275 = vmatpush1.bf16.msra.mxu0 %v11153_v7  ;;  %v11225_v7 = vld [vmem:[%s12661_s0 + $0x968] ss:$16 sps:$4 sm:$0xff]  }
 0x34d   : > { %4316 = vmatpush1.bf16.msra.mxu1 %v11156_v5  ;;  %4326 = vmatprep.subr.bf16.mxu0 %v11161_v24  ;;  %v11228_v5 = vld [vmem:[%s12661_s0 + $0xb68] ss:$16 sps:$4 sm:$0xff]  }
 0x34e   : > { %4367 = vmatprep.subr.bf16.mxu1 %v11164_v15  ;;  %v11231_v24 = vld [vmem:[%s12661_s0 + $0x988] ss:$16 sps:$4 sm:$0xff]  }
 0x34f   : > { %4277 = vmatmul.mubr.bf16.vlgmr.msra.gmra.mrb[16].mxu0 %v13106_v25  ;;  %v11234_v15 = vld [vmem:[%s12661_s0 + $0xb88] ss:$16 sps:$4 sm:$0xff]  }
 0x350   : > { %4318 = vmatmul.mubr.bf16.vlgmr.msra.gmra.mrb[16].mxu1 %v13108_v26  ;;  %4327 = vmatpush1.bf16.msra.mxu0 %v11159_v27  ;;  %v11239_v27 = vld [vmem:[%s12661_s0 + $0x9ac] ss:$16 sps:$4 sm:$0xff]  }
 0x351   : > { %4368 = vmatpush1.bf16.msra.mxu1 %v11162_v28  ;;  %4328 = vmatprep.subr.bf16.mxu0 %v11167_v29  ;;  %v11242_v28 = vld [vmem:[%s12661_s0 + $0xbac] ss:$16 sps:$4 sm:$0xff]   ;;  %v11237_v29 = vld [vmem:[%s12661_s0 + $0x9a8] ss:$16 sps:$4 sm:$0xff]  }
 0x352   : > { %4369 = vmatprep.subr.bf16.mxu1 %v11170_v30  ;;  %4358 = vmatprep.mubr.bf16.mxu0 %v13034_v21  ;;  %v11180_v21 = vld [vmem:[%s12661_s0 + $0xa68] ss:$16 sps:$4 sm:$0xff]  }
 0x353   : > { %4399 = vmatprep.mubr.bf16.mxu1 %v13036_v10  ;;  %v11185_v10 = vld [vmem:[%s12661_s0 + $0x88c] ss:$16 sps:$4 sm:$0xff]   ;;  %v11240_v30 = vld [vmem:[%s12661_s0 + $0xba8] ss:$16 sps:$4 sm:$0xff]  }
 0x354   : > { %4329 = vmatpush1.bf16.msra.mxu0 %v11165_v31  ;;  %v11245_v31 = vld [vmem:[%s12661_s0 + $0x9cc] ss:$16 sps:$4 sm:$0xff]  }
 0x355   : > { %4370 = vmatpush1.bf16.msra.mxu1 %v11168_v32  ;;  %4330 = vmatprep.subr.bf16.mxu0 %v11173_v33  ;;  %v11248_v32 = vld [vmem:[%s12661_s0 + $0xbcc] ss:$16 sps:$4 sm:$0xff]   ;;  %v11243_v33 = vld [vmem:[%s12661_s0 + $0x9c8] ss:$16 sps:$4 sm:$0xff]  }
 0x356   : > { %4371 = vmatprep.subr.bf16.mxu1 %v11176_v34  ;;  %v11246_v34 = vld [vmem:[%s12661_s0 + $0xbc8] ss:$16 sps:$4 sm:$0xff]  }
 0x358   : > { %4331 = vmatpush1.bf16.msra.mxu0 %v11171_v35  ;;  %v11251_v35 = vld [vmem:[%s12661_s0 + $0x9ec] ss:$16 sps:$4 sm:$0xff]  }
 0x359   : > { %4372 = vmatpush1.bf16.msra.mxu1 %v11174_v36  ;;  %4332 = vmatprep.subr.bf16.mxu0 %v11179_v37  ;;  %v11254_v36 = vld [vmem:[%s12661_s0 + $0xbec] ss:$16 sps:$4 sm:$0xff]   ;;  %v11249_v37 = vld [vmem:[%s12661_s0 + $0x9e8] ss:$16 sps:$4 sm:$0xff]  }
 0x35a   : > { %4373 = vmatprep.subr.bf16.mxu1 %v11182_v38  ;;  %v11252_v38 = vld [vmem:[%s12661_s0 + $0xbe8] ss:$16 sps:$4 sm:$0xff]  }
 0x35c   : > { %4333 = vmatpush1.bf16.msra.mxu0 %v11177_v44  ;;  %v11257_v44 = vld [vmem:[%s12661_s0 + $0xc04] ss:$16 sps:$4 sm:$0xff]  }
 0x35d   : > { %4374 = vmatpush1.bf16.msra.mxu1 %v11180_v21  ;;  %4334 = vmatprep.subr.bf16.mxu0 %v11185_v10  ;;  %v11260_v21 = vld [vmem:[%s12661_s0 + $0xe04] ss:$16 sps:$4 sm:$0xff]   ;;  %v4414_v10 = vld [vmem:[#allocation2 + $0x68] sm:$0xff] }
 0x35e   : > { %4375 = vmatprep.subr.bf16.mxu1 %v11188_v8  ;;  %v4416_v8 = vld [vmem:[#allocation2 + $0x78] sm:$0xff] }
 0x360   : > { %4335 = vmatpush1.bf16.msra.mxu0 %v11183_v45  ;;  %v11255_v45 = vld [vmem:[%s12661_s0 + $0xc00] ss:$16 sps:$4 sm:$0xff]  }
 0x361   : > { %4376 = vmatpush1.bf16.msra.mxu1 %v11186_v46  ;;  %4336 = vmatprep.subr.bf16.mxu0 %v11191_v40  ;;  %v11258_v46 = vld [vmem:[%s12661_s0 + $0xe00] ss:$16 sps:$4 sm:$0xff]   ;;  %v11263_v40 = vld [vmem:[%s12661_s0 + $0xc24] ss:$16 sps:$4 sm:$0xff]  }
 0x362   : > { %4377 = vmatprep.subr.bf16.mxu1 %v11194_v41  ;;  %v2615_v49 = vpop.f32.mrb[4].mxu0  ;;  %v11266_v41 = vld [vmem:[%s12661_s0 + $0xe24] ss:$16 sps:$4 sm:$0xff]  }
 0x363   : > { %v2656_v50 = vpop.f32.mrb[4].mxu1  ;;  %v2617_v52 = vpop.f32.mrb[5].mxu0 }
 0x364   : > { %v13138_v51 = vadd.f32 %v2656_v50, %v2615_v49  ;;  %v2658_v53 = vpop.f32.mrb[5].mxu1  ;;  %v2619_v55 = vpop.f32.mrb[6].mxu0  ;;  %4337 = vmatpush1.bf16.msra.mxu0 %v11189_v47  ;;  %v13186_v47 = vpack.c.bf16 %v4414_v10, %v4414_v10  ;;  %v11269_v49 = vld [vmem:[%s12661_s0 + $0xc44] ss:$16 sps:$4 sm:$0xff]  }
 0x365   : > { %v13140_v54 = vadd.f32 %v2658_v53, %v2617_v52  ;;  %v2660_v56 = vpop.f32.mrb[6].mxu1  ;;  %4378 = vmatpush1.bf16.msra.mxu1 %v11192_v9  ;;  %v2620_v61 = vpop.f32.mrb[7].mxu0  ;;  %4338 = vmatprep.subr.bf16.mxu0 %v11197_v42  ;;  %v13188_v9 = vpack.c.bf16 %v4416_v8, %v4416_v8  ;;  %v11261_v42 = vld [vmem:[%s12661_s0 + $0xc20] ss:$16 sps:$4 sm:$0xff]   ;;  %v11272_v50 = vld [vmem:[%s12661_s0 + $0xe44] ss:$16 sps:$4 sm:$0xff]  }
 0x366   : > { %v2661_v62 = vpop.f32.mrb[7].mxu1  ;;  %4379 = vmatprep.subr.bf16.mxu1 %v11200_v48  ;;  %v11264_v48 = vld [vmem:[%s12661_s0 + $0xe20] ss:$16 sps:$4 sm:$0xff]   ;;  %v11275_v52 = vld [vmem:[%s12661_s0 + $0xc64] ss:$16 sps:$4 sm:$0xff]  }
 0x367   : > { %v11278_v53 = vld [vmem:[%s12661_s0 + $0xe64] ss:$16 sps:$4 sm:$0xff]   ;;  %v11273_v55 = vld [vmem:[%s12661_s0 + $0xc60] ss:$16 sps:$4 sm:$0xff]  }
 0x368   : > { %4339 = vmatpush1.bf16.msra.mxu0 %v11195_v57  ;;  %v11276_v56 = vld [vmem:[%s12661_s0 + $0xe60] ss:$16 sps:$4 sm:$0xff]   ;;  %v11281_v57 = vld [vmem:[%s12661_s0 + $0xc84] ss:$16 sps:$4 sm:$0xff]  }
 0x369   : > { %4380 = vmatpush1.bf16.msra.mxu1 %v11198_v58  ;;  %4340 = vmatprep.subr.bf16.mxu0 %v11203_v63  ;;  %v11284_v58 = vld [vmem:[%s12661_s0 + $0xe84] ss:$16 sps:$4 sm:$0xff]   ;;  %v11279_v61 = vld [vmem:[%s12661_s0 + $0xc80] ss:$16 sps:$4 sm:$0xff]  }
 0x36a   : > { %4381 = vmatprep.subr.bf16.mxu1 %v11206_v0  ;;  %v11282_v62 = vld [vmem:[%s12661_s0 + $0xe80] ss:$16 sps:$4 sm:$0xff]   ;;  %v11287_v63 = vld [vmem:[%s12661_s0 + $0xca4] ss:$16 sps:$4 sm:$0xff]  }
 0x36b   : > { %v11290_v0 = vld [vmem:[%s12661_s0 + $0xea4] ss:$16 sps:$4 sm:$0xff]  }
 0x36c   : > { %4341 = vmatpush1.bf16.msra.mxu0 %v11201_v1  ;;  %v11285_v1 = vld [vmem:[%s12661_s0 + $0xca0] ss:$16 sps:$4 sm:$0xff]   ;;  %v11329_v10 = vld [vmem:[%s12661_s0 + $0xd84] ss:$16 sps:$4 sm:$0xff]  }
 0x36d   : > { %4382 = vmatpush1.bf16.msra.mxu1 %v11204_v2  ;;  %4342 = vmatprep.subr.bf16.mxu0 %v11209_v3  ;;  %v11288_v2 = vld [vmem:[%s12661_s0 + $0xea0] ss:$16 sps:$4 sm:$0xff]   ;;  %v11293_v3 = vld [vmem:[%s12661_s0 + $0xcc4] ss:$16 sps:$4 sm:$0xff]  }
 0x36e   : > { %4383 = vmatprep.subr.bf16.mxu1 %v11212_v4  ;;  %v11296_v4 = vld [vmem:[%s12661_s0 + $0xec4] ss:$16 sps:$4 sm:$0xff]  }
 0x36f   : > { %v11332_v8 = vld [vmem:[%s12661_s0 + $0xf84] ss:$16 sps:$4 sm:$0xff]  }
 0x370   : > { %4343 = vmatpush1.bf16.msra.mxu0 %v11207_v16 }
 0x371   : > { %4384 = vmatpush1.bf16.msra.mxu1 %v11210_v17  ;;  %4344 = vmatprep.subr.bf16.mxu0 %v11215_v59 }
 0x372   : > { %4385 = vmatprep.subr.bf16.mxu1 %v11218_v60 }
 0x374   : > { %4345 = vmatpush1.bf16.msra.mxu0 %v11213_v11 }
 0x375   : > { %4386 = vmatpush1.bf16.msra.mxu1 %v11216_v18  ;;  %4346 = vmatprep.subr.bf16.mxu0 %v11221_v19 }
 0x376   : > { %4387 = vmatprep.subr.bf16.mxu1 %v11224_v20 }
 0x378   : > { %4347 = vmatpush1.bf16.msra.mxu0 %v11219_v22  ;;  %v11291_v22 = vld [vmem:[%s12661_s0 + $0xcc0] ss:$16 sps:$4 sm:$0xff]  }
 0x379   : > { %4388 = vmatpush1.bf16.msra.mxu1 %v11222_v23  ;;  %4348 = vmatprep.subr.bf16.mxu0 %v11227_v13  ;;  %v11294_v23 = vld [vmem:[%s12661_s0 + $0xec0] ss:$16 sps:$4 sm:$0xff]  }
 0x37a   : > { %4389 = vmatprep.subr.bf16.mxu1 %v11230_v14 }
 0x37c   : > { %4349 = vmatpush1.bf16.msra.mxu0 %v11225_v7 }
 0x37d   : > { %4390 = vmatpush1.bf16.msra.mxu1 %v11228_v5  ;;  %4350 = vmatprep.subr.bf16.mxu0 %v11233_v12  ;;  %v11297_v12 = vld [vmem:[%s12661_s0 + $0xce0] ss:$16 sps:$4 sm:$0xff]  }
 0x37e   : > { %4391 = vmatprep.subr.bf16.mxu1 %v11236_v6  ;;  %v11300_v6 = vld [vmem:[%s12661_s0 + $0xee0] ss:$16 sps:$4 sm:$0xff]  }
 0x380   : > { %4351 = vmatpush1.bf16.msra.mxu0 %v11231_v24  ;;  %v11305_v24 = vld [vmem:[%s12661_s0 + $0xd04] ss:$16 sps:$4 sm:$0xff]  }
 0x381   : > { %4392 = vmatpush1.bf16.msra.mxu1 %v11234_v15  ;;  %4352 = vmatprep.subr.bf16.mxu0 %v11239_v27  ;;  %v11308_v15 = vld [vmem:[%s12661_s0 + $0xf04] ss:$16 sps:$4 sm:$0xff]   ;;  %v11303_v27 = vld [vmem:[%s12661_s0 + $0xd00] ss:$16 sps:$4 sm:$0xff]  }
 0x382   : > { %4393 = vmatprep.subr.bf16.mxu1 %v11242_v28  ;;  %v11306_v28 = vld [vmem:[%s12661_s0 + $0xf00] ss:$16 sps:$4 sm:$0xff]  }
 0x384   : > { %4353 = vmatpush1.bf16.msra.mxu0 %v11237_v29  ;;  %v11311_v29 = vld [vmem:[%s12661_s0 + $0xd24] ss:$16 sps:$4 sm:$0xff]  }
 0x385   : > { %4394 = vmatpush1.bf16.msra.mxu1 %v11240_v30  ;;  %4354 = vmatprep.subr.bf16.mxu0 %v11245_v31  ;;  %v11314_v30 = vld [vmem:[%s12661_s0 + $0xf24] ss:$16 sps:$4 sm:$0xff]   ;;  %v11309_v31 = vld [vmem:[%s12661_s0 + $0xd20] ss:$16 sps:$4 sm:$0xff]  }
 0x386   : > { %4395 = vmatprep.subr.bf16.mxu1 %v11248_v32  ;;  %v11312_v32 = vld [vmem:[%s12661_s0 + $0xf20] ss:$16 sps:$4 sm:$0xff]  }
 0x388   : > { %4355 = vmatpush1.bf16.msra.mxu0 %v11243_v33  ;;  %v11317_v33 = vld [vmem:[%s12661_s0 + $0xd44] ss:$16 sps:$4 sm:$0xff]  }
 0x389   : > { %4396 = vmatpush1.bf16.msra.mxu1 %v11246_v34  ;;  %4356 = vmatprep.subr.bf16.mxu0 %v11251_v35  ;;  %v11320_v34 = vld [vmem:[%s12661_s0 + $0xf44] ss:$16 sps:$4 sm:$0xff]   ;;  %v11315_v35 = vld [vmem:[%s12661_s0 + $0xd40] ss:$16 sps:$4 sm:$0xff]  }
 0x38a   : > { %4397 = vmatprep.subr.bf16.mxu1 %v11254_v36  ;;  %v11318_v36 = vld [vmem:[%s12661_s0 + $0xf40] ss:$16 sps:$4 sm:$0xff]  }
 0x38c   : > { %4357 = vmatpush1.bf16.msra.mxu0 %v11249_v37  ;;  %v11323_v37 = vld [vmem:[%s12661_s0 + $0xd64] ss:$16 sps:$4 sm:$0xff]  }
 0x38d   : > { %4398 = vmatpush1.bf16.msra.mxu1 %v11252_v38  ;;  %5189 = vmatprep.subr.bf16.mxu0 %v11257_v44  ;;  %v11326_v38 = vld [vmem:[%s12661_s0 + $0xf64] ss:$16 sps:$4 sm:$0xff]   ;;  %v11321_v44 = vld [vmem:[%s12661_s0 + $0xd60] ss:$16 sps:$4 sm:$0xff]  }
 0x38e   : > { %5230 = vmatprep.subr.bf16.mxu1 %v11260_v21  ;;  %v11324_v21 = vld [vmem:[%s12661_s0 + $0xf60] ss:$16 sps:$4 sm:$0xff]  }
 0x38f   : > { %4359 = vmatmul.mubr.bf16.vlgmr.msra.gmra.mrb[20].mxu0 %v13106_v25  ;;  %v11267_v25 = vld [vmem:[%s12661_s0 + $0xc40] ss:$16 sps:$4 sm:$0xff]  }
 0x390   : > { %4400 = vmatmul.mubr.bf16.vlgmr.msra.gmra.mrb[20].mxu1 %v13108_v26  ;;  %5190 = vmatpush1.bf16.msra.mxu0 %v11255_v45  ;;  %v11270_v26 = vld [vmem:[%s12661_s0 + $0xe40] ss:$16 sps:$4 sm:$0xff]  }
 0x391   : > { %5231 = vmatpush1.bf16.msra.mxu1 %v11258_v46  ;;  %5191 = vmatprep.subr.bf16.mxu0 %v11263_v40  ;;  %v11327_v45 = vld [vmem:[%s12661_s0 + $0xd80] ss:$16 sps:$4 sm:$0xff]   ;;  %v11335_v40 = vld [vmem:[%s12661_s0 + $0xda4] ss:$16 sps:$4 sm:$0xff]  }
 0x392   : > { %5232 = vmatprep.subr.bf16.mxu1 %v11266_v41  ;;  %5221 = vmatprep.mubr.bf16.mxu0 %v13186_v47  ;;  %v11330_v46 = vld [vmem:[%s12661_s0 + $0xf80] ss:$16 sps:$4 sm:$0xff]   ;;  %v11338_v41 = vld [vmem:[%s12661_s0 + $0xfa4] ss:$16 sps:$4 sm:$0xff]  }
 0x393   : > { %5262 = vmatprep.mubr.bf16.mxu1 %v13188_v9 }
 0x394   : > { %5192 = vmatpush1.bf16.msra.mxu0 %v11261_v42  ;;  %v11333_v42 = vld [vmem:[%s12661_s0 + $0xda0] ss:$16 sps:$4 sm:$0xff]  }
 0x395   : > { %5233 = vmatpush1.bf16.msra.mxu1 %v11264_v48  ;;  %5193 = vmatprep.subr.bf16.mxu0 %v11269_v49  ;;  %v11336_v48 = vld [vmem:[%s12661_s0 + $0xfa0] ss:$16 sps:$4 sm:$0xff]   ;;  %v11341_v49 = vld [vmem:[%s12661_s0 + $0xdc4] ss:$16 sps:$4 sm:$0xff]  }
 0x396   : > { %5234 = vmatprep.subr.bf16.mxu1 %v11272_v50  ;;  %v11344_v50 = vld [vmem:[%s12661_s0 + $0xfc4] ss:$16 sps:$4 sm:$0xff]  }
 0x398   : > { %5194 = vmatpush1.bf16.msra.mxu0 %v11267_v25  ;;  %v11339_v25 = vld [vmem:[%s12661_s0 + $0xdc0] ss:$16 sps:$4 sm:$0xff]  }
 0x399   : > { %5235 = vmatpush1.bf16.msra.mxu1 %v11270_v26  ;;  %5195 = vmatprep.subr.bf16.mxu0 %v11275_v52  ;;  %v11342_v26 = vld [vmem:[%s12661_s0 + $0xfc0] ss:$16 sps:$4 sm:$0xff]   ;;  %v11347_v52 = vld [vmem:[%s12661_s0 + $0xde4] ss:$16 sps:$4 sm:$0xff]  }
 0x39a   : > { %5236 = vmatprep.subr.bf16.mxu1 %v11278_v53  ;;  %v11350_v53 = vld [vmem:[%s12661_s0 + $0xfe4] ss:$16 sps:$4 sm:$0xff]  }
 0x39c   : > { %5196 = vmatpush1.bf16.msra.mxu0 %v11273_v55  ;;  %v11345_v55 = vld [vmem:[%s12661_s0 + $0xde0] ss:$16 sps:$4 sm:$0xff]  }
 0x39d   : > { %5237 = vmatpush1.bf16.msra.mxu1 %v11276_v56  ;;  %5197 = vmatprep.subr.bf16.mxu0 %v11281_v57  ;;  %v11348_v56 = vld [vmem:[%s12661_s0 + $0xfe0] ss:$16 sps:$4 sm:$0xff]  }
 0x39e   : > { %5238 = vmatprep.subr.bf16.mxu1 %v11284_v58  ;;  %v4413_v57 = vld [vmem:[#allocation2 + $0x60] sm:$0xff]  ;;  %v4415_v58 = vld [vmem:[#allocation2 + $0x70] sm:$0xff] }
 0x3a0   : > { %5198 = vmatpush1.bf16.msra.mxu0 %v11279_v61  ;;  %v11353_v61 = vld [vmem:[%s12661_s0 + $0xc0c] ss:$16 sps:$4 sm:$0xff]  }
 0x3a1   : > { %5239 = vmatpush1.bf16.msra.mxu1 %v11282_v62  ;;  %5199 = vmatprep.subr.bf16.mxu0 %v11287_v63  ;;  %v11356_v62 = vld [vmem:[%s12661_s0 + $0xe0c] ss:$16 sps:$4 sm:$0xff]   ;;  %v13260_v63 = vpack.c.bf16 %v4413_v57, %v4413_v57  ;;  %v11417_v57 = vld [vmem:[%s12661_s0 + $0xd68] ss:$16 sps:$4 sm:$0xff]  }
 0x3a2   : > { %5240 = vmatprep.subr.bf16.mxu1 %v11290_v0  ;;  %v3337_v16 = vpop.f32.mrb[8].mxu0  ;;  %v13262_v0 = vpack.c.bf16 %v4415_v58, %v4415_v58  ;;  %v11420_v58 = vld [vmem:[%s12661_s0 + $0xf68] ss:$16 sps:$4 sm:$0xff]  }
 0x3a3   : > { %v3378_v17 = vpop.f32.mrb[8].mxu1  ;;  %v3338_v59 = vadd.f32 %v3337_v16, %v13064_v43  ;;  %v3339_v60 = vpop.f32.mrb[9].mxu0  ;;  %v11299_v43 = vld [vmem:[%s12661_s0 + $0xce4] ss:$16 sps:$4 sm:$0xff]   ;;  %v11357_v16 = vld [vmem:[%s12661_s0 + $0xc28] ss:$16 sps:$4 sm:$0xff]  }
 0x3a4   : > { %v3380_v11 = vpop.f32.mrb[9].mxu1  ;;  %v3340_v18 = vadd.f32 %v3339_v60, %v13066_v39  ;;  %v3341_v19 = vpop.f32.mrb[10].mxu0  ;;  %5200 = vmatpush1.bf16.msra.mxu0 %v11285_v1  ;;  %v11302_v39 = vld [vmem:[%s12661_s0 + $0xee4] ss:$16 sps:$4 sm:$0xff]   ;;  %v11351_v1 = vld [vmem:[%s12661_s0 + $0xc08] ss:$16 sps:$4 sm:$0xff]  }
 0x3a5   : > { %v3382_v20 = vpop.f32.mrb[10].mxu1  ;;  %5241 = vmatpush1.bf16.msra.mxu1 %v11288_v2  ;;  %v13218_v13 = vadd.f32 %v3378_v17, %v3338_v59  ;;  %v3342_v14 = vpop.f32.mrb[11].mxu0  ;;  %5201 = vmatprep.subr.bf16.mxu0 %v11293_v3  ;;  %v11354_v2 = vld [vmem:[%s12661_s0 + $0xe08] ss:$16 sps:$4 sm:$0xff]   ;;  %v11359_v3 = vld [vmem:[%s12661_s0 + $0xc2c] ss:$16 sps:$4 sm:$0xff]  }
 0x3a6   : > { %v3383_v7 = vpop.f32.mrb[11].mxu1  ;;  %5242 = vmatprep.subr.bf16.mxu1 %v11296_v4  ;;  %v13222_v5 = vadd.f32 %v3380_v11, %v3340_v18  ;;  %v11362_v4 = vld [vmem:[%s12661_s0 + $0xe2c] ss:$16 sps:$4 sm:$0xff]   ;;  %v11360_v17 = vld [vmem:[%s12661_s0 + $0xe28] ss:$16 sps:$4 sm:$0xff]  }
 0x3a7   : > { %v11365_v59 = vld [vmem:[%s12661_s0 + $0xc4c] ss:$16 sps:$4 sm:$0xff]   ;;  %v11363_v11 = vld [vmem:[%s12661_s0 + $0xc48] ss:$16 sps:$4 sm:$0xff]  }
 0x3a8   : > { %5202 = vmatpush1.bf16.msra.mxu0 %v11291_v22  ;;  %v11368_v60 = vld [vmem:[%s12661_s0 + $0xe4c] ss:$16 sps:$4 sm:$0xff]   ;;  %v11366_v18 = vld [vmem:[%s12661_s0 + $0xe48] ss:$16 sps:$4 sm:$0xff]  }
 0x3a9   : > { %5243 = vmatpush1.bf16.msra.mxu1 %v11294_v23  ;;  %5203 = vmatprep.subr.bf16.mxu0 %v11299_v43  ;;  %v11371_v19 = vld [vmem:[%s12661_s0 + $0xc6c] ss:$16 sps:$4 sm:$0xff]   ;;  %v11369_v22 = vld [vmem:[%s12661_s0 + $0xc68] ss:$16 sps:$4 sm:$0xff]  }
 0x3aa   : > { %5244 = vmatprep.subr.bf16.mxu1 %v11302_v39  ;;  %v11374_v20 = vld [vmem:[%s12661_s0 + $0xe6c] ss:$16 sps:$4 sm:$0xff]   ;;  %v11375_v14 = vld [vmem:[%s12661_s0 + $0xc88] ss:$16 sps:$4 sm:$0xff]  }
 0x3ab   : > { %v11380_v23 = vld [vmem:[%s12661_s0 + $0xe8c] ss:$16 sps:$4 sm:$0xff]   ;;  %v11378_v7 = vld [vmem:[%s12661_s0 + $0xe88] ss:$16 sps:$4 sm:$0xff]  }
 0x3ac   : > { %5204 = vmatpush1.bf16.msra.mxu0 %v11297_v12  ;;  %v11383_v43 = vld [vmem:[%s12661_s0 + $0xcac] ss:$16 sps:$4 sm:$0xff]   ;;  %v11381_v12 = vld [vmem:[%s12661_s0 + $0xca8] ss:$16 sps:$4 sm:$0xff]  }
 0x3ad   : > { %5245 = vmatpush1.bf16.msra.mxu1 %v11300_v6  ;;  %5205 = vmatprep.subr.bf16.mxu0 %v11305_v24  ;;  %v11386_v39 = vld [vmem:[%s12661_s0 + $0xeac] ss:$16 sps:$4 sm:$0xff]   ;;  %v11384_v6 = vld [vmem:[%s12661_s0 + $0xea8] ss:$16 sps:$4 sm:$0xff]  }
 0x3ae   : > { %5246 = vmatprep.subr.bf16.mxu1 %v11308_v15  ;;  %v11389_v24 = vld [vmem:[%s12661_s0 + $0xccc] ss:$16 sps:$4 sm:$0xff]  }
 0x3af   : > { %v11392_v15 = vld [vmem:[%s12661_s0 + $0xecc] ss:$16 sps:$4 sm:$0xff]  }
 0x3b0   : > { %5206 = vmatpush1.bf16.msra.mxu0 %v11303_v27 }
 0x3b1   : > { %5247 = vmatpush1.bf16.msra.mxu1 %v11306_v28  ;;  %5207 = vmatprep.subr.bf16.mxu0 %v11311_v29 }
 0x3b2   : > { %5248 = vmatprep.subr.bf16.mxu1 %v11314_v30 }
 0x3b4   : > { %5208 = vmatpush1.bf16.msra.mxu0 %v11309_v31 }
 0x3b5   : > { %5249 = vmatpush1.bf16.msra.mxu1 %v11312_v32  ;;  %5209 = vmatprep.subr.bf16.mxu0 %v11317_v33 }
 0x3b6   : > { %5250 = vmatprep.subr.bf16.mxu1 %v11320_v34 }
 0x3b8   : > { %5210 = vmatpush1.bf16.msra.mxu0 %v11315_v35  ;;  %v11387_v35 = vld [vmem:[%s12661_s0 + $0xcc8] ss:$16 sps:$4 sm:$0xff]  }
 0x3b9   : > { %5251 = vmatpush1.bf16.msra.mxu1 %v11318_v36  ;;  %5211 = vmatprep.subr.bf16.mxu0 %v11323_v37  ;;  %v11390_v36 = vld [vmem:[%s12661_s0 + $0xec8] ss:$16 sps:$4 sm:$0xff]  }
 0x3ba   : > { %5252 = vmatprep.subr.bf16.mxu1 %v11326_v38 }
 0x3bc   : > { %5212 = vmatpush1.bf16.msra.mxu0 %v11321_v44 }
 0x3bd   : > { %5253 = vmatpush1.bf16.msra.mxu1 %v11324_v21  ;;  %5213 = vmatprep.subr.bf16.mxu0 %v11329_v10  ;;  %v11393_v10 = vld [vmem:[%s12661_s0 + $0xce8] ss:$16 sps:$4 sm:$0xff]  }
 0x3be   : > { %5254 = vmatprep.subr.bf16.mxu1 %v11332_v8  ;;  %v11396_v8 = vld [vmem:[%s12661_s0 + $0xee8] ss:$16 sps:$4 sm:$0xff]  }
 0x3c0   : > { %5214 = vmatpush1.bf16.msra.mxu0 %v11327_v45  ;;  %v11401_v45 = vld [vmem:[%s12661_s0 + $0xd0c] ss:$16 sps:$4 sm:$0xff]  }
 0x3c1   : > { %5255 = vmatpush1.bf16.msra.mxu1 %v11330_v46  ;;  %5215 = vmatprep.subr.bf16.mxu0 %v11335_v40  ;;  %v11404_v46 = vld [vmem:[%s12661_s0 + $0xf0c] ss:$16 sps:$4 sm:$0xff]   ;;  %v11399_v40 = vld [vmem:[%s12661_s0 + $0xd08] ss:$16 sps:$4 sm:$0xff]  }
 0x3c2   : > { %5256 = vmatprep.subr.bf16.mxu1 %v11338_v41  ;;  %v11402_v41 = vld [vmem:[%s12661_s0 + $0xf08] ss:$16 sps:$4 sm:$0xff]  }
 0x3c4   : > { %5216 = vmatpush1.bf16.msra.mxu0 %v11333_v42  ;;  %v11407_v42 = vld [vmem:[%s12661_s0 + $0xd2c] ss:$16 sps:$4 sm:$0xff]  }
 0x3c5   : > { %5257 = vmatpush1.bf16.msra.mxu1 %v11336_v48  ;;  %5217 = vmatprep.subr.bf16.mxu0 %v11341_v49  ;;  %v11410_v48 = vld [vmem:[%s12661_s0 + $0xf2c] ss:$16 sps:$4 sm:$0xff]   ;;  %v11405_v49 = vld [vmem:[%s12661_s0 + $0xd28] ss:$16 sps:$4 sm:$0xff]  }
 0x3c6   : > { %5258 = vmatprep.subr.bf16.mxu1 %v11344_v50  ;;  %v11408_v50 = vld [vmem:[%s12661_s0 + $0xf28] ss:$16 sps:$4 sm:$0xff]  }
 0x3c8   : > { %5218 = vmatpush1.bf16.msra.mxu0 %v11339_v25  ;;  %v11413_v25 = vld [vmem:[%s12661_s0 + $0xd4c] ss:$16 sps:$4 sm:$0xff]  }
 0x3c9   : > { %5259 = vmatpush1.bf16.msra.mxu1 %v11342_v26  ;;  %5219 = vmatprep.subr.bf16.mxu0 %v11347_v52  ;;  %v11416_v26 = vld [vmem:[%s12661_s0 + $0xf4c] ss:$16 sps:$4 sm:$0xff]   ;;  %v11411_v52 = vld [vmem:[%s12661_s0 + $0xd48] ss:$16 sps:$4 sm:$0xff]  }
 0x3ca   : > { %5260 = vmatprep.subr.bf16.mxu1 %v11350_v53  ;;  %v11414_v53 = vld [vmem:[%s12661_s0 + $0xf48] ss:$16 sps:$4 sm:$0xff]  }
 0x3cc   : > { %5220 = vmatpush1.bf16.msra.mxu0 %v11345_v55  ;;  %v11419_v55 = vld [vmem:[%s12661_s0 + $0xd6c] ss:$16 sps:$4 sm:$0xff]  }
 0x3cd   : > { %5261 = vmatpush1.bf16.msra.mxu1 %v11348_v56  ;;  %5271 = vmatprep.subr.bf16.mxu0 %v11353_v61  ;;  %v11422_v56 = vld [vmem:[%s12661_s0 + $0xf6c] ss:$16 sps:$4 sm:$0xff]  }
 0x3ce   : > { %5312 = vmatprep.subr.bf16.mxu1 %v11356_v62  ;;  %v11425_v61 = vld [vmem:[%s12661_s0 + $0xd8c] ss:$16 sps:$4 sm:$0xff]  }
 0x3cf   : > { %5222 = vmatmul.mubr.bf16.vlgmr.msra.gmra.mrb[24].mxu0 %v13260_v63  ;;  %v11428_v62 = vld [vmem:[%s12661_s0 + $0xf8c] ss:$16 sps:$4 sm:$0xff]  }
 0x3d0   : > { %5263 = vmatmul.mubr.bf16.vlgmr.msra.gmra.mrb[24].mxu1 %v13262_v0  ;;  %5272 = vmatpush1.bf16.msra.mxu0 %v11351_v1  ;;  %v11423_v1 = vld [vmem:[%s12661_s0 + $0xd88] ss:$16 sps:$4 sm:$0xff]  }
 0x3d1   : > { %5313 = vmatpush1.bf16.msra.mxu1 %v11354_v2  ;;  %5273 = vmatprep.subr.bf16.mxu0 %v11359_v3  ;;  %v11426_v2 = vld [vmem:[%s12661_s0 + $0xf88] ss:$16 sps:$4 sm:$0xff]   ;;  %v11431_v3 = vld [vmem:[%s12661_s0 + $0xdac] ss:$16 sps:$4 sm:$0xff]  }
 0x3d2   : > { %5314 = vmatprep.subr.bf16.mxu1 %v11362_v4  ;;  %5303 = vmatprep.mubr.bf16.mxu0 %v13186_v47  ;;  %v11372_v47 = vld [vmem:[%s12661_s0 + $0xe68] ss:$16 sps:$4 sm:$0xff]   ;;  %v11434_v4 = vld [vmem:[%s12661_s0 + $0xfac] ss:$16 sps:$4 sm:$0xff]  }
 0x3d3   : > { %5344 = vmatprep.mubr.bf16.mxu1 %v13188_v9  ;;  %v11377_v9 = vld [vmem:[%s12661_s0 + $0xc8c] ss:$16 sps:$4 sm:$0xff]  }
 0x3d4   : > { %5274 = vmatpush1.bf16.msra.mxu0 %v11357_v16  ;;  %v11429_v16 = vld [vmem:[%s12661_s0 + $0xda8] ss:$16 sps:$4 sm:$0xff]  }
 0x3d5   : > { %5315 = vmatpush1.bf16.msra.mxu1 %v11360_v17  ;;  %5275 = vmatprep.subr.bf16.mxu0 %v11365_v59  ;;  %v11432_v17 = vld [vmem:[%s12661_s0 + $0xfa8] ss:$16 sps:$4 sm:$0xff]   ;;  %v11437_v59 = vld [vmem:[%s12661_s0 + $0xdcc] ss:$16 sps:$4 sm:$0xff]  }
 0x3d6   : > { %5316 = vmatprep.subr.bf16.mxu1 %v11368_v60  ;;  %v11440_v60 = vld [vmem:[%s12661_s0 + $0xfcc] ss:$16 sps:$4 sm:$0xff]  }
 0x3d8   : > { %5276 = vmatpush1.bf16.msra.mxu0 %v11363_v11  ;;  %v11435_v11 = vld [vmem:[%s12661_s0 + $0xdc8] ss:$16 sps:$4 sm:$0xff]  }
 0x3d9   : > { %5317 = vmatpush1.bf16.msra.mxu1 %v11366_v18  ;;  %5277 = vmatprep.subr.bf16.mxu0 %v11371_v19  ;;  %v11438_v18 = vld [vmem:[%s12661_s0 + $0xfc8] ss:$16 sps:$4 sm:$0xff]   ;;  %v11443_v19 = vld [vmem:[%s12661_s0 + $0xdec] ss:$16 sps:$4 sm:$0xff]  }
 0x3da   : > { %5318 = vmatprep.subr.bf16.mxu1 %v11374_v20  ;;  %v11446_v20 = vld [vmem:[%s12661_s0 + $0xfec] ss:$16 sps:$4 sm:$0xff]  }
 0x3dc   : > { %5278 = vmatpush1.bf16.msra.mxu0 %v11369_v22  ;;  %v11441_v22 = vld [vmem:[%s12661_s0 + $0xde8] ss:$16 sps:$4 sm:$0xff]  }
 0x3dd   : > { %5319 = vmatpush1.bf16.msra.mxu1 %v11372_v47  ;;  %5279 = vmatprep.subr.bf16.mxu0 %v11377_v9  ;;  %v11444_v47 = vld [vmem:[%s12661_s0 + $0xfe8] ss:$16 sps:$4 sm:$0xff]  }
 0x3de   : > { %5320 = vmatprep.subr.bf16.mxu1 %v11380_v23 }
 0x3e0   : > { %5280 = vmatpush1.bf16.msra.mxu0 %v11375_v14 }
 0x3e1   : > { %5321 = vmatpush1.bf16.msra.mxu1 %v11378_v7  ;;  %5281 = vmatprep.subr.bf16.mxu0 %v11383_v43 }
 0x3e2   : > { %5322 = vmatprep.subr.bf16.mxu1 %v11386_v39  ;;  %v3419_v27 = vpop.f32.mrb[12].mxu0 }
 0x3e3   : > { %v3460_v28 = vpop.f32.mrb[12].mxu1  ;;  %v3420_v29 = vadd.f32 %v3419_v27, %v13138_v51  ;;  %v3421_v30 = vpop.f32.mrb[13].mxu0  ;;  %v11395_v51 = vld [vmem:[%s12661_s0 + $0xcec] ss:$16 sps:$4 sm:$0xff]  }
 0x3e4   : > { %v3462_v31 = vpop.f32.mrb[13].mxu1  ;;  %v3422_v32 = vadd.f32 %v3421_v30, %v13140_v54  ;;  %v3423_v33 = vpop.f32.mrb[14].mxu0  ;;  %5282 = vmatpush1.bf16.msra.mxu0 %v11381_v12  ;;  %v11398_v54 = vld [vmem:[%s12661_s0 + $0xeec] ss:$16 sps:$4 sm:$0xff]  }
 0x3e5   : > { %v3464_v34 = vpop.f32.mrb[14].mxu1  ;;  %5323 = vmatpush1.bf16.msra.mxu1 %v11384_v6  ;;  %v13296_v37 = vadd.f32 %v3460_v28, %v3420_v29  ;;  %v3424_v38 = vpop.f32.mrb[15].mxu0  ;;  %5283 = vmatprep.subr.bf16.mxu0 %v11389_v24 }
 0x3e6   : > { %v3465_v44 = vpop.f32.mrb[15].mxu1  ;;  %5324 = vmatprep.subr.bf16.mxu1 %v11392_v15  ;;  %v13300_v21 = vadd.f32 %v3462_v31, %v3422_v32 }
 0x3e8   : > { %5284 = vmatpush1.bf16.msra.mxu0 %v11387_v35 }
 0x3e9   : > { %5325 = vmatpush1.bf16.msra.mxu1 %v11390_v36  ;;  %5285 = vmatprep.subr.bf16.mxu0 %v11395_v51 }
 0x3ea   : > { %5326 = vmatprep.subr.bf16.mxu1 %v11398_v54  ;;  %v5357_v54 = vld [vmem:[%s283_s1] sm:$0xf] }
 0x3ec   : > { %5286 = vmatpush1.bf16.msra.mxu0 %v11393_v10 }
 0x3ed   : > { %5327 = vmatpush1.bf16.msra.mxu1 %v11396_v8  ;;  %5287 = vmatprep.subr.bf16.mxu0 %v11401_v45 }
 0x3ee   : > { %5328 = vmatprep.subr.bf16.mxu1 %v11404_v46 }
 0x3f0   : > { %5288 = vmatpush1.bf16.msra.mxu0 %v11399_v40 }
 0x3f1   : > { %5329 = vmatpush1.bf16.msra.mxu1 %v11402_v41  ;;  %5289 = vmatprep.subr.bf16.mxu0 %v11407_v42 }
 0x3f2   : > { %5330 = vmatprep.subr.bf16.mxu1 %v11410_v48 }
 0x3f4   : > { %5290 = vmatpush1.bf16.msra.mxu0 %v11405_v49 }
 0x3f5   : > { %5331 = vmatpush1.bf16.msra.mxu1 %v11408_v50  ;;  %5291 = vmatprep.subr.bf16.mxu0 %v11413_v25 }
 0x3f6   : > { %5332 = vmatprep.subr.bf16.mxu1 %v11416_v26 }
 0x3f8   : > { %5292 = vmatpush1.bf16.msra.mxu0 %v11411_v52  ;;  %v5387_v52 = vstv %s12738_s7 }
 0x3f9   : > { %5333 = vmatpush1.bf16.msra.mxu1 %v11414_v53  ;;  %5293 = vmatprep.subr.bf16.mxu0 %v11419_v55 }
 0x3fa   : > { %5334 = vmatprep.subr.bf16.mxu1 %v11422_v56 }
 0x3fc   : > { %5294 = vmatpush1.bf16.msra.mxu0 %v11417_v57 }
 0x3fd   : > { %5335 = vmatpush1.bf16.msra.mxu1 %v11420_v58  ;;  %5295 = vmatprep.subr.bf16.mxu0 %v11425_v61 }
 0x3fe   : > { %5336 = vmatprep.subr.bf16.mxu1 %v11428_v62 }
 0x400   : > { %5296 = vmatpush1.bf16.msra.mxu0 %v11423_v1 }
 0x401   : > { %5337 = vmatpush1.bf16.msra.mxu1 %v11426_v2  ;;  %5297 = vmatprep.subr.bf16.mxu0 %v11431_v3 }
 0x402   : > { %5338 = vmatprep.subr.bf16.mxu1 %v11434_v4 }
 0x404   : > { %5298 = vmatpush1.bf16.msra.mxu0 %v11429_v16 }
 0x405   : > { %5339 = vmatpush1.bf16.msra.mxu1 %v11432_v17  ;;  %5299 = vmatprep.subr.bf16.mxu0 %v11437_v59 }
 0x406   : > { %5340 = vmatprep.subr.bf16.mxu1 %v11440_v60 }
 0x408   : > { %5300 = vmatpush1.bf16.msra.mxu0 %v11435_v11 }
 0x409   : > { %5341 = vmatpush1.bf16.msra.mxu1 %v11438_v18  ;;  %5301 = vmatprep.subr.bf16.mxu0 %v11443_v19 }
 0x40a   : > { %5342 = vmatprep.subr.bf16.mxu1 %v11446_v20 }
 0x40c   : > { %5302 = vmatpush1.bf16.msra.mxu0 %v11441_v22 }
 0x40d   : > { %5343 = vmatpush1.bf16.msra.mxu1 %v11444_v47 }
 0x40f   : > { %5304 = vmatmul.mubr.bf16.vlgmr.msra.gmra.mrb[28].mxu0 %v13260_v63 }
 0x410   : > { %5345 = vmatmul.mubr.bf16.vlgmr.msra.gmra.mrb[28].mxu1 %v13262_v0 }
 0x422   : > { %v4278_v9 = vpop.f32.mrb[16].mxu0 }
 0x423   : > { %v4319_v23 = vpop.f32.mrb[16].mxu1  ;;  %v4280_v7 = vpop.f32.mrb[17].mxu0 }
 0x424   : > { %v4320_v14 = vadd.f32 %v4319_v23, %v4278_v9  ;;  %v4321_v43 = vpop.f32.mrb[17].mxu1  ;;  %v4282_v12 = vpop.f32.mrb[18].mxu0 }
 0x425   : > { %v4322_v39 = vadd.f32 %v4321_v43, %v4280_v7  ;;  %v4323_v6 = vpop.f32.mrb[18].mxu1  ;;  %v4283_v15 = vpop.f32.mrb[19].mxu0 }
 0x426   : > { %v4408_v24 = vadd.f32 %v4320_v14, %v13218_v13  ;;  %v4324_v27 = vpop.f32.mrb[19].mxu1 }
 0x427   : > { %v4409_v28 = vadd.f32 %v4322_v39, %v13222_v5  ;;  %v5359_v5 = vlaneseq }
 0x429   : > { %v5360_v44 = vshrl.u32 %v5359_v5, 7 }
 0x42b   : > { %v5361_v51 = vsub.s32 0, %v5360_v44  ;;  %v5365_v10 = vsub.s32 1, %v5360_v44  ;;  %v5369_v1 = vsub.s32 2, %v5360_v44  ;;  %v5373_v2 = vsub.s32 3, %v5360_v44 }
 0x42d   : > { %v5362_v46 = vrot.slane %v5357_v54, %v5361_v51  ;;  %v5366_v42 = vrot.slane %v5357_v54, %v5365_v10  ;;  %v5370_v17 = vrot.slane %v5357_v54, %v5369_v1  ;;  %v5374_v18 = vrot.slane %v5357_v54, %v5373_v2 }
 0x462   : > { %v4360_v29 = vpop.f32.mrb[20].mxu0 }
 0x463   : > { %v4401_v63 = vpop.f32.mrb[20].mxu1  ;;  %v4362_v30 = vpop.f32.mrb[21].mxu0 }
 0x464   : > { %v4402_v0 = vadd.f32 %v4401_v63, %v4360_v29  ;;  %v4403_v31 = vpop.f32.mrb[21].mxu1  ;;  %v4364_v33 = vpop.f32.mrb[22].mxu0 }
 0x465   : > { %v4404_v32 = vadd.f32 %v4403_v31, %v4362_v30  ;;  %v4405_v34 = vpop.f32.mrb[22].mxu1  ;;  %v4365_v36 = vpop.f32.mrb[23].mxu0 }
 0x466   : > { %v4410_v35 = vadd.f32 %v4402_v0, %v13296_v37  ;;  %v4406_v38 = vpop.f32.mrb[23].mxu1 }
 0x467   : > { %v4411_v13 = vadd.f32 %v4404_v32, %v13300_v21 }
 0x4a2   : > { %v5223_v8 = vpop.f32.mrb[24].mxu0 }
 0x4a3   : > { %v5264_v37 = vpop.f32.mrb[24].mxu1  ;;  %v5225_v40 = vpop.f32.mrb[25].mxu0 }
 0x4a4   : > { %v5265_v45 = vadd.f32 %v5264_v37, %v5223_v8  ;;  %v5266_v21 = vpop.f32.mrb[25].mxu1  ;;  %v5227_v48 = vpop.f32.mrb[26].mxu0 }
 0x4a5   : > { %v5267_v41 = vadd.f32 %v5266_v21, %v5225_v40  ;;  %v5268_v49 = vpop.f32.mrb[26].mxu1  ;;  %v5228_v25 = vpop.f32.mrb[27].mxu0 }
 0x4a6   : > { %v5353_v50 = vadd.f32 %v5265_v45, %v4408_v24  ;;  %v5269_v26 = vpop.f32.mrb[27].mxu1 }
 0x4a7   : > { %v5354_v53 = vadd.f32 %v5267_v41, %v4409_v28 }
 0x4a8   : > { %v5379_v55 = vadd.f32 %v5362_v46, %v5353_v50 }
 0x4a9   : > { %v5380_v56 = vadd.f32 %v5366_v42, %v5354_v53 }
 0x4aa   : > { %vm5383_vm0 = vcmp.ge.f32.partialorder %v5379_v55, 0.0  ;;  %v5388_v57 = vmul.f32 %v5387_v52, %v5379_v55 }
 0x4ab   : > { %vm5384_vm1 = vcmp.ge.f32.partialorder %v5380_v56, 0.0  ;;  %v5389_v58 = vmul.f32 %v5387_v52, %v5380_v56 }
 0x4ac   : > { %v5392_v61 = vsel %vm5383_vm0, %v5379_v55, %v5388_v57 }
 0x4ad   : > { %5399 = vst [vmem:[%s5398_s13] sm:$0xff] %v5392_v61  ;;  %v5393_v62 = vsel %vm5384_vm1, %v5380_v56, %v5389_v58  ;;  %5434 = vst [vmem:[%s14141_s17 + $0x60] sm:$0xff] (!%p13345_p10), %v5392_v61 }
 0x4ae   : > { %5400 = vst [vmem:[%s5398_s13 + $0x8] sm:$0xff] %v5393_v62  ;;  %5435 = vst [vmem:[%s14141_s17 + $0x68] sm:$0xff] (!%p13345_p10), %v5393_v62 }
 0x4e2   : > { %v5305_v3 = vpop.f32.mrb[28].mxu0 }
 0x4e3   : > { %v5346_v4 = vpop.f32.mrb[28].mxu1  ;;  %v5307_v59 = vpop.f32.mrb[29].mxu0 }
 0x4e4   : > { %v5347_v16 = vadd.f32 %v5346_v4, %v5305_v3  ;;  %v5348_v60 = vpop.f32.mrb[29].mxu1  ;;  %v5309_v19 = vpop.f32.mrb[30].mxu0 }
 0x4e5   : > { %v5349_v11 = vadd.f32 %v5348_v60, %v5307_v59  ;;  %v5350_v20 = vpop.f32.mrb[30].mxu1  ;;  %v5310_v47 = vpop.f32.mrb[31].mxu0 }
 0x4e6   : > { %v5355_v22 = vadd.f32 %v5347_v16, %v4410_v35  ;;  %v5351_v9 = vpop.f32.mrb[31].mxu1 }
 0x4e7   : > { %v5356_v23 = vadd.f32 %v5349_v11, %v4411_v13 }
 0x4e8   : > { %v5381_v14 = vadd.f32 %v5370_v17, %v5355_v22  ;;  %5407 = sbr.rel (%p13345_p10) target bundleno = 1276 (0x4fc), region = 68 }
 0x4e9   : > { %v5382_v7 = vadd.f32 %v5374_v18, %v5356_v23 }
 0x4ea   : > { %vm5385_vm2 = vcmp.ge.f32.partialorder %v5381_v14, 0.0  ;;  %v5390_v43 = vmul.f32 %v5387_v52, %v5381_v14 }
 0x4eb   : > { %vm5386_vm3 = vcmp.ge.f32.partialorder %v5382_v7, 0.0  ;;  %v5391_v39 = vmul.f32 %v5387_v52, %v5382_v7 }
 0x4ec   : > { %v5394_v12 = vsel %vm5385_vm2, %v5381_v14, %v5390_v43 }
 0x4ed   : > { %5401 = vst [vmem:[%s5398_s13 + $0x10] sm:$0xff] %v5394_v12  ;;  %v5395_v6 = vsel %vm5386_vm3, %v5382_v7, %v5391_v39  ;;  %5436 = vst [vmem:[%s14141_s17 + $0x70] sm:$0xff] (!%p13345_p10), %v5394_v12 }
 0x4ee   : > { %5402 = vst [vmem:[%s5398_s13 + $0x18] sm:$0xff] %v5395_v6  ;;  %5437 = vst [vmem:[%s14141_s17 + $0x78] sm:$0xff] (!%p13345_p10), %v5395_v6 }
 0x4f5   : > { %v5408_v24 = vld [vmem:[#allocation3] sm:$0xff]  ;;  %v5409_v15 = vld [vmem:[#allocation3 + $0x8] sm:$0xff]  ;;  %v5410_v27 = vld [vmem:[#allocation3 + $0x10] sm:$0xff] }
 0x4f6   : > { %5412 = vst [vmem:[%s14141_s17] sm:$0xff] %v5408_v24  ;;  %5413 = vst [vmem:[%s14141_s17 + $0x8] sm:$0xff] %v5409_v15  ;;  %v5411_v28 = vld [vmem:[#allocation3 + $0x18] sm:$0xff]  ;;  %v5417_v29 = vld [vmem:[#allocation3 + $0x20] sm:$0xff] }
 0x4f7   : > { %5414 = vst [vmem:[%s14141_s17 + $0x10] sm:$0xff] %v5410_v27  ;;  %v5418_v63 = vld [vmem:[#allocation3 + $0x28] sm:$0xff]  ;;  %5415 = vst [vmem:[%s14141_s17 + $0x18] sm:$0xff] %v5411_v28  ;;  %v5419_v0 = vld [vmem:[#allocation3 + $0x30] sm:$0xff] }
 0x4f8   : > { %5421 = vst [vmem:[%s14141_s17 + $0x20] sm:$0xff] %v5417_v29  ;;  %5422 = vst [vmem:[%s14141_s17 + $0x28] sm:$0xff] %v5418_v63  ;;  %v5420_v30 = vld [vmem:[#allocation3 + $0x38] sm:$0xff]  ;;  %v5426_v31 = vld [vmem:[#allocation3 + $0x40] sm:$0xff] }
 0x4f9   : > { %5423 = vst [vmem:[%s14141_s17 + $0x30] sm:$0xff] %v5419_v0  ;;  %5424 = vst [vmem:[%s14141_s17 + $0x38] sm:$0xff] %v5420_v30  ;;  %v5427_v32 = vld [vmem:[#allocation3 + $0x48] sm:$0xff]  ;;  %v5428_v33 = vld [vmem:[#allocation3 + $0x50] sm:$0xff] }
 0x4fa   : > { %5430 = vst [vmem:[%s14141_s17 + $0x40] sm:$0xff] %v5426_v31  ;;  %v5429_v34 = vld [vmem:[#allocation3 + $0x58] sm:$0xff]  ;;  %5431 = vst [vmem:[%s14141_s17 + $0x48] sm:$0xff] %v5427_v32 }
 0x4fb   : > { %5432 = vst [vmem:[%s14141_s17 + $0x50] sm:$0xff] %v5428_v33  ;;  %5433 = vst [vmem:[%s14141_s17 + $0x58] sm:$0xff] %v5429_v34 }
 0x4fc PF: > { %p10058_p6 = scmp.ne.s32.totalorder %s14163_s14, 1 }
 0x4fd   : > { %v11447_v35 = vld [vmem:[%s12661_s0 + $0x404] ss:$16 sps:$4 sm:$0xff] (!%p10058_p6)   ;;  %v11451_v38 = vld [vmem:[%s12661_s0 + $0x400] ss:$16 sps:$4 sm:$0xff] (!%p10058_p6)   ;;  %s14142_s14 = sld [smem:[#allocation13_spill]] (!%p10058_p6) }
 0x4fe   : > { %5441 = sbr.rel (%p10058_p6) target bundleno = 2027 (0x7eb), region = 72  ;;  %v11449_v36 = vld [vmem:[%s12661_s0 + $0x604] ss:$16 sps:$4 sm:$0xff] (!%p10058_p6)   ;;  %6355 = vmatprep.subr.bf16.mxu0 (!%p10058_p6), %v11447_v35  ;;  %v11452_v13 = vld [vmem:[%s12661_s0 + $0x600] ss:$16 sps:$4 sm:$0xff] (!%p10058_p6)  }
 0x4ff   : > { %6396 = vmatprep.subr.bf16.mxu1 (!%p10058_p6), %v11449_v36  ;;  %v11453_v5 = vld [vmem:[%s12661_s0 + $0x424] ss:$16 sps:$4 sm:$0xff] (!%p10058_p6)   ;;  %6356 = vmatpush1.bf16.msra.mxu0 (!%p10058_p6), %v11451_v38  ;;  %v11457_v51 = vld [vmem:[%s12661_s0 + $0x420] ss:$16 sps:$4 sm:$0xff] (!%p10058_p6)  }
 0x500   : > { %6397 = vmatpush1.bf16.msra.mxu1 (!%p10058_p6), %v11452_v13  ;;  %v11455_v44 = vld [vmem:[%s12661_s0 + $0x624] ss:$16 sps:$4 sm:$0xff] (!%p10058_p6)   ;;  %6357 = vmatprep.subr.bf16.mxu0 (!%p10058_p6), %v11453_v5  ;;  %v11458_v54 = vld [vmem:[%s12661_s0 + $0x620] ss:$16 sps:$4 sm:$0xff] (!%p10058_p6)  }
 0x501   : > { %6398 = vmatprep.subr.bf16.mxu1 (!%p10058_p6), %v11455_v44  ;;  %v11459_v10 = vld [vmem:[%s12661_s0 + $0x444] ss:$16 sps:$4 sm:$0xff] (!%p10058_p6)   ;;  %v11463_v37 = vld [vmem:[%s12661_s0 + $0x440] ss:$16 sps:$4 sm:$0xff] (!%p10058_p6)  }
 0x502   : > { %v11461_v8 = vld [vmem:[%s12661_s0 + $0x644] ss:$16 sps:$4 sm:$0xff] (!%p10058_p6)   ;;  %v11464_v45 = vld [vmem:[%s12661_s0 + $0x640] ss:$16 sps:$4 sm:$0xff] (!%p10058_p6)   ;;  %v5580_v14 = vld [vmem:[#allocation3 + $0x28] sm:$0xff] (!%p10058_p6) }
 0x503   : > { %6358 = vmatpush1.bf16.msra.mxu0 (!%p10058_p6), %v11457_v51  ;;  %v11465_v46 = vld [vmem:[%s12661_s0 + $0x464] ss:$16 sps:$4 sm:$0xff] (!%p10058_p6)   ;;  %v11469_v21 = vld [vmem:[%s12661_s0 + $0x460] ss:$16 sps:$4 sm:$0xff] (!%p10058_p6)   ;;  %v13452_v39 = vpack.c.bf16 (!%p10058_p6), %v5580_v14, %v5580_v14  ;;  %v5582_v12 = vld [vmem:[#allocation3 + $0x38] sm:$0xff] (!%p10058_p6)  ;;  %p9259_p11 = scmp.eq.s32.totalorder (!%p10058_p6), %s14142_s14, 3 }
 0x504   : > { %6399 = vmatpush1.bf16.msra.mxu1 (!%p10058_p6), %v11458_v54  ;;  %6359 = vmatprep.subr.bf16.mxu0 (!%p10058_p6), %v11459_v10  ;;  %v11467_v40 = vld [vmem:[%s12661_s0 + $0x664] ss:$16 sps:$4 sm:$0xff] (!%p10058_p6)   ;;  %v11470_v41 = vld [vmem:[%s12661_s0 + $0x660] ss:$16 sps:$4 sm:$0xff] (!%p10058_p6)   ;;  %v5586_v24 = vpack.c.bf16 (!%p10058_p6), %v5582_v12, %v5582_v12  ;;  %v11545_v51 = vld [vmem:[%s12661_s0 + $0x40c] ss:$16 sps:$4 sm:$0xff] (!%p10058_p6)  }
 0x505   : > { %6400 = vmatprep.subr.bf16.mxu1 %v11461_v8  ;;  %v11471_v42 = vld [vmem:[%s12661_s0 + $0x484] ss:$16 sps:$4 sm:$0xff]   ;;  %v11475_v49 = vld [vmem:[%s12661_s0 + $0x480] ss:$16 sps:$4 sm:$0xff]   ;;  %6387 = vmatprep.mubr.bf16.mxu0 %v13452_v39  ;;  %v11548_v54 = vld [vmem:[%s12661_s0 + $0x60c] ss:$16 sps:$4 sm:$0xff]   ;;  %p14003_p3 = pnand %p9259_p11, %p313_p12 }
 0x506   : > { %v11473_v48 = vld [vmem:[%s12661_s0 + $0x684] ss:$16 sps:$4 sm:$0xff]   ;;  %v11476_v50 = vld [vmem:[%s12661_s0 + $0x680] ss:$16 sps:$4 sm:$0xff]   ;;  %6428 = vmatprep.mubr.bf16.mxu1 %v5586_v24  ;;  %v11597_v14 = vld [vmem:[%s12661_s0 + $0x528] ss:$16 sps:$4 sm:$0xff]  }
 0x507   : > { %6360 = vmatpush1.bf16.msra.mxu0 %v11463_v37  ;;  %v11477_v25 = vld [vmem:[%s12661_s0 + $0x4a4] ss:$16 sps:$4 sm:$0xff]   ;;  %v11481_v52 = vld [vmem:[%s12661_s0 + $0x4a0] ss:$16 sps:$4 sm:$0xff]   ;;  %v11543_v37 = vld [vmem:[%s12661_s0 + $0x408] ss:$16 sps:$4 sm:$0xff]  }
 0x508   : > { %6401 = vmatpush1.bf16.msra.mxu1 %v11464_v45  ;;  %6361 = vmatprep.subr.bf16.mxu0 %v11465_v46  ;;  %v11479_v26 = vld [vmem:[%s12661_s0 + $0x6a4] ss:$16 sps:$4 sm:$0xff]   ;;  %v11482_v53 = vld [vmem:[%s12661_s0 + $0x6a0] ss:$16 sps:$4 sm:$0xff]   ;;  %v11546_v45 = vld [vmem:[%s12661_s0 + $0x608] ss:$16 sps:$4 sm:$0xff]  }
 0x509   : > { %6402 = vmatprep.subr.bf16.mxu1 %v11467_v40  ;;  %v11483_v55 = vld [vmem:[%s12661_s0 + $0x4c4] ss:$16 sps:$4 sm:$0xff]   ;;  %v11487_v57 = vld [vmem:[%s12661_s0 + $0x4c0] ss:$16 sps:$4 sm:$0xff]   ;;  %v11551_v46 = vld [vmem:[%s12661_s0 + $0x42c] ss:$16 sps:$4 sm:$0xff]  }
 0x50a   : > { %v11485_v56 = vld [vmem:[%s12661_s0 + $0x6c4] ss:$16 sps:$4 sm:$0xff]   ;;  %v11488_v58 = vld [vmem:[%s12661_s0 + $0x6c0] ss:$16 sps:$4 sm:$0xff]   ;;  %v11554_v40 = vld [vmem:[%s12661_s0 + $0x62c] ss:$16 sps:$4 sm:$0xff]  }
 0x50b   : > { %6362 = vmatpush1.bf16.msra.mxu0 %v11469_v21  ;;  %v11489_v61 = vld [vmem:[%s12661_s0 + $0x4e4] ss:$16 sps:$4 sm:$0xff]   ;;  %v11493_v1 = vld [vmem:[%s12661_s0 + $0x4e0] ss:$16 sps:$4 sm:$0xff]   ;;  %v11549_v21 = vld [vmem:[%s12661_s0 + $0x428] ss:$16 sps:$4 sm:$0xff]  }
 0x50c   : > { %6403 = vmatpush1.bf16.msra.mxu1 %v11470_v41  ;;  %6363 = vmatprep.subr.bf16.mxu0 %v11471_v42  ;;  %v11491_v62 = vld [vmem:[%s12661_s0 + $0x6e4] ss:$16 sps:$4 sm:$0xff]   ;;  %v11494_v2 = vld [vmem:[%s12661_s0 + $0x6e0] ss:$16 sps:$4 sm:$0xff]   ;;  %v11552_v41 = vld [vmem:[%s12661_s0 + $0x628] ss:$16 sps:$4 sm:$0xff]  }
 0x50d   : > { %6404 = vmatprep.subr.bf16.mxu1 %v11473_v48  ;;  %v11495_v3 = vld [vmem:[%s12661_s0 + $0x504] ss:$16 sps:$4 sm:$0xff]   ;;  %v11499_v16 = vld [vmem:[%s12661_s0 + $0x500] ss:$16 sps:$4 sm:$0xff]   ;;  %v11557_v42 = vld [vmem:[%s12661_s0 + $0x44c] ss:$16 sps:$4 sm:$0xff]  }
 0x50e   : > { %v11497_v4 = vld [vmem:[%s12661_s0 + $0x704] ss:$16 sps:$4 sm:$0xff]   ;;  %v11500_v17 = vld [vmem:[%s12661_s0 + $0x700] ss:$16 sps:$4 sm:$0xff]   ;;  %v11560_v48 = vld [vmem:[%s12661_s0 + $0x64c] ss:$16 sps:$4 sm:$0xff]  }
 0x50f   : > { %6364 = vmatpush1.bf16.msra.mxu0 %v11475_v49  ;;  %v11501_v59 = vld [vmem:[%s12661_s0 + $0x524] ss:$16 sps:$4 sm:$0xff]   ;;  %v11505_v11 = vld [vmem:[%s12661_s0 + $0x520] ss:$16 sps:$4 sm:$0xff]   ;;  %v11555_v49 = vld [vmem:[%s12661_s0 + $0x448] ss:$16 sps:$4 sm:$0xff]  }
 0x510   : > { %6405 = vmatpush1.bf16.msra.mxu1 %v11476_v50  ;;  %6365 = vmatprep.subr.bf16.mxu0 %v11477_v25  ;;  %v11503_v60 = vld [vmem:[%s12661_s0 + $0x724] ss:$16 sps:$4 sm:$0xff]   ;;  %v11506_v18 = vld [vmem:[%s12661_s0 + $0x720] ss:$16 sps:$4 sm:$0xff]   ;;  %v11558_v50 = vld [vmem:[%s12661_s0 + $0x648] ss:$16 sps:$4 sm:$0xff]  }
 0x511   : > { %6406 = vmatprep.subr.bf16.mxu1 %v11479_v26  ;;  %v11507_v19 = vld [vmem:[%s12661_s0 + $0x544] ss:$16 sps:$4 sm:$0xff]   ;;  %v11511_v22 = vld [vmem:[%s12661_s0 + $0x540] ss:$16 sps:$4 sm:$0xff]   ;;  %v11563_v25 = vld [vmem:[%s12661_s0 + $0x46c] ss:$16 sps:$4 sm:$0xff]  }
 0x512   : > { %v11509_v20 = vld [vmem:[%s12661_s0 + $0x744] ss:$16 sps:$4 sm:$0xff]   ;;  %v11512_v47 = vld [vmem:[%s12661_s0 + $0x740] ss:$16 sps:$4 sm:$0xff]   ;;  %v11566_v26 = vld [vmem:[%s12661_s0 + $0x66c] ss:$16 sps:$4 sm:$0xff]  }
 0x513   : > { %6366 = vmatpush1.bf16.msra.mxu0 %v11481_v52  ;;  %v11513_v9 = vld [vmem:[%s12661_s0 + $0x564] ss:$16 sps:$4 sm:$0xff]   ;;  %v11517_v7 = vld [vmem:[%s12661_s0 + $0x560] ss:$16 sps:$4 sm:$0xff]   ;;  %v11561_v52 = vld [vmem:[%s12661_s0 + $0x468] ss:$16 sps:$4 sm:$0xff]  }
 0x514   : > { %6407 = vmatpush1.bf16.msra.mxu1 %v11482_v53  ;;  %6367 = vmatprep.subr.bf16.mxu0 %v11483_v55  ;;  %v11515_v23 = vld [vmem:[%s12661_s0 + $0x764] ss:$16 sps:$4 sm:$0xff]   ;;  %v11518_v43 = vld [vmem:[%s12661_s0 + $0x760] ss:$16 sps:$4 sm:$0xff]   ;;  %v11564_v53 = vld [vmem:[%s12661_s0 + $0x668] ss:$16 sps:$4 sm:$0xff]  }
 0x515   : > { %6408 = vmatprep.subr.bf16.mxu1 %v11485_v56  ;;  %v11519_v6 = vld [vmem:[%s12661_s0 + $0x584] ss:$16 sps:$4 sm:$0xff]   ;;  %v11523_v27 = vld [vmem:[%s12661_s0 + $0x580] ss:$16 sps:$4 sm:$0xff]   ;;  %v11569_v55 = vld [vmem:[%s12661_s0 + $0x48c] ss:$16 sps:$4 sm:$0xff]  }
 0x516   : > { %v11521_v15 = vld [vmem:[%s12661_s0 + $0x784] ss:$16 sps:$4 sm:$0xff]   ;;  %v11524_v28 = vld [vmem:[%s12661_s0 + $0x780] ss:$16 sps:$4 sm:$0xff]   ;;  %v11572_v56 = vld [vmem:[%s12661_s0 + $0x68c] ss:$16 sps:$4 sm:$0xff]  }
 0x517   : > { %6368 = vmatpush1.bf16.msra.mxu0 %v11487_v57  ;;  %v11525_v29 = vld [vmem:[%s12661_s0 + $0x5a4] ss:$16 sps:$4 sm:$0xff]   ;;  %v11529_v0 = vld [vmem:[%s12661_s0 + $0x5a0] ss:$16 sps:$4 sm:$0xff]   ;;  %v11567_v57 = vld [vmem:[%s12661_s0 + $0x488] ss:$16 sps:$4 sm:$0xff]  }
 0x518   : > { %6409 = vmatpush1.bf16.msra.mxu1 %v11488_v58  ;;  %6369 = vmatprep.subr.bf16.mxu0 %v11489_v61  ;;  %v11527_v63 = vld [vmem:[%s12661_s0 + $0x7a4] ss:$16 sps:$4 sm:$0xff]   ;;  %v11530_v30 = vld [vmem:[%s12661_s0 + $0x7a0] ss:$16 sps:$4 sm:$0xff]   ;;  %v11570_v58 = vld [vmem:[%s12661_s0 + $0x688] ss:$16 sps:$4 sm:$0xff]  }
 0x519   : > { %6410 = vmatprep.subr.bf16.mxu1 %v11491_v62  ;;  %v11531_v31 = vld [vmem:[%s12661_s0 + $0x5c4] ss:$16 sps:$4 sm:$0xff]   ;;  %v11535_v33 = vld [vmem:[%s12661_s0 + $0x5c0] ss:$16 sps:$4 sm:$0xff]   ;;  %v11575_v61 = vld [vmem:[%s12661_s0 + $0x4ac] ss:$16 sps:$4 sm:$0xff]  }
 0x51a   : > { %v11533_v32 = vld [vmem:[%s12661_s0 + $0x7c4] ss:$16 sps:$4 sm:$0xff]   ;;  %v11536_v34 = vld [vmem:[%s12661_s0 + $0x7c0] ss:$16 sps:$4 sm:$0xff]   ;;  %v11578_v62 = vld [vmem:[%s12661_s0 + $0x6ac] ss:$16 sps:$4 sm:$0xff]  }
 0x51b   : > { %6370 = vmatpush1.bf16.msra.mxu0 %v11493_v1  ;;  %v11537_v35 = vld [vmem:[%s12661_s0 + $0x5e4] ss:$16 sps:$4 sm:$0xff]   ;;  %v11541_v38 = vld [vmem:[%s12661_s0 + $0x5e0] ss:$16 sps:$4 sm:$0xff]   ;;  %v11573_v1 = vld [vmem:[%s12661_s0 + $0x4a8] ss:$16 sps:$4 sm:$0xff]  }
 0x51c   : > { %6411 = vmatpush1.bf16.msra.mxu1 %v11494_v2  ;;  %6371 = vmatprep.subr.bf16.mxu0 %v11495_v3  ;;  %v11539_v36 = vld [vmem:[%s12661_s0 + $0x7e4] ss:$16 sps:$4 sm:$0xff]   ;;  %v11542_v13 = vld [vmem:[%s12661_s0 + $0x7e0] ss:$16 sps:$4 sm:$0xff]   ;;  %v11576_v2 = vld [vmem:[%s12661_s0 + $0x6a8] ss:$16 sps:$4 sm:$0xff]  }
 0x51d   : > { %6412 = vmatprep.subr.bf16.mxu1 %v11497_v4  ;;  %v5579_v5 = vld [vmem:[#allocation3 + $0x20] sm:$0xff]  ;;  %v5581_v44 = vld [vmem:[#allocation3 + $0x30] sm:$0xff]  ;;  %v11581_v3 = vld [vmem:[%s12661_s0 + $0x4cc] ss:$16 sps:$4 sm:$0xff]   ;;  %s10576_s22 = sshll.u32 %s14142_s14, 5  ;;  %s14144_s17 = sld [smem:[#allocation19_spill]] (!%p14003_p3) }
 0x51e   : > { %v13473_v10 = vpack.c.bf16 %v5579_v5, %v5579_v5  ;;  %v13475_v8 = vpack.c.bf16 %v5581_v44, %v5581_v44  ;;  %v11584_v4 = vld [vmem:[%s12661_s0 + $0x6cc] ss:$16 sps:$4 sm:$0xff]   ;;  %v11603_v12 = vld [vmem:[%s12661_s0 + $0x548] ss:$16 sps:$4 sm:$0xff]   ;;  %s9254_s28 = scalar_lea.vmem [#allocation2], %s10576_s22 }
 0x51f   : > { %6372 = vmatpush1.bf16.msra.mxu0 %v11499_v16  ;;  %v11579_v16 = vld [vmem:[%s12661_s0 + $0x4c8] ss:$16 sps:$4 sm:$0xff]   ;;  %v11635_v5 = vld [vmem:[%s12661_s0 + $0x5ec] ss:$16 sps:$4 sm:$0xff]  }
 0x520   : > { %6413 = vmatpush1.bf16.msra.mxu1 %v11500_v17  ;;  %6373 = vmatprep.subr.bf16.mxu0 %v11501_v59  ;;  %v11582_v17 = vld [vmem:[%s12661_s0 + $0x6c8] ss:$16 sps:$4 sm:$0xff]   ;;  %v11587_v59 = vld [vmem:[%s12661_s0 + $0x4ec] ss:$16 sps:$4 sm:$0xff]  }
 0x521   : > { %6414 = vmatprep.subr.bf16.mxu1 %v11503_v60  ;;  %v11590_v60 = vld [vmem:[%s12661_s0 + $0x6ec] ss:$16 sps:$4 sm:$0xff]  }
 0x522   : > { %v11638_v44 = vld [vmem:[%s12661_s0 + $0x7ec] ss:$16 sps:$4 sm:$0xff]  }
 0x523   : > { %6374 = vmatpush1.bf16.msra.mxu0 %v11505_v11  ;;  %v11585_v11 = vld [vmem:[%s12661_s0 + $0x4e8] ss:$16 sps:$4 sm:$0xff]  }
 0x524   : > { %6415 = vmatpush1.bf16.msra.mxu1 %v11506_v18  ;;  %6375 = vmatprep.subr.bf16.mxu0 %v11507_v19  ;;  %v11588_v18 = vld [vmem:[%s12661_s0 + $0x6e8] ss:$16 sps:$4 sm:$0xff]   ;;  %v11593_v19 = vld [vmem:[%s12661_s0 + $0x50c] ss:$16 sps:$4 sm:$0xff]  }
 0x525   : > { %6416 = vmatprep.subr.bf16.mxu1 %v11509_v20  ;;  %v11596_v20 = vld [vmem:[%s12661_s0 + $0x70c] ss:$16 sps:$4 sm:$0xff]  }
 0x527   : > { %6376 = vmatpush1.bf16.msra.mxu0 %v11511_v22  ;;  %v11591_v22 = vld [vmem:[%s12661_s0 + $0x508] ss:$16 sps:$4 sm:$0xff]  }
 0x528   : > { %6417 = vmatpush1.bf16.msra.mxu1 %v11512_v47  ;;  %6377 = vmatprep.subr.bf16.mxu0 %v11513_v9  ;;  %v11594_v47 = vld [vmem:[%s12661_s0 + $0x708] ss:$16 sps:$4 sm:$0xff]   ;;  %v11599_v9 = vld [vmem:[%s12661_s0 + $0x52c] ss:$16 sps:$4 sm:$0xff]  }
 0x529   : > { %6418 = vmatprep.subr.bf16.mxu1 %v11515_v23  ;;  %v11602_v23 = vld [vmem:[%s12661_s0 + $0x72c] ss:$16 sps:$4 sm:$0xff]  }
 0x52b   : > { %6378 = vmatpush1.bf16.msra.mxu0 %v11517_v7  ;;  %v11600_v7 = vld [vmem:[%s12661_s0 + $0x728] ss:$16 sps:$4 sm:$0xff]  }
 0x52c   : > { %6419 = vmatpush1.bf16.msra.mxu1 %v11518_v43  ;;  %6379 = vmatprep.subr.bf16.mxu0 %v11519_v6  ;;  %v11605_v43 = vld [vmem:[%s12661_s0 + $0x54c] ss:$16 sps:$4 sm:$0xff]   ;;  %v11606_v6 = vld [vmem:[%s12661_s0 + $0x748] ss:$16 sps:$4 sm:$0xff]  }
 0x52d   : > { %6420 = vmatprep.subr.bf16.mxu1 %v11521_v15  ;;  %v11614_v15 = vld [vmem:[%s12661_s0 + $0x76c] ss:$16 sps:$4 sm:$0xff]  }
 0x52f   : > { %6380 = vmatpush1.bf16.msra.mxu0 %v11523_v27  ;;  %v11609_v27 = vld [vmem:[%s12661_s0 + $0x568] ss:$16 sps:$4 sm:$0xff]  }
 0x530   : > { %6421 = vmatpush1.bf16.msra.mxu1 %v11524_v28  ;;  %6381 = vmatprep.subr.bf16.mxu0 %v11525_v29  ;;  %v11612_v28 = vld [vmem:[%s12661_s0 + $0x768] ss:$16 sps:$4 sm:$0xff]   ;;  %v11617_v29 = vld [vmem:[%s12661_s0 + $0x58c] ss:$16 sps:$4 sm:$0xff]  }
 0x531   : > { %6422 = vmatprep.subr.bf16.mxu1 %v11527_v63  ;;  %v11620_v63 = vld [vmem:[%s12661_s0 + $0x78c] ss:$16 sps:$4 sm:$0xff]  }
 0x533   : > { %6382 = vmatpush1.bf16.msra.mxu0 %v11529_v0  ;;  %v11615_v0 = vld [vmem:[%s12661_s0 + $0x588] ss:$16 sps:$4 sm:$0xff]  }
 0x534   : > { %6423 = vmatpush1.bf16.msra.mxu1 %v11530_v30  ;;  %6383 = vmatprep.subr.bf16.mxu0 %v11531_v31  ;;  %v11618_v30 = vld [vmem:[%s12661_s0 + $0x788] ss:$16 sps:$4 sm:$0xff]   ;;  %v11623_v31 = vld [vmem:[%s12661_s0 + $0x5ac] ss:$16 sps:$4 sm:$0xff]  }
 0x535   : > { %6424 = vmatprep.subr.bf16.mxu1 %v11533_v32  ;;  %v11626_v32 = vld [vmem:[%s12661_s0 + $0x7ac] ss:$16 sps:$4 sm:$0xff]  }
 0x537   : > { %6384 = vmatpush1.bf16.msra.mxu0 %v11535_v33  ;;  %v11621_v33 = vld [vmem:[%s12661_s0 + $0x5a8] ss:$16 sps:$4 sm:$0xff]  }
 0x538   : > { %6425 = vmatpush1.bf16.msra.mxu1 %v11536_v34  ;;  %6385 = vmatprep.subr.bf16.mxu0 %v11537_v35  ;;  %v11624_v34 = vld [vmem:[%s12661_s0 + $0x7a8] ss:$16 sps:$4 sm:$0xff]   ;;  %v11629_v35 = vld [vmem:[%s12661_s0 + $0x5cc] ss:$16 sps:$4 sm:$0xff]  }
 0x539   : > { %6426 = vmatprep.subr.bf16.mxu1 %v11539_v36  ;;  %v11632_v36 = vld [vmem:[%s12661_s0 + $0x7cc] ss:$16 sps:$4 sm:$0xff]  }
 0x53b   : > { %6386 = vmatpush1.bf16.msra.mxu0 %v11541_v38  ;;  %v11627_v38 = vld [vmem:[%s12661_s0 + $0x5c8] ss:$16 sps:$4 sm:$0xff]  }
 0x53c   : > { %6427 = vmatpush1.bf16.msra.mxu1 %v11542_v13  ;;  %6437 = vmatprep.subr.bf16.mxu0 %v11545_v51  ;;  %v11630_v13 = vld [vmem:[%s12661_s0 + $0x7c8] ss:$16 sps:$4 sm:$0xff]  }
 0x53d   : > { %6478 = vmatprep.subr.bf16.mxu1 %v11548_v54  ;;  %v11633_v51 = vld [vmem:[%s12661_s0 + $0x5e8] ss:$16 sps:$4 sm:$0xff]  }
 0x53e   : > { %6388 = vmatmul.mubr.bf16.vlgmr.msra.gmra.mrb[0].mxu0 %v13473_v10  ;;  %v11636_v54 = vld [vmem:[%s12661_s0 + $0x7e8] ss:$16 sps:$4 sm:$0xff]  }
 0x53f   : > { %6429 = vmatmul.mubr.bf16.vlgmr.msra.gmra.mrb[0].mxu1 %v13475_v8  ;;  %6438 = vmatpush1.bf16.msra.mxu0 %v11543_v37  ;;  %v11641_v37 = vld [vmem:[%s12661_s0 + $0x4] ss:$16 sps:$4 sm:$0xff]  }
 0x540   : > { %6479 = vmatpush1.bf16.msra.mxu1 %v11546_v45  ;;  %6439 = vmatprep.subr.bf16.mxu0 %v11551_v46  ;;  %v11644_v45 = vld [vmem:[%s12661_s0 + $0x204] ss:$16 sps:$4 sm:$0xff]   ;;  %v11639_v46 = vld [vmem:[%s12661_s0] ss:$16 sps:$4 sm:$0xff]  }
 0x541   : > { %6480 = vmatprep.subr.bf16.mxu1 %v11554_v40  ;;  %6469 = vmatprep.mubr.bf16.mxu0 %v13452_v39  ;;  %v11608_v39 = vld [vmem:[%s12661_s0 + $0x74c] ss:$16 sps:$4 sm:$0xff]   ;;  %v11642_v40 = vld [vmem:[%s12661_s0 + $0x200] ss:$16 sps:$4 sm:$0xff]  }
 0x542   : > { %6510 = vmatprep.mubr.bf16.mxu1 %v5586_v24  ;;  %v11611_v24 = vld [vmem:[%s12661_s0 + $0x56c] ss:$16 sps:$4 sm:$0xff]  }
 0x543   : > { %6440 = vmatpush1.bf16.msra.mxu0 %v11549_v21  ;;  %v11647_v21 = vld [vmem:[%s12661_s0 + $0x24] ss:$16 sps:$4 sm:$0xff]  }
 0x544   : > { %6481 = vmatpush1.bf16.msra.mxu1 %v11552_v41  ;;  %6441 = vmatprep.subr.bf16.mxu0 %v11557_v42  ;;  %v11650_v41 = vld [vmem:[%s12661_s0 + $0x224] ss:$16 sps:$4 sm:$0xff]   ;;  %v5443_v42 = vld [vmem:[#allocation3 + $0x8] sm:$0xff] }
 0x545   : > { %6482 = vmatprep.subr.bf16.mxu1 %v11560_v48  ;;  %v5445_v48 = vld [vmem:[#allocation3 + $0x18] sm:$0xff] }
 0x547   : > { %6442 = vmatpush1.bf16.msra.mxu0 %v11555_v49  ;;  %v13548_v49 = vpack.c.bf16 %v5443_v42, %v5443_v42  ;;  %v11737_v42 = vld [vmem:[%s12661_s0 + $0xc] ss:$16 sps:$4 sm:$0xff]  }
 0x548   : > { %6483 = vmatpush1.bf16.msra.mxu1 %v11558_v50  ;;  %6443 = vmatprep.subr.bf16.mxu0 %v11563_v25  ;;  %v13550_v50 = vpack.c.bf16 %v5445_v48, %v5445_v48  ;;  %v11645_v25 = vld [vmem:[%s12661_s0 + $0x20] ss:$16 sps:$4 sm:$0xff]   ;;  %v11740_v48 = vld [vmem:[%s12661_s0 + $0x20c] ss:$16 sps:$4 sm:$0xff]  }
 0x549   : > { %6484 = vmatprep.subr.bf16.mxu1 %v11566_v26  ;;  %v11648_v26 = vld [vmem:[%s12661_s0 + $0x220] ss:$16 sps:$4 sm:$0xff]  }
 0x54b   : > { %6444 = vmatpush1.bf16.msra.mxu0 %v11561_v52  ;;  %v11653_v52 = vld [vmem:[%s12661_s0 + $0x44] ss:$16 sps:$4 sm:$0xff]  }
 0x54c   : > { %6485 = vmatpush1.bf16.msra.mxu1 %v11564_v53  ;;  %6445 = vmatprep.subr.bf16.mxu0 %v11569_v55  ;;  %v11656_v53 = vld [vmem:[%s12661_s0 + $0x244] ss:$16 sps:$4 sm:$0xff]  }
 0x54d   : > { %6486 = vmatprep.subr.bf16.mxu1 %v11572_v56  ;;  %v11659_v55 = vld [vmem:[%s12661_s0 + $0x64] ss:$16 sps:$4 sm:$0xff]  }
 0x54e   : > { %v11662_v56 = vld [vmem:[%s12661_s0 + $0x264] ss:$16 sps:$4 sm:$0xff]  }
 0x54f   : > { %6446 = vmatpush1.bf16.msra.mxu0 %v11567_v57  ;;  %v11657_v57 = vld [vmem:[%s12661_s0 + $0x60] ss:$16 sps:$4 sm:$0xff]  }
 0x550   : > { %6487 = vmatpush1.bf16.msra.mxu1 %v11570_v58  ;;  %6447 = vmatprep.subr.bf16.mxu0 %v11575_v61  ;;  %v11660_v58 = vld [vmem:[%s12661_s0 + $0x260] ss:$16 sps:$4 sm:$0xff]   ;;  %v11665_v61 = vld [vmem:[%s12661_s0 + $0x84] ss:$16 sps:$4 sm:$0xff]  }
 0x551   : > { %6488 = vmatprep.subr.bf16.mxu1 %v11578_v62  ;;  %v11668_v62 = vld [vmem:[%s12661_s0 + $0x284] ss:$16 sps:$4 sm:$0xff]  }
 0x553   : > { %6448 = vmatpush1.bf16.msra.mxu0 %v11573_v1  ;;  %v11663_v1 = vld [vmem:[%s12661_s0 + $0x80] ss:$16 sps:$4 sm:$0xff]  }
 0x554   : > { %6489 = vmatpush1.bf16.msra.mxu1 %v11576_v2  ;;  %6449 = vmatprep.subr.bf16.mxu0 %v11581_v3  ;;  %v11666_v2 = vld [vmem:[%s12661_s0 + $0x280] ss:$16 sps:$4 sm:$0xff]   ;;  %v11671_v3 = vld [vmem:[%s12661_s0 + $0xa4] ss:$16 sps:$4 sm:$0xff]  }
 0x555   : > { %6490 = vmatprep.subr.bf16.mxu1 %v11584_v4  ;;  %v11674_v4 = vld [vmem:[%s12661_s0 + $0x2a4] ss:$16 sps:$4 sm:$0xff]  }
 0x557   : > { %6450 = vmatpush1.bf16.msra.mxu0 %v11579_v16  ;;  %v11669_v16 = vld [vmem:[%s12661_s0 + $0xa0] ss:$16 sps:$4 sm:$0xff]  }
 0x558   : > { %6491 = vmatpush1.bf16.msra.mxu1 %v11582_v17  ;;  %6451 = vmatprep.subr.bf16.mxu0 %v11587_v59  ;;  %v11672_v17 = vld [vmem:[%s12661_s0 + $0x2a0] ss:$16 sps:$4 sm:$0xff]   ;;  %v11677_v59 = vld [vmem:[%s12661_s0 + $0xc4] ss:$16 sps:$4 sm:$0xff]  }
 0x559   : > { %6492 = vmatprep.subr.bf16.mxu1 %v11590_v60  ;;  %v11680_v60 = vld [vmem:[%s12661_s0 + $0x2c4] ss:$16 sps:$4 sm:$0xff]  }
 0x55b   : > { %6452 = vmatpush1.bf16.msra.mxu0 %v11585_v11  ;;  %v11675_v11 = vld [vmem:[%s12661_s0 + $0xc0] ss:$16 sps:$4 sm:$0xff]  }
 0x55c   : > { %6493 = vmatpush1.bf16.msra.mxu1 %v11588_v18  ;;  %6453 = vmatprep.subr.bf16.mxu0 %v11593_v19  ;;  %v11678_v18 = vld [vmem:[%s12661_s0 + $0x2c0] ss:$16 sps:$4 sm:$0xff]   ;;  %v11683_v19 = vld [vmem:[%s12661_s0 + $0xe4] ss:$16 sps:$4 sm:$0xff]  }
 0x55d   : > { %6494 = vmatprep.subr.bf16.mxu1 %v11596_v20  ;;  %v11686_v20 = vld [vmem:[%s12661_s0 + $0x2e4] ss:$16 sps:$4 sm:$0xff]  }
 0x55f   : > { %6454 = vmatpush1.bf16.msra.mxu0 %v11591_v22  ;;  %v11681_v22 = vld [vmem:[%s12661_s0 + $0xe0] ss:$16 sps:$4 sm:$0xff]  }
 0x560   : > { %6495 = vmatpush1.bf16.msra.mxu1 %v11594_v47  ;;  %6455 = vmatprep.subr.bf16.mxu0 %v11599_v9  ;;  %v11684_v47 = vld [vmem:[%s12661_s0 + $0x2e0] ss:$16 sps:$4 sm:$0xff]   ;;  %v11689_v9 = vld [vmem:[%s12661_s0 + $0x104] ss:$16 sps:$4 sm:$0xff]  }
 0x561   : > { %6496 = vmatprep.subr.bf16.mxu1 %v11602_v23  ;;  %v11692_v23 = vld [vmem:[%s12661_s0 + $0x304] ss:$16 sps:$4 sm:$0xff]  }
 0x563   : > { %6456 = vmatpush1.bf16.msra.mxu0 %v11597_v14  ;;  %v11687_v14 = vld [vmem:[%s12661_s0 + $0x100] ss:$16 sps:$4 sm:$0xff]  }
 0x564   : > { %6497 = vmatpush1.bf16.msra.mxu1 %v11600_v7  ;;  %6457 = vmatprep.subr.bf16.mxu0 %v11605_v43  ;;  %v11690_v7 = vld [vmem:[%s12661_s0 + $0x300] ss:$16 sps:$4 sm:$0xff]   ;;  %v11695_v43 = vld [vmem:[%s12661_s0 + $0x124] ss:$16 sps:$4 sm:$0xff]  }
 0x565   : > { %6498 = vmatprep.subr.bf16.mxu1 %v11608_v39  ;;  %v11698_v39 = vld [vmem:[%s12661_s0 + $0x324] ss:$16 sps:$4 sm:$0xff]  }
 0x567   : > { %6458 = vmatpush1.bf16.msra.mxu0 %v11603_v12  ;;  %v11693_v12 = vld [vmem:[%s12661_s0 + $0x120] ss:$16 sps:$4 sm:$0xff]  }
 0x568   : > { %6499 = vmatpush1.bf16.msra.mxu1 %v11606_v6  ;;  %6459 = vmatprep.subr.bf16.mxu0 %v11611_v24  ;;  %v11696_v6 = vld [vmem:[%s12661_s0 + $0x320] ss:$16 sps:$4 sm:$0xff]   ;;  %v11701_v24 = vld [vmem:[%s12661_s0 + $0x144] ss:$16 sps:$4 sm:$0xff]  }
 0x569   : > { %6500 = vmatprep.subr.bf16.mxu1 %v11614_v15  ;;  %v11704_v15 = vld [vmem:[%s12661_s0 + $0x344] ss:$16 sps:$4 sm:$0xff]  }
 0x56b   : > { %6460 = vmatpush1.bf16.msra.mxu0 %v11609_v27  ;;  %v11699_v27 = vld [vmem:[%s12661_s0 + $0x140] ss:$16 sps:$4 sm:$0xff]  }
 0x56c   : > { %6501 = vmatpush1.bf16.msra.mxu1 %v11612_v28  ;;  %6461 = vmatprep.subr.bf16.mxu0 %v11617_v29  ;;  %v11702_v28 = vld [vmem:[%s12661_s0 + $0x340] ss:$16 sps:$4 sm:$0xff]   ;;  %v11707_v29 = vld [vmem:[%s12661_s0 + $0x164] ss:$16 sps:$4 sm:$0xff]  }
 0x56d   : > { %6502 = vmatprep.subr.bf16.mxu1 %v11620_v63  ;;  %v11710_v63 = vld [vmem:[%s12661_s0 + $0x364] ss:$16 sps:$4 sm:$0xff]  }
 0x56f   : > { %6462 = vmatpush1.bf16.msra.mxu0 %v11615_v0  ;;  %v11705_v0 = vld [vmem:[%s12661_s0 + $0x160] ss:$16 sps:$4 sm:$0xff]  }
 0x570   : > { %6503 = vmatpush1.bf16.msra.mxu1 %v11618_v30  ;;  %6463 = vmatprep.subr.bf16.mxu0 %v11623_v31  ;;  %v11708_v30 = vld [vmem:[%s12661_s0 + $0x360] ss:$16 sps:$4 sm:$0xff]   ;;  %v11713_v31 = vld [vmem:[%s12661_s0 + $0x184] ss:$16 sps:$4 sm:$0xff]  }
 0x571   : > { %6504 = vmatprep.subr.bf16.mxu1 %v11626_v32  ;;  %v11716_v32 = vld [vmem:[%s12661_s0 + $0x384] ss:$16 sps:$4 sm:$0xff]  }
 0x573   : > { %6464 = vmatpush1.bf16.msra.mxu0 %v11621_v33  ;;  %v11711_v33 = vld [vmem:[%s12661_s0 + $0x180] ss:$16 sps:$4 sm:$0xff]  }
 0x574   : > { %6505 = vmatpush1.bf16.msra.mxu1 %v11624_v34  ;;  %6465 = vmatprep.subr.bf16.mxu0 %v11629_v35  ;;  %v11714_v34 = vld [vmem:[%s12661_s0 + $0x380] ss:$16 sps:$4 sm:$0xff]   ;;  %v11719_v35 = vld [vmem:[%s12661_s0 + $0x1a4] ss:$16 sps:$4 sm:$0xff]  }
 0x575   : > { %6506 = vmatprep.subr.bf16.mxu1 %v11632_v36  ;;  %v11722_v36 = vld [vmem:[%s12661_s0 + $0x3a4] ss:$16 sps:$4 sm:$0xff]  }
 0x577   : > { %6466 = vmatpush1.bf16.msra.mxu0 %v11627_v38  ;;  %v11717_v38 = vld [vmem:[%s12661_s0 + $0x1a0] ss:$16 sps:$4 sm:$0xff]  }
 0x578   : > { %6507 = vmatpush1.bf16.msra.mxu1 %v11630_v13  ;;  %6467 = vmatprep.subr.bf16.mxu0 %v11635_v5  ;;  %v11720_v13 = vld [vmem:[%s12661_s0 + $0x3a0] ss:$16 sps:$4 sm:$0xff]   ;;  %v11725_v5 = vld [vmem:[%s12661_s0 + $0x1c4] ss:$16 sps:$4 sm:$0xff]  }
 0x579   : > { %6508 = vmatprep.subr.bf16.mxu1 %v11638_v44  ;;  %v11728_v44 = vld [vmem:[%s12661_s0 + $0x3c4] ss:$16 sps:$4 sm:$0xff]  }
 0x57b   : > { %6468 = vmatpush1.bf16.msra.mxu0 %v11633_v51  ;;  %v11723_v51 = vld [vmem:[%s12661_s0 + $0x1c0] ss:$16 sps:$4 sm:$0xff]  }
 0x57c   : > { %6509 = vmatpush1.bf16.msra.mxu1 %v11636_v54  ;;  %7159 = vmatprep.subr.bf16.mxu0 %v11641_v37  ;;  %v11726_v54 = vld [vmem:[%s12661_s0 + $0x3c0] ss:$16 sps:$4 sm:$0xff]   ;;  %v11731_v37 = vld [vmem:[%s12661_s0 + $0x1e4] ss:$16 sps:$4 sm:$0xff]  }
 0x57d   : > { %7200 = vmatprep.subr.bf16.mxu1 %v11644_v45  ;;  %v11734_v45 = vld [vmem:[%s12661_s0 + $0x3e4] ss:$16 sps:$4 sm:$0xff]  }
 0x57e   : > { %6470 = vmatmul.mubr.bf16.vlgmr.msra.gmra.mrb[4].mxu0 %v13473_v10  ;;  %v11651_v10 = vld [vmem:[%s12661_s0 + $0x40] ss:$16 sps:$4 sm:$0xff]  }
 0x57f   : > { %6511 = vmatmul.mubr.bf16.vlgmr.msra.gmra.mrb[4].mxu1 %v13475_v8  ;;  %7160 = vmatpush1.bf16.msra.mxu0 %v11639_v46  ;;  %v11654_v8 = vld [vmem:[%s12661_s0 + $0x240] ss:$16 sps:$4 sm:$0xff]  }
 0x580   : > { %7201 = vmatpush1.bf16.msra.mxu1 %v11642_v40  ;;  %7161 = vmatprep.subr.bf16.mxu0 %v11647_v21  ;;  %v11729_v46 = vld [vmem:[%s12661_s0 + $0x1e0] ss:$16 sps:$4 sm:$0xff]  }
 0x581   : > { %7202 = vmatprep.subr.bf16.mxu1 %v11650_v41  ;;  %7191 = vmatprep.mubr.bf16.mxu0 %v13548_v49  ;;  %v11732_v40 = vld [vmem:[%s12661_s0 + $0x3e0] ss:$16 sps:$4 sm:$0xff]  }
 0x582   : > { %7232 = vmatprep.mubr.bf16.mxu1 %v13550_v50  ;;  %v5442_v21 = vld [vmem:[#allocation3] sm:$0xff]  ;;  %v5444_v41 = vld [vmem:[#allocation3 + $0x10] sm:$0xff] }
 0x583   : > { %7162 = vmatpush1.bf16.msra.mxu0 %v11645_v25  ;;  %v13616_v25 = vpack.c.bf16 %v5442_v21, %v5442_v21  ;;  %v11827_v21 = vld [vmem:[%s12661_s0 + $0x1ec] ss:$16 sps:$4 sm:$0xff]  }
 0x584   : > { %7203 = vmatpush1.bf16.msra.mxu1 %v11648_v26  ;;  %7163 = vmatprep.subr.bf16.mxu0 %v11653_v52  ;;  %v13618_v26 = vpack.c.bf16 %v5444_v41, %v5444_v41  ;;  %v11735_v52 = vld [vmem:[%s12661_s0 + $0x8] ss:$16 sps:$4 sm:$0xff]   ;;  %v11830_v41 = vld [vmem:[%s12661_s0 + $0x3ec] ss:$16 sps:$4 sm:$0xff]  }
 0x585   : > { %7204 = vmatprep.subr.bf16.mxu1 %v11656_v53  ;;  %v11738_v53 = vld [vmem:[%s12661_s0 + $0x208] ss:$16 sps:$4 sm:$0xff]  }
 0x587   : > { %7164 = vmatpush1.bf16.msra.mxu0 %v11651_v10  ;;  %v11743_v10 = vld [vmem:[%s12661_s0 + $0x2c] ss:$16 sps:$4 sm:$0xff]  }
 0x588   : > { %7205 = vmatpush1.bf16.msra.mxu1 %v11654_v8  ;;  %7165 = vmatprep.subr.bf16.mxu0 %v11659_v55  ;;  %v11746_v8 = vld [vmem:[%s12661_s0 + $0x22c] ss:$16 sps:$4 sm:$0xff]   ;;  %v11741_v55 = vld [vmem:[%s12661_s0 + $0x28] ss:$16 sps:$4 sm:$0xff]  }
 0x589   : > { %7206 = vmatprep.subr.bf16.mxu1 %v11662_v56  ;;  %v11744_v56 = vld [vmem:[%s12661_s0 + $0x228] ss:$16 sps:$4 sm:$0xff]  }
 0x58b   : > { %7166 = vmatpush1.bf16.msra.mxu0 %v11657_v57  ;;  %v11749_v57 = vld [vmem:[%s12661_s0 + $0x4c] ss:$16 sps:$4 sm:$0xff]  }
 0x58c   : > { %7207 = vmatpush1.bf16.msra.mxu1 %v11660_v58  ;;  %7167 = vmatprep.subr.bf16.mxu0 %v11665_v61  ;;  %v11752_v58 = vld [vmem:[%s12661_s0 + $0x24c] ss:$16 sps:$4 sm:$0xff]   ;;  %v11747_v61 = vld [vmem:[%s12661_s0 + $0x48] ss:$16 sps:$4 sm:$0xff]  }
 0x58d   : > { %7208 = vmatprep.subr.bf16.mxu1 %v11668_v62  ;;  %v11750_v62 = vld [vmem:[%s12661_s0 + $0x248] ss:$16 sps:$4 sm:$0xff]  }
 0x58f   : > { %7168 = vmatpush1.bf16.msra.mxu0 %v11663_v1  ;;  %v11755_v1 = vld [vmem:[%s12661_s0 + $0x6c] ss:$16 sps:$4 sm:$0xff]  }
 0x590   : > { %7209 = vmatpush1.bf16.msra.mxu1 %v11666_v2  ;;  %7169 = vmatprep.subr.bf16.mxu0 %v11671_v3  ;;  %v11758_v2 = vld [vmem:[%s12661_s0 + $0x26c] ss:$16 sps:$4 sm:$0xff]   ;;  %v11753_v3 = vld [vmem:[%s12661_s0 + $0x68] ss:$16 sps:$4 sm:$0xff]  }
 0x591   : > { %7210 = vmatprep.subr.bf16.mxu1 %v11674_v4  ;;  %v11756_v4 = vld [vmem:[%s12661_s0 + $0x268] ss:$16 sps:$4 sm:$0xff]  }
 0x593   : > { %7170 = vmatpush1.bf16.msra.mxu0 %v11669_v16  ;;  %v11759_v16 = vld [vmem:[%s12661_s0 + $0x88] ss:$16 sps:$4 sm:$0xff]  }
 0x594   : > { %7211 = vmatpush1.bf16.msra.mxu1 %v11672_v17  ;;  %7171 = vmatprep.subr.bf16.mxu0 %v11677_v59  ;;  %v11762_v17 = vld [vmem:[%s12661_s0 + $0x288] ss:$16 sps:$4 sm:$0xff]   ;;  %v11767_v59 = vld [vmem:[%s12661_s0 + $0xac] ss:$16 sps:$4 sm:$0xff]  }
 0x595   : > { %7212 = vmatprep.subr.bf16.mxu1 %v11680_v60  ;;  %v11770_v60 = vld [vmem:[%s12661_s0 + $0x2ac] ss:$16 sps:$4 sm:$0xff]  }
 0x597   : > { %7172 = vmatpush1.bf16.msra.mxu0 %v11675_v11  ;;  %v11765_v11 = vld [vmem:[%s12661_s0 + $0xa8] ss:$16 sps:$4 sm:$0xff]  }
 0x598   : > { %7213 = vmatpush1.bf16.msra.mxu1 %v11678_v18  ;;  %7173 = vmatprep.subr.bf16.mxu0 %v11683_v19  ;;  %v11768_v18 = vld [vmem:[%s12661_s0 + $0x2a8] ss:$16 sps:$4 sm:$0xff]   ;;  %v11773_v19 = vld [vmem:[%s12661_s0 + $0xcc] ss:$16 sps:$4 sm:$0xff]  }
 0x599   : > { %7214 = vmatprep.subr.bf16.mxu1 %v11686_v20  ;;  %v11776_v20 = vld [vmem:[%s12661_s0 + $0x2cc] ss:$16 sps:$4 sm:$0xff]  }
 0x59b   : > { %7174 = vmatpush1.bf16.msra.mxu0 %v11681_v22  ;;  %v11771_v22 = vld [vmem:[%s12661_s0 + $0xc8] ss:$16 sps:$4 sm:$0xff]  }
 0x59c   : > { %7215 = vmatpush1.bf16.msra.mxu1 %v11684_v47  ;;  %7175 = vmatprep.subr.bf16.mxu0 %v11689_v9  ;;  %v11774_v47 = vld [vmem:[%s12661_s0 + $0x2c8] ss:$16 sps:$4 sm:$0xff]   ;;  %v11779_v9 = vld [vmem:[%s12661_s0 + $0xec] ss:$16 sps:$4 sm:$0xff]  }
 0x59d   : > { %7216 = vmatprep.subr.bf16.mxu1 %v11692_v23  ;;  %v11782_v23 = vld [vmem:[%s12661_s0 + $0x2ec] ss:$16 sps:$4 sm:$0xff]  }
 0x59f   : > { %7176 = vmatpush1.bf16.msra.mxu0 %v11687_v14  ;;  %v11777_v14 = vld [vmem:[%s12661_s0 + $0xe8] ss:$16 sps:$4 sm:$0xff]  }
 0x5a0   : > { %7217 = vmatpush1.bf16.msra.mxu1 %v11690_v7  ;;  %7177 = vmatprep.subr.bf16.mxu0 %v11695_v43  ;;  %v11780_v7 = vld [vmem:[%s12661_s0 + $0x2e8] ss:$16 sps:$4 sm:$0xff]   ;;  %v11785_v43 = vld [vmem:[%s12661_s0 + $0x10c] ss:$16 sps:$4 sm:$0xff]  }
 0x5a1   : > { %7218 = vmatprep.subr.bf16.mxu1 %v11698_v39  ;;  %v11788_v39 = vld [vmem:[%s12661_s0 + $0x30c] ss:$16 sps:$4 sm:$0xff]  }
 0x5a3   : > { %7178 = vmatpush1.bf16.msra.mxu0 %v11693_v12  ;;  %v11783_v12 = vld [vmem:[%s12661_s0 + $0x108] ss:$16 sps:$4 sm:$0xff]  }
 0x5a4   : > { %7219 = vmatpush1.bf16.msra.mxu1 %v11696_v6  ;;  %7179 = vmatprep.subr.bf16.mxu0 %v11701_v24  ;;  %v11786_v6 = vld [vmem:[%s12661_s0 + $0x308] ss:$16 sps:$4 sm:$0xff]   ;;  %v11791_v24 = vld [vmem:[%s12661_s0 + $0x12c] ss:$16 sps:$4 sm:$0xff]  }
 0x5a5   : > { %7220 = vmatprep.subr.bf16.mxu1 %v11704_v15  ;;  %v11794_v15 = vld [vmem:[%s12661_s0 + $0x32c] ss:$16 sps:$4 sm:$0xff]  }
 0x5a7   : > { %7180 = vmatpush1.bf16.msra.mxu0 %v11699_v27  ;;  %v11789_v27 = vld [vmem:[%s12661_s0 + $0x128] ss:$16 sps:$4 sm:$0xff]  }
 0x5a8   : > { %7221 = vmatpush1.bf16.msra.mxu1 %v11702_v28  ;;  %7181 = vmatprep.subr.bf16.mxu0 %v11707_v29  ;;  %v11792_v28 = vld [vmem:[%s12661_s0 + $0x328] ss:$16 sps:$4 sm:$0xff]   ;;  %v11797_v29 = vld [vmem:[%s12661_s0 + $0x14c] ss:$16 sps:$4 sm:$0xff]  }
 0x5a9   : > { %7222 = vmatprep.subr.bf16.mxu1 %v11710_v63  ;;  %v11800_v63 = vld [vmem:[%s12661_s0 + $0x34c] ss:$16 sps:$4 sm:$0xff]  }
 0x5ab   : > { %7182 = vmatpush1.bf16.msra.mxu0 %v11705_v0  ;;  %v11795_v0 = vld [vmem:[%s12661_s0 + $0x148] ss:$16 sps:$4 sm:$0xff]  }
 0x5ac   : > { %7223 = vmatpush1.bf16.msra.mxu1 %v11708_v30  ;;  %7183 = vmatprep.subr.bf16.mxu0 %v11713_v31  ;;  %v11798_v30 = vld [vmem:[%s12661_s0 + $0x348] ss:$16 sps:$4 sm:$0xff]   ;;  %v11803_v31 = vld [vmem:[%s12661_s0 + $0x16c] ss:$16 sps:$4 sm:$0xff]  }
 0x5ad   : > { %7224 = vmatprep.subr.bf16.mxu1 %v11716_v32  ;;  %v11806_v32 = vld [vmem:[%s12661_s0 + $0x36c] ss:$16 sps:$4 sm:$0xff]  }
 0x5af   : > { %7184 = vmatpush1.bf16.msra.mxu0 %v11711_v33  ;;  %v11801_v33 = vld [vmem:[%s12661_s0 + $0x168] ss:$16 sps:$4 sm:$0xff]  }
 0x5b0   : > { %7225 = vmatpush1.bf16.msra.mxu1 %v11714_v34  ;;  %7185 = vmatprep.subr.bf16.mxu0 %v11719_v35  ;;  %v11804_v34 = vld [vmem:[%s12661_s0 + $0x368] ss:$16 sps:$4 sm:$0xff]   ;;  %v11809_v35 = vld [vmem:[%s12661_s0 + $0x18c] ss:$16 sps:$4 sm:$0xff]  }
 0x5b1   : > { %7226 = vmatprep.subr.bf16.mxu1 %v11722_v36  ;;  %v11812_v36 = vld [vmem:[%s12661_s0 + $0x38c] ss:$16 sps:$4 sm:$0xff]  }
 0x5b3   : > { %7186 = vmatpush1.bf16.msra.mxu0 %v11717_v38  ;;  %v11807_v38 = vld [vmem:[%s12661_s0 + $0x188] ss:$16 sps:$4 sm:$0xff]  }
 0x5b4   : > { %7227 = vmatpush1.bf16.msra.mxu1 %v11720_v13  ;;  %7187 = vmatprep.subr.bf16.mxu0 %v11725_v5  ;;  %v11810_v13 = vld [vmem:[%s12661_s0 + $0x388] ss:$16 sps:$4 sm:$0xff]   ;;  %v11815_v5 = vld [vmem:[%s12661_s0 + $0x1ac] ss:$16 sps:$4 sm:$0xff]  }
 0x5b5   : > { %7228 = vmatprep.subr.bf16.mxu1 %v11728_v44  ;;  %v11818_v44 = vld [vmem:[%s12661_s0 + $0x3ac] ss:$16 sps:$4 sm:$0xff]  }
 0x5b7   : > { %7188 = vmatpush1.bf16.msra.mxu0 %v11723_v51  ;;  %v11813_v51 = vld [vmem:[%s12661_s0 + $0x1a8] ss:$16 sps:$4 sm:$0xff]  }
 0x5b8   : > { %7229 = vmatpush1.bf16.msra.mxu1 %v11726_v54  ;;  %7189 = vmatprep.subr.bf16.mxu0 %v11731_v37  ;;  %v11816_v54 = vld [vmem:[%s12661_s0 + $0x3a8] ss:$16 sps:$4 sm:$0xff]   ;;  %v11821_v37 = vld [vmem:[%s12661_s0 + $0x1cc] ss:$16 sps:$4 sm:$0xff]  }
 0x5b9   : > { %7230 = vmatprep.subr.bf16.mxu1 %v11734_v45  ;;  %v11824_v45 = vld [vmem:[%s12661_s0 + $0x3cc] ss:$16 sps:$4 sm:$0xff]  }
 0x5bb   : > { %7190 = vmatpush1.bf16.msra.mxu0 %v11729_v46  ;;  %v11819_v46 = vld [vmem:[%s12661_s0 + $0x1c8] ss:$16 sps:$4 sm:$0xff]  }
 0x5bc   : > { %7231 = vmatpush1.bf16.msra.mxu1 %v11732_v40  ;;  %7241 = vmatprep.subr.bf16.mxu0 %v11737_v42  ;;  %v11822_v40 = vld [vmem:[%s12661_s0 + $0x3c8] ss:$16 sps:$4 sm:$0xff]  }
 0x5bd   : > { %7282 = vmatprep.subr.bf16.mxu1 %v11740_v48  ;;  %v11825_v42 = vld [vmem:[%s12661_s0 + $0x1e8] ss:$16 sps:$4 sm:$0xff]  }
 0x5be   : > { %7192 = vmatmul.mubr.bf16.vlgmr.msra.gmra.mrb[8].mxu0 %v13616_v25  ;;  %v11828_v48 = vld [vmem:[%s12661_s0 + $0x3e8] ss:$16 sps:$4 sm:$0xff]  }
 0x5bf   : > { %7233 = vmatmul.mubr.bf16.vlgmr.msra.gmra.mrb[8].mxu1 %v13618_v26  ;;  %7242 = vmatpush1.bf16.msra.mxu0 %v11735_v52  ;;  %v11833_v52 = vld [vmem:[%s12661_s0 + $0x804] ss:$16 sps:$4 sm:$0xff]  }
 0x5c0   : > { %7283 = vmatpush1.bf16.msra.mxu1 %v11738_v53  ;;  %7243 = vmatprep.subr.bf16.mxu0 %v11743_v10  ;;  %v11836_v53 = vld [vmem:[%s12661_s0 + $0xa04] ss:$16 sps:$4 sm:$0xff]   ;;  %v11831_v10 = vld [vmem:[%s12661_s0 + $0x800] ss:$16 sps:$4 sm:$0xff]  }
 0x5c1   : > { %7284 = vmatprep.subr.bf16.mxu1 %v11746_v8  ;;  %7273 = vmatprep.mubr.bf16.mxu0 %v13548_v49  ;;  %v11761_v49 = vld [vmem:[%s12661_s0 + $0x8c] ss:$16 sps:$4 sm:$0xff]   ;;  %v11834_v8 = vld [vmem:[%s12661_s0 + $0xa00] ss:$16 sps:$4 sm:$0xff]  }
 0x5c2   : > { %7314 = vmatprep.mubr.bf16.mxu1 %v13550_v50  ;;  %v11764_v50 = vld [vmem:[%s12661_s0 + $0x28c] ss:$16 sps:$4 sm:$0xff]  }
 0x5c3   : > { %7244 = vmatpush1.bf16.msra.mxu0 %v11741_v55  ;;  %v7325_v55 = vld [vmem:[#allocation3 + $0x48] sm:$0xff] }
 0x5c4   : > { %7285 = vmatpush1.bf16.msra.mxu1 %v11744_v56  ;;  %7245 = vmatprep.subr.bf16.mxu0 %v11749_v57  ;;  %v7327_v56 = vld [vmem:[#allocation3 + $0x58] sm:$0xff]  ;;  %v11839_v57 = vld [vmem:[%s12661_s0 + $0x824] ss:$16 sps:$4 sm:$0xff]  }
 0x5c5   : > { %7286 = vmatprep.subr.bf16.mxu1 %v11752_v58  ;;  %v11842_v58 = vld [vmem:[%s12661_s0 + $0xa24] ss:$16 sps:$4 sm:$0xff]  }
 0x5c7   : > { %7246 = vmatpush1.bf16.msra.mxu0 %v11747_v61  ;;  %v13692_v61 = vpack.c.bf16 %v7325_v55, %v7325_v55  ;;  %v11909_v55 = vld [vmem:[%s12661_s0 + $0x9a0] ss:$16 sps:$4 sm:$0xff]  }
 0x5c8   : > { %7287 = vmatpush1.bf16.msra.mxu1 %v11750_v62  ;;  %7247 = vmatprep.subr.bf16.mxu0 %v11755_v1  ;;  %v13694_v62 = vpack.c.bf16 %v7327_v56, %v7327_v56  ;;  %v11837_v1 = vld [vmem:[%s12661_s0 + $0x820] ss:$16 sps:$4 sm:$0xff]  }
 0x5c9   : > { %7288 = vmatprep.subr.bf16.mxu1 %v11758_v2  ;;  %v11840_v2 = vld [vmem:[%s12661_s0 + $0xa20] ss:$16 sps:$4 sm:$0xff]  }
 0x5ca   : > { %v11912_v56 = vld [vmem:[%s12661_s0 + $0xba0] ss:$16 sps:$4 sm:$0xff]  }
 0x5cb   : > { %7248 = vmatpush1.bf16.msra.mxu0 %v11753_v3  ;;  %v11845_v3 = vld [vmem:[%s12661_s0 + $0x844] ss:$16 sps:$4 sm:$0xff]  }
 0x5cc   : > { %7289 = vmatpush1.bf16.msra.mxu1 %v11756_v4  ;;  %7249 = vmatprep.subr.bf16.mxu0 %v11761_v49  ;;  %v11848_v4 = vld [vmem:[%s12661_s0 + $0xa44] ss:$16 sps:$4 sm:$0xff]   ;;  %v11846_v49 = vld [vmem:[%s12661_s0 + $0xa40] ss:$16 sps:$4 sm:$0xff]  }
 0x5cd   : > { %7290 = vmatprep.subr.bf16.mxu1 %v11764_v50  ;;  %v11854_v50 = vld [vmem:[%s12661_s0 + $0xa64] ss:$16 sps:$4 sm:$0xff]  }
 0x5cf   : > { %7250 = vmatpush1.bf16.msra.mxu0 %v11759_v16  ;;  %v11849_v16 = vld [vmem:[%s12661_s0 + $0x860] ss:$16 sps:$4 sm:$0xff]  }
 0x5d0   : > { %7291 = vmatpush1.bf16.msra.mxu1 %v11762_v17  ;;  %7251 = vmatprep.subr.bf16.mxu0 %v11767_v59  ;;  %v11852_v17 = vld [vmem:[%s12661_s0 + $0xa60] ss:$16 sps:$4 sm:$0xff]   ;;  %v11857_v59 = vld [vmem:[%s12661_s0 + $0x884] ss:$16 sps:$4 sm:$0xff]  }
 0x5d1   : > { %7292 = vmatprep.subr.bf16.mxu1 %v11770_v60  ;;  %v11860_v60 = vld [vmem:[%s12661_s0 + $0xa84] ss:$16 sps:$4 sm:$0xff]  }
 0x5d3   : > { %7252 = vmatpush1.bf16.msra.mxu0 %v11765_v11  ;;  %v11855_v11 = vld [vmem:[%s12661_s0 + $0x880] ss:$16 sps:$4 sm:$0xff]  }
 0x5d4   : > { %7293 = vmatpush1.bf16.msra.mxu1 %v11768_v18  ;;  %7253 = vmatprep.subr.bf16.mxu0 %v11773_v19  ;;  %v11858_v18 = vld [vmem:[%s12661_s0 + $0xa80] ss:$16 sps:$4 sm:$0xff]   ;;  %v11863_v19 = vld [vmem:[%s12661_s0 + $0x8a4] ss:$16 sps:$4 sm:$0xff]  }
 0x5d5   : > { %7294 = vmatprep.subr.bf16.mxu1 %v11776_v20  ;;  %v11866_v20 = vld [vmem:[%s12661_s0 + $0xaa4] ss:$16 sps:$4 sm:$0xff]  }
 0x5d7   : > { %7254 = vmatpush1.bf16.msra.mxu0 %v11771_v22  ;;  %v11861_v22 = vld [vmem:[%s12661_s0 + $0x8a0] ss:$16 sps:$4 sm:$0xff]  }
 0x5d8   : > { %7295 = vmatpush1.bf16.msra.mxu1 %v11774_v47  ;;  %7255 = vmatprep.subr.bf16.mxu0 %v11779_v9  ;;  %v11864_v47 = vld [vmem:[%s12661_s0 + $0xaa0] ss:$16 sps:$4 sm:$0xff]   ;;  %v11869_v9 = vld [vmem:[%s12661_s0 + $0x8c4] ss:$16 sps:$4 sm:$0xff]  }
 0x5d9   : > { %7296 = vmatprep.subr.bf16.mxu1 %v11782_v23  ;;  %v11872_v23 = vld [vmem:[%s12661_s0 + $0xac4] ss:$16 sps:$4 sm:$0xff]  }
 0x5db   : > { %7256 = vmatpush1.bf16.msra.mxu0 %v11777_v14 }
 0x5dc   : > { %7297 = vmatpush1.bf16.msra.mxu1 %v11780_v7  ;;  %7257 = vmatprep.subr.bf16.mxu0 %v11785_v43  ;;  %v11867_v43 = vld [vmem:[%s12661_s0 + $0x8c0] ss:$16 sps:$4 sm:$0xff]  }
 0x5dd   : > { %7298 = vmatprep.subr.bf16.mxu1 %v11788_v39  ;;  %v11870_v39 = vld [vmem:[%s12661_s0 + $0xac0] ss:$16 sps:$4 sm:$0xff]  }
 0x5df   : > { %7258 = vmatpush1.bf16.msra.mxu0 %v11783_v12 }
 0x5e0   : > { %7299 = vmatpush1.bf16.msra.mxu1 %v11786_v6  ;;  %7259 = vmatprep.subr.bf16.mxu0 %v11791_v24 }
 0x5e1   : > { %7300 = vmatprep.subr.bf16.mxu1 %v11794_v15 }
 0x5e3   : > { %7260 = vmatpush1.bf16.msra.mxu0 %v11789_v27 }
 0x5e4   : > { %7301 = vmatpush1.bf16.msra.mxu1 %v11792_v28  ;;  %7261 = vmatprep.subr.bf16.mxu0 %v11797_v29 }
 0x5e5   : > { %7302 = vmatprep.subr.bf16.mxu1 %v11800_v63 }
 0x5e7   : > { %7262 = vmatpush1.bf16.msra.mxu0 %v11795_v0  ;;  %v11875_v0 = vld [vmem:[%s12661_s0 + $0x8e4] ss:$16 sps:$4 sm:$0xff]  }
 0x5e8   : > { %7303 = vmatpush1.bf16.msra.mxu1 %v11798_v30  ;;  %7263 = vmatprep.subr.bf16.mxu0 %v11803_v31  ;;  %v11878_v30 = vld [vmem:[%s12661_s0 + $0xae4] ss:$16 sps:$4 sm:$0xff]   ;;  %v11873_v31 = vld [vmem:[%s12661_s0 + $0x8e0] ss:$16 sps:$4 sm:$0xff]  }
 0x5e9   : > { %7304 = vmatprep.subr.bf16.mxu1 %v11806_v32  ;;  %v11876_v32 = vld [vmem:[%s12661_s0 + $0xae0] ss:$16 sps:$4 sm:$0xff]  }
 0x5eb   : > { %7264 = vmatpush1.bf16.msra.mxu0 %v11801_v33  ;;  %v11881_v33 = vld [vmem:[%s12661_s0 + $0x904] ss:$16 sps:$4 sm:$0xff]  }
 0x5ec   : > { %7305 = vmatpush1.bf16.msra.mxu1 %v11804_v34  ;;  %7265 = vmatprep.subr.bf16.mxu0 %v11809_v35  ;;  %v11884_v34 = vld [vmem:[%s12661_s0 + $0xb04] ss:$16 sps:$4 sm:$0xff]   ;;  %v11879_v35 = vld [vmem:[%s12661_s0 + $0x900] ss:$16 sps:$4 sm:$0xff]  }
 0x5ed   : > { %7306 = vmatprep.subr.bf16.mxu1 %v11812_v36  ;;  %v11882_v36 = vld [vmem:[%s12661_s0 + $0xb00] ss:$16 sps:$4 sm:$0xff]  }
 0x5ef   : > { %7266 = vmatpush1.bf16.msra.mxu0 %v11807_v38  ;;  %v11887_v38 = vld [vmem:[%s12661_s0 + $0x924] ss:$16 sps:$4 sm:$0xff]  }
 0x5f0   : > { %7307 = vmatpush1.bf16.msra.mxu1 %v11810_v13  ;;  %7267 = vmatprep.subr.bf16.mxu0 %v11815_v5  ;;  %v11890_v13 = vld [vmem:[%s12661_s0 + $0xb24] ss:$16 sps:$4 sm:$0xff]   ;;  %v11885_v5 = vld [vmem:[%s12661_s0 + $0x920] ss:$16 sps:$4 sm:$0xff]  }
 0x5f1   : > { %7308 = vmatprep.subr.bf16.mxu1 %v11818_v44  ;;  %v11888_v44 = vld [vmem:[%s12661_s0 + $0xb20] ss:$16 sps:$4 sm:$0xff]  }
 0x5f3   : > { %7268 = vmatpush1.bf16.msra.mxu0 %v11813_v51  ;;  %v11893_v51 = vld [vmem:[%s12661_s0 + $0x944] ss:$16 sps:$4 sm:$0xff]  }
 0x5f4   : > { %7309 = vmatpush1.bf16.msra.mxu1 %v11816_v54  ;;  %7269 = vmatprep.subr.bf16.mxu0 %v11821_v37  ;;  %v11896_v54 = vld [vmem:[%s12661_s0 + $0xb44] ss:$16 sps:$4 sm:$0xff]   ;;  %v11891_v37 = vld [vmem:[%s12661_s0 + $0x940] ss:$16 sps:$4 sm:$0xff]  }
 0x5f5   : > { %7310 = vmatprep.subr.bf16.mxu1 %v11824_v45  ;;  %v11894_v45 = vld [vmem:[%s12661_s0 + $0xb40] ss:$16 sps:$4 sm:$0xff]  }
 0x5f7   : > { %7270 = vmatpush1.bf16.msra.mxu0 %v11819_v46  ;;  %v11899_v46 = vld [vmem:[%s12661_s0 + $0x964] ss:$16 sps:$4 sm:$0xff]  }
 0x5f8   : > { %7311 = vmatpush1.bf16.msra.mxu1 %v11822_v40  ;;  %7271 = vmatprep.subr.bf16.mxu0 %v11827_v21  ;;  %v11902_v40 = vld [vmem:[%s12661_s0 + $0xb64] ss:$16 sps:$4 sm:$0xff]   ;;  %v11897_v21 = vld [vmem:[%s12661_s0 + $0x960] ss:$16 sps:$4 sm:$0xff]  }
 0x5f9   : > { %7312 = vmatprep.subr.bf16.mxu1 %v11830_v41  ;;  %v11900_v41 = vld [vmem:[%s12661_s0 + $0xb60] ss:$16 sps:$4 sm:$0xff]  }
 0x5fb   : > { %7272 = vmatpush1.bf16.msra.mxu0 %v11825_v42  ;;  %v11905_v42 = vld [vmem:[%s12661_s0 + $0x984] ss:$16 sps:$4 sm:$0xff]  }
 0x5fc   : > { %7313 = vmatpush1.bf16.msra.mxu1 %v11828_v48  ;;  %8100 = vmatprep.subr.bf16.mxu0 %v11833_v52  ;;  %v11908_v48 = vld [vmem:[%s12661_s0 + $0xb84] ss:$16 sps:$4 sm:$0xff]   ;;  %v11903_v52 = vld [vmem:[%s12661_s0 + $0x980] ss:$16 sps:$4 sm:$0xff]  }
 0x5fd   : > { %8141 = vmatprep.subr.bf16.mxu1 %v11836_v53  ;;  %v11906_v53 = vld [vmem:[%s12661_s0 + $0xb80] ss:$16 sps:$4 sm:$0xff]  }
 0x5fe   : > { %7274 = vmatmul.mubr.bf16.vlgmr.msra.gmra.mrb[12].mxu0 %v13616_v25  ;;  %v11843_v25 = vld [vmem:[%s12661_s0 + $0x840] ss:$16 sps:$4 sm:$0xff]  }
 0x5ff   : > { %7315 = vmatmul.mubr.bf16.vlgmr.msra.gmra.mrb[12].mxu1 %v13618_v26  ;;  %8101 = vmatpush1.bf16.msra.mxu0 %v11831_v10  ;;  %v11851_v26 = vld [vmem:[%s12661_s0 + $0x864] ss:$16 sps:$4 sm:$0xff]  }
 0x600   : > { %8142 = vmatpush1.bf16.msra.mxu1 %v11834_v8  ;;  %8102 = vmatprep.subr.bf16.mxu0 %v11839_v57  ;;  %v11911_v10 = vld [vmem:[%s12661_s0 + $0x9a4] ss:$16 sps:$4 sm:$0xff]  }
 0x601   : > { %8143 = vmatprep.subr.bf16.mxu1 %v11842_v58  ;;  %8132 = vmatprep.mubr.bf16.mxu0 %v13692_v61  ;;  %v11914_v8 = vld [vmem:[%s12661_s0 + $0xba4] ss:$16 sps:$4 sm:$0xff]  }
 0x602   : > { %8173 = vmatprep.mubr.bf16.mxu1 %v13694_v62  ;;  %v11917_v57 = vld [vmem:[%s12661_s0 + $0x9c4] ss:$16 sps:$4 sm:$0xff]  }
 0x603   : > { %8103 = vmatpush1.bf16.msra.mxu0 %v11837_v1  ;;  %v11920_v58 = vld [vmem:[%s12661_s0 + $0xbc4] ss:$16 sps:$4 sm:$0xff]   ;;  %v11915_v1 = vld [vmem:[%s12661_s0 + $0x9c0] ss:$16 sps:$4 sm:$0xff]  }
 0x604   : > { %8144 = vmatpush1.bf16.msra.mxu1 %v11840_v2  ;;  %8104 = vmatprep.subr.bf16.mxu0 %v11845_v3  ;;  %v11918_v2 = vld [vmem:[%s12661_s0 + $0xbc0] ss:$16 sps:$4 sm:$0xff]   ;;  %v11923_v3 = vld [vmem:[%s12661_s0 + $0x9e4] ss:$16 sps:$4 sm:$0xff]  }
 0x605   : > { %8145 = vmatprep.subr.bf16.mxu1 %v11848_v4  ;;  %v11926_v4 = vld [vmem:[%s12661_s0 + $0xbe4] ss:$16 sps:$4 sm:$0xff]  }
 0x607   : > { %8105 = vmatpush1.bf16.msra.mxu0 %v11843_v25  ;;  %v11921_v25 = vld [vmem:[%s12661_s0 + $0x9e0] ss:$16 sps:$4 sm:$0xff]  }
 0x608   : > { %8146 = vmatpush1.bf16.msra.mxu1 %v11846_v49  ;;  %8106 = vmatprep.subr.bf16.mxu0 %v11851_v26  ;;  %v11924_v49 = vld [vmem:[%s12661_s0 + $0xbe0] ss:$16 sps:$4 sm:$0xff]  }
 0x609   : > { %8147 = vmatprep.subr.bf16.mxu1 %v11854_v50  ;;  %v7324_v26 = vld [vmem:[#allocation3 + $0x40] sm:$0xff]  ;;  %v7326_v50 = vld [vmem:[#allocation3 + $0x50] sm:$0xff] }
 0x60b   : > { %8107 = vmatpush1.bf16.msra.mxu0 %v11849_v16  ;;  %v11929_v16 = vld [vmem:[%s12661_s0 + $0x80c] ss:$16 sps:$4 sm:$0xff]  }
 0x60c   : > { %8148 = vmatpush1.bf16.msra.mxu1 %v11852_v17  ;;  %8108 = vmatprep.subr.bf16.mxu0 %v11857_v59  ;;  %v11932_v17 = vld [vmem:[%s12661_s0 + $0xa0c] ss:$16 sps:$4 sm:$0xff]   ;;  %v13764_v59 = vpack.c.bf16 %v7324_v26, %v7324_v26 }
 0x60d   : > { %8149 = vmatprep.subr.bf16.mxu1 %v11860_v60  ;;  %v13766_v60 = vpack.c.bf16 %v7326_v50, %v7326_v50  ;;  %v12001_v26 = vld [vmem:[%s12661_s0 + $0x98c] ss:$16 sps:$4 sm:$0xff]  }
 0x60e   : > { %v12004_v50 = vld [vmem:[%s12661_s0 + $0xb8c] ss:$16 sps:$4 sm:$0xff]  }
 0x60f   : > { %8109 = vmatpush1.bf16.msra.mxu0 %v11855_v11  ;;  %v11927_v11 = vld [vmem:[%s12661_s0 + $0x808] ss:$16 sps:$4 sm:$0xff]  }
 0x610   : > { %8150 = vmatpush1.bf16.msra.mxu1 %v11858_v18  ;;  %8110 = vmatprep.subr.bf16.mxu0 %v11863_v19  ;;  %v11930_v18 = vld [vmem:[%s12661_s0 + $0xa08] ss:$16 sps:$4 sm:$0xff]   ;;  %v11935_v19 = vld [vmem:[%s12661_s0 + $0x82c] ss:$16 sps:$4 sm:$0xff]  }
 0x611   : > { %8151 = vmatprep.subr.bf16.mxu1 %v11866_v20  ;;  %v6389_v14 = vpop.f32.mrb[0].mxu0  ;;  %v11938_v20 = vld [vmem:[%s12661_s0 + $0xa2c] ss:$16 sps:$4 sm:$0xff]  }
 0x612   : > { %v6430_v7 = vpop.f32.mrb[0].mxu1  ;;  %v6391_v6 = vpop.f32.mrb[1].mxu0 }
 0x613   : > { %v13722_v12 = vadd.f32 %v6430_v7, %v6389_v14  ;;  %v6432_v24 = vpop.f32.mrb[1].mxu1  ;;  %v6393_v27 = vpop.f32.mrb[2].mxu0  ;;  %8111 = vmatpush1.bf16.msra.mxu0 %v11861_v22  ;;  %v11933_v22 = vld [vmem:[%s12661_s0 + $0x828] ss:$16 sps:$4 sm:$0xff]  }
 0x614   : > { %v13724_v15 = vadd.f32 %v6432_v24, %v6391_v6  ;;  %v6434_v28 = vpop.f32.mrb[2].mxu1  ;;  %8152 = vmatpush1.bf16.msra.mxu1 %v11864_v47  ;;  %v6394_v29 = vpop.f32.mrb[3].mxu0  ;;  %8112 = vmatprep.subr.bf16.mxu0 %v11869_v9  ;;  %v11936_v47 = vld [vmem:[%s12661_s0 + $0xa28] ss:$16 sps:$4 sm:$0xff]   ;;  %v11941_v9 = vld [vmem:[%s12661_s0 + $0x84c] ss:$16 sps:$4 sm:$0xff]  }
 0x615   : > { %v6435_v63 = vpop.f32.mrb[3].mxu1  ;;  %8153 = vmatprep.subr.bf16.mxu1 %v11872_v23  ;;  %v11944_v23 = vld [vmem:[%s12661_s0 + $0xa4c] ss:$16 sps:$4 sm:$0xff]   ;;  %v11939_v14 = vld [vmem:[%s12661_s0 + $0x848] ss:$16 sps:$4 sm:$0xff]  }
 0x616   : > { %v11942_v7 = vld [vmem:[%s12661_s0 + $0xa48] ss:$16 sps:$4 sm:$0xff]   ;;  %v11956_v24 = vld [vmem:[%s12661_s0 + $0xa8c] ss:$16 sps:$4 sm:$0xff]  }
 0x617   : > { %8113 = vmatpush1.bf16.msra.mxu0 %v11867_v43  ;;  %v11947_v43 = vld [vmem:[%s12661_s0 + $0x86c] ss:$16 sps:$4 sm:$0xff]   ;;  %v11945_v6 = vld [vmem:[%s12661_s0 + $0x868] ss:$16 sps:$4 sm:$0xff]  }
 0x618   : > { %8154 = vmatpush1.bf16.msra.mxu1 %v11870_v39  ;;  %8114 = vmatprep.subr.bf16.mxu0 %v11875_v0  ;;  %v11950_v39 = vld [vmem:[%s12661_s0 + $0xa6c] ss:$16 sps:$4 sm:$0xff]   ;;  %v11951_v27 = vld [vmem:[%s12661_s0 + $0x888] ss:$16 sps:$4 sm:$0xff]  }
 0x619   : > { %8155 = vmatprep.subr.bf16.mxu1 %v11878_v30  ;;  %v11954_v28 = vld [vmem:[%s12661_s0 + $0xa88] ss:$16 sps:$4 sm:$0xff]   ;;  %v11959_v29 = vld [vmem:[%s12661_s0 + $0x8ac] ss:$16 sps:$4 sm:$0xff]  }
 0x61a   : > { %v11962_v63 = vld [vmem:[%s12661_s0 + $0xaac] ss:$16 sps:$4 sm:$0xff]   ;;  %v11957_v0 = vld [vmem:[%s12661_s0 + $0x8a8] ss:$16 sps:$4 sm:$0xff]  }
 0x61b   : > { %8115 = vmatpush1.bf16.msra.mxu0 %v11873_v31  ;;  %v11960_v30 = vld [vmem:[%s12661_s0 + $0xaa8] ss:$16 sps:$4 sm:$0xff]   ;;  %v11965_v31 = vld [vmem:[%s12661_s0 + $0x8cc] ss:$16 sps:$4 sm:$0xff]  }
 0x61c   : > { %8156 = vmatpush1.bf16.msra.mxu1 %v11876_v32  ;;  %8116 = vmatprep.subr.bf16.mxu0 %v11881_v33  ;;  %v11968_v32 = vld [vmem:[%s12661_s0 + $0xacc] ss:$16 sps:$4 sm:$0xff]  }
 0x61d   : > { %8157 = vmatprep.subr.bf16.mxu1 %v11884_v34 }
 0x61f   : > { %8117 = vmatpush1.bf16.msra.mxu0 %v11879_v35 }
 0x620   : > { %8158 = vmatpush1.bf16.msra.mxu1 %v11882_v36  ;;  %8118 = vmatprep.subr.bf16.mxu0 %v11887_v38 }
 0x621   : > { %8159 = vmatprep.subr.bf16.mxu1 %v11890_v13 }
 0x623   : > { %8119 = vmatpush1.bf16.msra.mxu0 %v11885_v5 }
 0x624   : > { %8160 = vmatpush1.bf16.msra.mxu1 %v11888_v44  ;;  %8120 = vmatprep.subr.bf16.mxu0 %v11893_v51  ;;  %v11963_v51 = vld [vmem:[%s12661_s0 + $0x8c8] ss:$16 sps:$4 sm:$0xff]  }
 0x625   : > { %8161 = vmatprep.subr.bf16.mxu1 %v11896_v54  ;;  %v11966_v54 = vld [vmem:[%s12661_s0 + $0xac8] ss:$16 sps:$4 sm:$0xff]  }
 0x627   : > { %8121 = vmatpush1.bf16.msra.mxu0 %v11891_v37 }
 0x628   : > { %8162 = vmatpush1.bf16.msra.mxu1 %v11894_v45  ;;  %8122 = vmatprep.subr.bf16.mxu0 %v11899_v46  ;;  %v11971_v46 = vld [vmem:[%s12661_s0 + $0x8ec] ss:$16 sps:$4 sm:$0xff]  }
 0x629   : > { %8163 = vmatprep.subr.bf16.mxu1 %v11902_v40  ;;  %v11974_v40 = vld [vmem:[%s12661_s0 + $0xaec] ss:$16 sps:$4 sm:$0xff]  }
 0x62b   : > { %8123 = vmatpush1.bf16.msra.mxu0 %v11897_v21  ;;  %v11969_v21 = vld [vmem:[%s12661_s0 + $0x8e8] ss:$16 sps:$4 sm:$0xff]  }
 0x62c   : > { %8164 = vmatpush1.bf16.msra.mxu1 %v11900_v41  ;;  %8124 = vmatprep.subr.bf16.mxu0 %v11905_v42  ;;  %v11972_v41 = vld [vmem:[%s12661_s0 + $0xae8] ss:$16 sps:$4 sm:$0xff]   ;;  %v11977_v42 = vld [vmem:[%s12661_s0 + $0x90c] ss:$16 sps:$4 sm:$0xff]  }
 0x62d   : > { %8165 = vmatprep.subr.bf16.mxu1 %v11908_v48  ;;  %v11980_v48 = vld [vmem:[%s12661_s0 + $0xb0c] ss:$16 sps:$4 sm:$0xff]  }
 0x62f   : > { %8125 = vmatpush1.bf16.msra.mxu0 %v11903_v52  ;;  %v11975_v52 = vld [vmem:[%s12661_s0 + $0x908] ss:$16 sps:$4 sm:$0xff]  }
 0x630   : > { %8166 = vmatpush1.bf16.msra.mxu1 %v11906_v53  ;;  %8126 = vmatprep.subr.bf16.mxu0 %v11911_v10  ;;  %v11978_v53 = vld [vmem:[%s12661_s0 + $0xb08] ss:$16 sps:$4 sm:$0xff]   ;;  %v11983_v10 = vld [vmem:[%s12661_s0 + $0x92c] ss:$16 sps:$4 sm:$0xff]  }
 0x631   : > { %8167 = vmatprep.subr.bf16.mxu1 %v11914_v8  ;;  %v11986_v8 = vld [vmem:[%s12661_s0 + $0xb2c] ss:$16 sps:$4 sm:$0xff]  }
 0x633   : > { %8127 = vmatpush1.bf16.msra.mxu0 %v11909_v55  ;;  %v11981_v55 = vld [vmem:[%s12661_s0 + $0x928] ss:$16 sps:$4 sm:$0xff]  }
 0x634   : > { %8168 = vmatpush1.bf16.msra.mxu1 %v11912_v56  ;;  %8128 = vmatprep.subr.bf16.mxu0 %v11917_v57  ;;  %v11984_v56 = vld [vmem:[%s12661_s0 + $0xb28] ss:$16 sps:$4 sm:$0xff]   ;;  %v11989_v57 = vld [vmem:[%s12661_s0 + $0x94c] ss:$16 sps:$4 sm:$0xff]  }
 0x635   : > { %8169 = vmatprep.subr.bf16.mxu1 %v11920_v58  ;;  %v11992_v58 = vld [vmem:[%s12661_s0 + $0xb4c] ss:$16 sps:$4 sm:$0xff]  }
 0x637   : > { %8129 = vmatpush1.bf16.msra.mxu0 %v11915_v1  ;;  %v11987_v1 = vld [vmem:[%s12661_s0 + $0x948] ss:$16 sps:$4 sm:$0xff]  }
 0x638   : > { %8170 = vmatpush1.bf16.msra.mxu1 %v11918_v2  ;;  %8130 = vmatprep.subr.bf16.mxu0 %v11923_v3  ;;  %v11990_v2 = vld [vmem:[%s12661_s0 + $0xb48] ss:$16 sps:$4 sm:$0xff]   ;;  %v11995_v3 = vld [vmem:[%s12661_s0 + $0x96c] ss:$16 sps:$4 sm:$0xff]  }
 0x639   : > { %8171 = vmatprep.subr.bf16.mxu1 %v11926_v4  ;;  %v11998_v4 = vld [vmem:[%s12661_s0 + $0xb6c] ss:$16 sps:$4 sm:$0xff]  }
 0x63b   : > { %8131 = vmatpush1.bf16.msra.mxu0 %v11921_v25  ;;  %v11993_v25 = vld [vmem:[%s12661_s0 + $0x968] ss:$16 sps:$4 sm:$0xff]  }
 0x63c   : > { %8172 = vmatpush1.bf16.msra.mxu1 %v11924_v49  ;;  %8182 = vmatprep.subr.bf16.mxu0 %v11929_v16  ;;  %v11996_v49 = vld [vmem:[%s12661_s0 + $0xb68] ss:$16 sps:$4 sm:$0xff]  }
 0x63d   : > { %8223 = vmatprep.subr.bf16.mxu1 %v11932_v17  ;;  %v11999_v16 = vld [vmem:[%s12661_s0 + $0x988] ss:$16 sps:$4 sm:$0xff]  }
 0x63e   : > { %8133 = vmatmul.mubr.bf16.vlgmr.msra.gmra.mrb[16].mxu0 %v13764_v59  ;;  %v12002_v17 = vld [vmem:[%s12661_s0 + $0xb88] ss:$16 sps:$4 sm:$0xff]  }
 0x63f   : > { %8174 = vmatmul.mubr.bf16.vlgmr.msra.gmra.mrb[16].mxu1 %v13766_v60  ;;  %8183 = vmatpush1.bf16.msra.mxu0 %v11927_v11  ;;  %v12007_v11 = vld [vmem:[%s12661_s0 + $0x9ac] ss:$16 sps:$4 sm:$0xff]  }
 0x640   : > { %8224 = vmatpush1.bf16.msra.mxu1 %v11930_v18  ;;  %8184 = vmatprep.subr.bf16.mxu0 %v11935_v19  ;;  %v12010_v18 = vld [vmem:[%s12661_s0 + $0xbac] ss:$16 sps:$4 sm:$0xff]   ;;  %v12005_v19 = vld [vmem:[%s12661_s0 + $0x9a8] ss:$16 sps:$4 sm:$0xff]  }
 0x641   : > { %8225 = vmatprep.subr.bf16.mxu1 %v11938_v20  ;;  %8214 = vmatprep.mubr.bf16.mxu0 %v13692_v61  ;;  %v11948_v61 = vld [vmem:[%s12661_s0 + $0xa68] ss:$16 sps:$4 sm:$0xff]  }
 0x642   : > { %8255 = vmatprep.mubr.bf16.mxu1 %v13694_v62  ;;  %v11953_v62 = vld [vmem:[%s12661_s0 + $0x88c] ss:$16 sps:$4 sm:$0xff]   ;;  %v12008_v20 = vld [vmem:[%s12661_s0 + $0xba8] ss:$16 sps:$4 sm:$0xff]  }
 0x643   : > { %8185 = vmatpush1.bf16.msra.mxu0 %v11933_v22  ;;  %v12013_v22 = vld [vmem:[%s12661_s0 + $0x9cc] ss:$16 sps:$4 sm:$0xff]  }
 0x644   : > { %8226 = vmatpush1.bf16.msra.mxu1 %v11936_v47  ;;  %8186 = vmatprep.subr.bf16.mxu0 %v11941_v9  ;;  %v12016_v47 = vld [vmem:[%s12661_s0 + $0xbcc] ss:$16 sps:$4 sm:$0xff]   ;;  %v12011_v9 = vld [vmem:[%s12661_s0 + $0x9c8] ss:$16 sps:$4 sm:$0xff]  }
 0x645   : > { %8227 = vmatprep.subr.bf16.mxu1 %v11944_v23  ;;  %v12014_v23 = vld [vmem:[%s12661_s0 + $0xbc8] ss:$16 sps:$4 sm:$0xff]  }
 0x647   : > { %8187 = vmatpush1.bf16.msra.mxu0 %v11939_v14  ;;  %v12019_v14 = vld [vmem:[%s12661_s0 + $0x9ec] ss:$16 sps:$4 sm:$0xff]  }
 0x648   : > { %8228 = vmatpush1.bf16.msra.mxu1 %v11942_v7  ;;  %8188 = vmatprep.subr.bf16.mxu0 %v11947_v43  ;;  %v12022_v7 = vld [vmem:[%s12661_s0 + $0xbec] ss:$16 sps:$4 sm:$0xff]   ;;  %v12017_v43 = vld [vmem:[%s12661_s0 + $0x9e8] ss:$16 sps:$4 sm:$0xff]  }
 0x649   : > { %8229 = vmatprep.subr.bf16.mxu1 %v11950_v39  ;;  %v12020_v39 = vld [vmem:[%s12661_s0 + $0xbe8] ss:$16 sps:$4 sm:$0xff]  }
 0x64b   : > { %8189 = vmatpush1.bf16.msra.mxu0 %v11945_v6  ;;  %v12025_v6 = vld [vmem:[%s12661_s0 + $0xc04] ss:$16 sps:$4 sm:$0xff]  }
 0x64c   : > { %8230 = vmatpush1.bf16.msra.mxu1 %v11948_v61  ;;  %8190 = vmatprep.subr.bf16.mxu0 %v11953_v62  ;;  %v12028_v61 = vld [vmem:[%s12661_s0 + $0xe04] ss:$16 sps:$4 sm:$0xff]   ;;  %v8270_v62 = vld [vmem:[#allocation3 + $0x68] sm:$0xff] }
 0x64d   : > { %8231 = vmatprep.subr.bf16.mxu1 %v11956_v24  ;;  %v8272_v24 = vld [vmem:[#allocation3 + $0x78] sm:$0xff] }
 0x64f   : > { %8191 = vmatpush1.bf16.msra.mxu0 %v11951_v27  ;;  %v12023_v27 = vld [vmem:[%s12661_s0 + $0xc00] ss:$16 sps:$4 sm:$0xff]  }
 0x650   : > { %8232 = vmatpush1.bf16.msra.mxu1 %v11954_v28  ;;  %8192 = vmatprep.subr.bf16.mxu0 %v11959_v29  ;;  %v12026_v28 = vld [vmem:[%s12661_s0 + $0xe00] ss:$16 sps:$4 sm:$0xff]   ;;  %v12031_v29 = vld [vmem:[%s12661_s0 + $0xc24] ss:$16 sps:$4 sm:$0xff]  }
 0x651   : > { %8233 = vmatprep.subr.bf16.mxu1 %v11962_v63  ;;  %v6471_v33 = vpop.f32.mrb[4].mxu0  ;;  %v12034_v63 = vld [vmem:[%s12661_s0 + $0xe24] ss:$16 sps:$4 sm:$0xff]  }
 0x652   : > { %v6512_v34 = vpop.f32.mrb[4].mxu1  ;;  %v6473_v36 = vpop.f32.mrb[5].mxu0 }
 0x653   : > { %v13796_v35 = vadd.f32 %v6512_v34, %v6471_v33  ;;  %v6514_v38 = vpop.f32.mrb[5].mxu1  ;;  %v6475_v5 = vpop.f32.mrb[6].mxu0  ;;  %8193 = vmatpush1.bf16.msra.mxu0 %v11957_v0  ;;  %v13844_v0 = vpack.c.bf16 %v8270_v62, %v8270_v62  ;;  %v12037_v33 = vld [vmem:[%s12661_s0 + $0xc44] ss:$16 sps:$4 sm:$0xff]  }
 0x654   : > { %v13798_v13 = vadd.f32 %v6514_v38, %v6473_v36  ;;  %v6516_v44 = vpop.f32.mrb[6].mxu1  ;;  %8234 = vmatpush1.bf16.msra.mxu1 %v11960_v30  ;;  %v6476_v37 = vpop.f32.mrb[7].mxu0  ;;  %8194 = vmatprep.subr.bf16.mxu0 %v11965_v31  ;;  %v13846_v30 = vpack.c.bf16 %v8272_v24, %v8272_v24  ;;  %v12029_v31 = vld [vmem:[%s12661_s0 + $0xc20] ss:$16 sps:$4 sm:$0xff]   ;;  %v12040_v34 = vld [vmem:[%s12661_s0 + $0xe44] ss:$16 sps:$4 sm:$0xff]  }
 0x655   : > { %v6517_v45 = vpop.f32.mrb[7].mxu1  ;;  %8235 = vmatprep.subr.bf16.mxu1 %v11968_v32  ;;  %v12032_v32 = vld [vmem:[%s12661_s0 + $0xe20] ss:$16 sps:$4 sm:$0xff]   ;;  %v12043_v36 = vld [vmem:[%s12661_s0 + $0xc64] ss:$16 sps:$4 sm:$0xff]  }
 0x656   : > { %v12046_v38 = vld [vmem:[%s12661_s0 + $0xe64] ss:$16 sps:$4 sm:$0xff]   ;;  %v12041_v5 = vld [vmem:[%s12661_s0 + $0xc60] ss:$16 sps:$4 sm:$0xff]  }
 0x657   : > { %8195 = vmatpush1.bf16.msra.mxu0 %v11963_v51  ;;  %v12044_v44 = vld [vmem:[%s12661_s0 + $0xe60] ss:$16 sps:$4 sm:$0xff]   ;;  %v12049_v51 = vld [vmem:[%s12661_s0 + $0xc84] ss:$16 sps:$4 sm:$0xff]  }
 0x658   : > { %8236 = vmatpush1.bf16.msra.mxu1 %v11966_v54  ;;  %8196 = vmatprep.subr.bf16.mxu0 %v11971_v46  ;;  %v12052_v54 = vld [vmem:[%s12661_s0 + $0xe84] ss:$16 sps:$4 sm:$0xff]   ;;  %v12047_v37 = vld [vmem:[%s12661_s0 + $0xc80] ss:$16 sps:$4 sm:$0xff]  }
 0x659   : > { %8237 = vmatprep.subr.bf16.mxu1 %v11974_v40  ;;  %v12050_v45 = vld [vmem:[%s12661_s0 + $0xe80] ss:$16 sps:$4 sm:$0xff]   ;;  %v12055_v46 = vld [vmem:[%s12661_s0 + $0xca4] ss:$16 sps:$4 sm:$0xff]  }
 0x65a   : > { %v12058_v40 = vld [vmem:[%s12661_s0 + $0xea4] ss:$16 sps:$4 sm:$0xff]  }
 0x65b   : > { %8197 = vmatpush1.bf16.msra.mxu0 %v11969_v21  ;;  %v12053_v21 = vld [vmem:[%s12661_s0 + $0xca0] ss:$16 sps:$4 sm:$0xff]   ;;  %v12097_v62 = vld [vmem:[%s12661_s0 + $0xd84] ss:$16 sps:$4 sm:$0xff]  }
 0x65c   : > { %8238 = vmatpush1.bf16.msra.mxu1 %v11972_v41  ;;  %8198 = vmatprep.subr.bf16.mxu0 %v11977_v42  ;;  %v12056_v41 = vld [vmem:[%s12661_s0 + $0xea0] ss:$16 sps:$4 sm:$0xff]   ;;  %v12061_v42 = vld [vmem:[%s12661_s0 + $0xcc4] ss:$16 sps:$4 sm:$0xff]  }
 0x65d   : > { %8239 = vmatprep.subr.bf16.mxu1 %v11980_v48  ;;  %v12064_v48 = vld [vmem:[%s12661_s0 + $0xec4] ss:$16 sps:$4 sm:$0xff]  }
 0x65e   : > { %v12100_v24 = vld [vmem:[%s12661_s0 + $0xf84] ss:$16 sps:$4 sm:$0xff]  }
 0x65f   : > { %8199 = vmatpush1.bf16.msra.mxu0 %v11975_v52 }
 0x660   : > { %8240 = vmatpush1.bf16.msra.mxu1 %v11978_v53  ;;  %8200 = vmatprep.subr.bf16.mxu0 %v11983_v10 }
 0x661   : > { %8241 = vmatprep.subr.bf16.mxu1 %v11986_v8 }
 0x663   : > { %8201 = vmatpush1.bf16.msra.mxu0 %v11981_v55 }
 0x664   : > { %8242 = vmatpush1.bf16.msra.mxu1 %v11984_v56  ;;  %8202 = vmatprep.subr.bf16.mxu0 %v11989_v57 }
 0x665   : > { %8243 = vmatprep.subr.bf16.mxu1 %v11992_v58 }
 0x667   : > { %8203 = vmatpush1.bf16.msra.mxu0 %v11987_v1  ;;  %v12059_v1 = vld [vmem:[%s12661_s0 + $0xcc0] ss:$16 sps:$4 sm:$0xff]  }
 0x668   : > { %8244 = vmatpush1.bf16.msra.mxu1 %v11990_v2  ;;  %8204 = vmatprep.subr.bf16.mxu0 %v11995_v3  ;;  %v12062_v2 = vld [vmem:[%s12661_s0 + $0xec0] ss:$16 sps:$4 sm:$0xff]  }
 0x669   : > { %8245 = vmatprep.subr.bf16.mxu1 %v11998_v4 }
 0x66b   : > { %8205 = vmatpush1.bf16.msra.mxu0 %v11993_v25 }
 0x66c   : > { %8246 = vmatpush1.bf16.msra.mxu1 %v11996_v49  ;;  %8206 = vmatprep.subr.bf16.mxu0 %v12001_v26  ;;  %v12065_v26 = vld [vmem:[%s12661_s0 + $0xce0] ss:$16 sps:$4 sm:$0xff]  }
 0x66d   : > { %8247 = vmatprep.subr.bf16.mxu1 %v12004_v50  ;;  %v12068_v50 = vld [vmem:[%s12661_s0 + $0xee0] ss:$16 sps:$4 sm:$0xff]  }
 0x66f   : > { %8207 = vmatpush1.bf16.msra.mxu0 %v11999_v16  ;;  %v12073_v16 = vld [vmem:[%s12661_s0 + $0xd04] ss:$16 sps:$4 sm:$0xff]  }
 0x670   : > { %8248 = vmatpush1.bf16.msra.mxu1 %v12002_v17  ;;  %8208 = vmatprep.subr.bf16.mxu0 %v12007_v11  ;;  %v12076_v17 = vld [vmem:[%s12661_s0 + $0xf04] ss:$16 sps:$4 sm:$0xff]   ;;  %v12071_v11 = vld [vmem:[%s12661_s0 + $0xd00] ss:$16 sps:$4 sm:$0xff]  }
 0x671   : > { %8249 = vmatprep.subr.bf16.mxu1 %v12010_v18  ;;  %v12074_v18 = vld [vmem:[%s12661_s0 + $0xf00] ss:$16 sps:$4 sm:$0xff]  }
 0x673   : > { %8209 = vmatpush1.bf16.msra.mxu0 %v12005_v19  ;;  %v12079_v19 = vld [vmem:[%s12661_s0 + $0xd24] ss:$16 sps:$4 sm:$0xff]  }
 0x674   : > { %8250 = vmatpush1.bf16.msra.mxu1 %v12008_v20  ;;  %8210 = vmatprep.subr.bf16.mxu0 %v12013_v22  ;;  %v12082_v20 = vld [vmem:[%s12661_s0 + $0xf24] ss:$16 sps:$4 sm:$0xff]   ;;  %v12077_v22 = vld [vmem:[%s12661_s0 + $0xd20] ss:$16 sps:$4 sm:$0xff]  }
 0x675   : > { %8251 = vmatprep.subr.bf16.mxu1 %v12016_v47  ;;  %v12080_v47 = vld [vmem:[%s12661_s0 + $0xf20] ss:$16 sps:$4 sm:$0xff]  }
 0x677   : > { %8211 = vmatpush1.bf16.msra.mxu0 %v12011_v9  ;;  %v12085_v9 = vld [vmem:[%s12661_s0 + $0xd44] ss:$16 sps:$4 sm:$0xff]  }
 0x678   : > { %8252 = vmatpush1.bf16.msra.mxu1 %v12014_v23  ;;  %8212 = vmatprep.subr.bf16.mxu0 %v12019_v14  ;;  %v12088_v23 = vld [vmem:[%s12661_s0 + $0xf44] ss:$16 sps:$4 sm:$0xff]   ;;  %v12083_v14 = vld [vmem:[%s12661_s0 + $0xd40] ss:$16 sps:$4 sm:$0xff]  }
 0x679   : > { %8253 = vmatprep.subr.bf16.mxu1 %v12022_v7  ;;  %v12086_v7 = vld [vmem:[%s12661_s0 + $0xf40] ss:$16 sps:$4 sm:$0xff]  }
 0x67b   : > { %8213 = vmatpush1.bf16.msra.mxu0 %v12017_v43  ;;  %v12091_v43 = vld [vmem:[%s12661_s0 + $0xd64] ss:$16 sps:$4 sm:$0xff]  }
 0x67c   : > { %8254 = vmatpush1.bf16.msra.mxu1 %v12020_v39  ;;  %9045 = vmatprep.subr.bf16.mxu0 %v12025_v6  ;;  %v12094_v39 = vld [vmem:[%s12661_s0 + $0xf64] ss:$16 sps:$4 sm:$0xff]   ;;  %v12089_v6 = vld [vmem:[%s12661_s0 + $0xd60] ss:$16 sps:$4 sm:$0xff]  }
 0x67d   : > { %9086 = vmatprep.subr.bf16.mxu1 %v12028_v61  ;;  %v12092_v61 = vld [vmem:[%s12661_s0 + $0xf60] ss:$16 sps:$4 sm:$0xff]  }
 0x67e   : > { %8215 = vmatmul.mubr.bf16.vlgmr.msra.gmra.mrb[20].mxu0 %v13764_v59  ;;  %v12035_v59 = vld [vmem:[%s12661_s0 + $0xc40] ss:$16 sps:$4 sm:$0xff]  }
 0x67f   : > { %8256 = vmatmul.mubr.bf16.vlgmr.msra.gmra.mrb[20].mxu1 %v13766_v60  ;;  %9046 = vmatpush1.bf16.msra.mxu0 %v12023_v27  ;;  %v12038_v60 = vld [vmem:[%s12661_s0 + $0xe40] ss:$16 sps:$4 sm:$0xff]  }
 0x680   : > { %9087 = vmatpush1.bf16.msra.mxu1 %v12026_v28  ;;  %9047 = vmatprep.subr.bf16.mxu0 %v12031_v29  ;;  %v12095_v27 = vld [vmem:[%s12661_s0 + $0xd80] ss:$16 sps:$4 sm:$0xff]   ;;  %v12103_v29 = vld [vmem:[%s12661_s0 + $0xda4] ss:$16 sps:$4 sm:$0xff]  }
 0x681   : > { %9088 = vmatprep.subr.bf16.mxu1 %v12034_v63  ;;  %9077 = vmatprep.mubr.bf16.mxu0 %v13844_v0  ;;  %v12098_v28 = vld [vmem:[%s12661_s0 + $0xf80] ss:$16 sps:$4 sm:$0xff]   ;;  %v12106_v63 = vld [vmem:[%s12661_s0 + $0xfa4] ss:$16 sps:$4 sm:$0xff]  }
 0x682   : > { %9118 = vmatprep.mubr.bf16.mxu1 %v13846_v30 }
 0x683   : > { %9048 = vmatpush1.bf16.msra.mxu0 %v12029_v31  ;;  %v12101_v31 = vld [vmem:[%s12661_s0 + $0xda0] ss:$16 sps:$4 sm:$0xff]  }
 0x684   : > { %9089 = vmatpush1.bf16.msra.mxu1 %v12032_v32  ;;  %9049 = vmatprep.subr.bf16.mxu0 %v12037_v33  ;;  %v12104_v32 = vld [vmem:[%s12661_s0 + $0xfa0] ss:$16 sps:$4 sm:$0xff]   ;;  %v12109_v33 = vld [vmem:[%s12661_s0 + $0xdc4] ss:$16 sps:$4 sm:$0xff]  }
 0x685   : > { %9090 = vmatprep.subr.bf16.mxu1 %v12040_v34  ;;  %v12112_v34 = vld [vmem:[%s12661_s0 + $0xfc4] ss:$16 sps:$4 sm:$0xff]  }
 0x687   : > { %9050 = vmatpush1.bf16.msra.mxu0 %v12035_v59  ;;  %v12107_v59 = vld [vmem:[%s12661_s0 + $0xdc0] ss:$16 sps:$4 sm:$0xff]  }
 0x688   : > { %9091 = vmatpush1.bf16.msra.mxu1 %v12038_v60  ;;  %9051 = vmatprep.subr.bf16.mxu0 %v12043_v36  ;;  %v12110_v60 = vld [vmem:[%s12661_s0 + $0xfc0] ss:$16 sps:$4 sm:$0xff]   ;;  %v12115_v36 = vld [vmem:[%s12661_s0 + $0xde4] ss:$16 sps:$4 sm:$0xff]  }
 0x689   : > { %9092 = vmatprep.subr.bf16.mxu1 %v12046_v38  ;;  %v12118_v38 = vld [vmem:[%s12661_s0 + $0xfe4] ss:$16 sps:$4 sm:$0xff]  }
 0x68b   : > { %9052 = vmatpush1.bf16.msra.mxu0 %v12041_v5  ;;  %v12113_v5 = vld [vmem:[%s12661_s0 + $0xde0] ss:$16 sps:$4 sm:$0xff]  }
 0x68c   : > { %9093 = vmatpush1.bf16.msra.mxu1 %v12044_v44  ;;  %9053 = vmatprep.subr.bf16.mxu0 %v12049_v51  ;;  %v12116_v44 = vld [vmem:[%s12661_s0 + $0xfe0] ss:$16 sps:$4 sm:$0xff]  }
 0x68d   : > { %9094 = vmatprep.subr.bf16.mxu1 %v12052_v54  ;;  %v8269_v51 = vld [vmem:[#allocation3 + $0x60] sm:$0xff]  ;;  %v8271_v54 = vld [vmem:[#allocation3 + $0x70] sm:$0xff] }
 0x68f   : > { %9054 = vmatpush1.bf16.msra.mxu0 %v12047_v37  ;;  %v12121_v37 = vld [vmem:[%s12661_s0 + $0xc0c] ss:$16 sps:$4 sm:$0xff]  }
 0x690   : > { %9095 = vmatpush1.bf16.msra.mxu1 %v12050_v45  ;;  %9055 = vmatprep.subr.bf16.mxu0 %v12055_v46  ;;  %v12124_v45 = vld [vmem:[%s12661_s0 + $0xe0c] ss:$16 sps:$4 sm:$0xff]   ;;  %v13918_v46 = vpack.c.bf16 %v8269_v51, %v8269_v51  ;;  %v12185_v51 = vld [vmem:[%s12661_s0 + $0xd68] ss:$16 sps:$4 sm:$0xff]  }
 0x691   : > { %9096 = vmatprep.subr.bf16.mxu1 %v12058_v40  ;;  %v7193_v52 = vpop.f32.mrb[8].mxu0  ;;  %v13920_v40 = vpack.c.bf16 %v8271_v54, %v8271_v54  ;;  %v12188_v54 = vld [vmem:[%s12661_s0 + $0xf68] ss:$16 sps:$4 sm:$0xff]  }
 0x692   : > { %v7234_v53 = vpop.f32.mrb[8].mxu1  ;;  %v7194_v10 = vadd.f32 %v7193_v52, %v13722_v12  ;;  %v7195_v8 = vpop.f32.mrb[9].mxu0  ;;  %v12067_v12 = vld [vmem:[%s12661_s0 + $0xce4] ss:$16 sps:$4 sm:$0xff]   ;;  %v12125_v52 = vld [vmem:[%s12661_s0 + $0xc28] ss:$16 sps:$4 sm:$0xff]  }
 0x693   : > { %v7236_v55 = vpop.f32.mrb[9].mxu1  ;;  %v7196_v56 = vadd.f32 %v7195_v8, %v13724_v15  ;;  %v7197_v57 = vpop.f32.mrb[10].mxu0  ;;  %9056 = vmatpush1.bf16.msra.mxu0 %v12053_v21  ;;  %v12070_v15 = vld [vmem:[%s12661_s0 + $0xee4] ss:$16 sps:$4 sm:$0xff]   ;;  %v12119_v21 = vld [vmem:[%s12661_s0 + $0xc08] ss:$16 sps:$4 sm:$0xff]  }
 0x694   : > { %v7238_v58 = vpop.f32.mrb[10].mxu1  ;;  %9097 = vmatpush1.bf16.msra.mxu1 %v12056_v41  ;;  %v13876_v3 = vadd.f32 %v7234_v53, %v7194_v10  ;;  %v7198_v4 = vpop.f32.mrb[11].mxu0  ;;  %9057 = vmatprep.subr.bf16.mxu0 %v12061_v42  ;;  %v12122_v41 = vld [vmem:[%s12661_s0 + $0xe08] ss:$16 sps:$4 sm:$0xff]   ;;  %v12127_v42 = vld [vmem:[%s12661_s0 + $0xc2c] ss:$16 sps:$4 sm:$0xff]  }
 0x695   : > { %v7239_v25 = vpop.f32.mrb[11].mxu1  ;;  %9098 = vmatprep.subr.bf16.mxu1 %v12064_v48  ;;  %v13880_v49 = vadd.f32 %v7236_v55, %v7196_v56  ;;  %v12130_v48 = vld [vmem:[%s12661_s0 + $0xe2c] ss:$16 sps:$4 sm:$0xff]   ;;  %v12128_v53 = vld [vmem:[%s12661_s0 + $0xe28] ss:$16 sps:$4 sm:$0xff]  }
 0x696   : > { %v12133_v10 = vld [vmem:[%s12661_s0 + $0xc4c] ss:$16 sps:$4 sm:$0xff]   ;;  %v12131_v55 = vld [vmem:[%s12661_s0 + $0xc48] ss:$16 sps:$4 sm:$0xff]  }
 0x697   : > { %9058 = vmatpush1.bf16.msra.mxu0 %v12059_v1  ;;  %v12136_v8 = vld [vmem:[%s12661_s0 + $0xe4c] ss:$16 sps:$4 sm:$0xff]   ;;  %v12134_v56 = vld [vmem:[%s12661_s0 + $0xe48] ss:$16 sps:$4 sm:$0xff]  }
 0x698   : > { %9099 = vmatpush1.bf16.msra.mxu1 %v12062_v2  ;;  %9059 = vmatprep.subr.bf16.mxu0 %v12067_v12  ;;  %v12139_v57 = vld [vmem:[%s12661_s0 + $0xc6c] ss:$16 sps:$4 sm:$0xff]   ;;  %v12137_v1 = vld [vmem:[%s12661_s0 + $0xc68] ss:$16 sps:$4 sm:$0xff]  }
 0x699   : > { %9100 = vmatprep.subr.bf16.mxu1 %v12070_v15  ;;  %v12142_v58 = vld [vmem:[%s12661_s0 + $0xe6c] ss:$16 sps:$4 sm:$0xff]   ;;  %v12143_v4 = vld [vmem:[%s12661_s0 + $0xc88] ss:$16 sps:$4 sm:$0xff]  }
 0x69a   : > { %v12148_v2 = vld [vmem:[%s12661_s0 + $0xe8c] ss:$16 sps:$4 sm:$0xff]   ;;  %v12146_v25 = vld [vmem:[%s12661_s0 + $0xe88] ss:$16 sps:$4 sm:$0xff]  }
 0x69b   : > { %9060 = vmatpush1.bf16.msra.mxu0 %v12065_v26  ;;  %v12151_v12 = vld [vmem:[%s12661_s0 + $0xcac] ss:$16 sps:$4 sm:$0xff]   ;;  %v12149_v26 = vld [vmem:[%s12661_s0 + $0xca8] ss:$16 sps:$4 sm:$0xff]  }
 0x69c   : > { %9101 = vmatpush1.bf16.msra.mxu1 %v12068_v50  ;;  %9061 = vmatprep.subr.bf16.mxu0 %v12073_v16  ;;  %v12154_v15 = vld [vmem:[%s12661_s0 + $0xeac] ss:$16 sps:$4 sm:$0xff]   ;;  %v12152_v50 = vld [vmem:[%s12661_s0 + $0xea8] ss:$16 sps:$4 sm:$0xff]  }
 0x69d   : > { %9102 = vmatprep.subr.bf16.mxu1 %v12076_v17  ;;  %v12157_v16 = vld [vmem:[%s12661_s0 + $0xccc] ss:$16 sps:$4 sm:$0xff]  }
 0x69e   : > { %v12160_v17 = vld [vmem:[%s12661_s0 + $0xecc] ss:$16 sps:$4 sm:$0xff]  }
 0x69f   : > { %9062 = vmatpush1.bf16.msra.mxu0 %v12071_v11 }
 0x6a0   : > { %9103 = vmatpush1.bf16.msra.mxu1 %v12074_v18  ;;  %9063 = vmatprep.subr.bf16.mxu0 %v12079_v19 }
 0x6a1   : > { %9104 = vmatprep.subr.bf16.mxu1 %v12082_v20 }
 0x6a3   : > { %9064 = vmatpush1.bf16.msra.mxu0 %v12077_v22 }
 0x6a4   : > { %9105 = vmatpush1.bf16.msra.mxu1 %v12080_v47  ;;  %9065 = vmatprep.subr.bf16.mxu0 %v12085_v9 }
 0x6a5   : > { %9106 = vmatprep.subr.bf16.mxu1 %v12088_v23 }
 0x6a7   : > { %9066 = vmatpush1.bf16.msra.mxu0 %v12083_v14  ;;  %v12155_v14 = vld [vmem:[%s12661_s0 + $0xcc8] ss:$16 sps:$4 sm:$0xff]  }
 0x6a8   : > { %9107 = vmatpush1.bf16.msra.mxu1 %v12086_v7  ;;  %9067 = vmatprep.subr.bf16.mxu0 %v12091_v43  ;;  %v12158_v7 = vld [vmem:[%s12661_s0 + $0xec8] ss:$16 sps:$4 sm:$0xff]  }
 0x6a9   : > { %9108 = vmatprep.subr.bf16.mxu1 %v12094_v39 }
 0x6ab   : > { %9068 = vmatpush1.bf16.msra.mxu0 %v12089_v6 }
 0x6ac   : > { %9109 = vmatpush1.bf16.msra.mxu1 %v12092_v61  ;;  %9069 = vmatprep.subr.bf16.mxu0 %v12097_v62  ;;  %v12161_v62 = vld [vmem:[%s12661_s0 + $0xce8] ss:$16 sps:$4 sm:$0xff]  }
 0x6ad   : > { %9110 = vmatprep.subr.bf16.mxu1 %v12100_v24  ;;  %v12164_v24 = vld [vmem:[%s12661_s0 + $0xee8] ss:$16 sps:$4 sm:$0xff]  }
 0x6af   : > { %9070 = vmatpush1.bf16.msra.mxu0 %v12095_v27  ;;  %v12169_v27 = vld [vmem:[%s12661_s0 + $0xd0c] ss:$16 sps:$4 sm:$0xff]  }
 0x6b0   : > { %9111 = vmatpush1.bf16.msra.mxu1 %v12098_v28  ;;  %9071 = vmatprep.subr.bf16.mxu0 %v12103_v29  ;;  %v12172_v28 = vld [vmem:[%s12661_s0 + $0xf0c] ss:$16 sps:$4 sm:$0xff]   ;;  %v12167_v29 = vld [vmem:[%s12661_s0 + $0xd08] ss:$16 sps:$4 sm:$0xff]  }
 0x6b1   : > { %9112 = vmatprep.subr.bf16.mxu1 %v12106_v63  ;;  %v12170_v63 = vld [vmem:[%s12661_s0 + $0xf08] ss:$16 sps:$4 sm:$0xff]  }
 0x6b3   : > { %9072 = vmatpush1.bf16.msra.mxu0 %v12101_v31  ;;  %v12175_v31 = vld [vmem:[%s12661_s0 + $0xd2c] ss:$16 sps:$4 sm:$0xff]  }
 0x6b4   : > { %9113 = vmatpush1.bf16.msra.mxu1 %v12104_v32  ;;  %9073 = vmatprep.subr.bf16.mxu0 %v12109_v33  ;;  %v12178_v32 = vld [vmem:[%s12661_s0 + $0xf2c] ss:$16 sps:$4 sm:$0xff]   ;;  %v12173_v33 = vld [vmem:[%s12661_s0 + $0xd28] ss:$16 sps:$4 sm:$0xff]  }
 0x6b5   : > { %9114 = vmatprep.subr.bf16.mxu1 %v12112_v34  ;;  %v12176_v34 = vld [vmem:[%s12661_s0 + $0xf28] ss:$16 sps:$4 sm:$0xff]  }
 0x6b7   : > { %9074 = vmatpush1.bf16.msra.mxu0 %v12107_v59  ;;  %v12181_v59 = vld [vmem:[%s12661_s0 + $0xd4c] ss:$16 sps:$4 sm:$0xff]  }
 0x6b8   : > { %9115 = vmatpush1.bf16.msra.mxu1 %v12110_v60  ;;  %9075 = vmatprep.subr.bf16.mxu0 %v12115_v36  ;;  %v12184_v60 = vld [vmem:[%s12661_s0 + $0xf4c] ss:$16 sps:$4 sm:$0xff]   ;;  %v12179_v36 = vld [vmem:[%s12661_s0 + $0xd48] ss:$16 sps:$4 sm:$0xff]  }
 0x6b9   : > { %9116 = vmatprep.subr.bf16.mxu1 %v12118_v38  ;;  %v12182_v38 = vld [vmem:[%s12661_s0 + $0xf48] ss:$16 sps:$4 sm:$0xff]  }
 0x6bb   : > { %9076 = vmatpush1.bf16.msra.mxu0 %v12113_v5  ;;  %v12187_v5 = vld [vmem:[%s12661_s0 + $0xd6c] ss:$16 sps:$4 sm:$0xff]  }
 0x6bc   : > { %9117 = vmatpush1.bf16.msra.mxu1 %v12116_v44  ;;  %9127 = vmatprep.subr.bf16.mxu0 %v12121_v37  ;;  %v12190_v44 = vld [vmem:[%s12661_s0 + $0xf6c] ss:$16 sps:$4 sm:$0xff]  }
 0x6bd   : > { %9168 = vmatprep.subr.bf16.mxu1 %v12124_v45  ;;  %v12193_v37 = vld [vmem:[%s12661_s0 + $0xd8c] ss:$16 sps:$4 sm:$0xff]  }
 0x6be   : > { %9078 = vmatmul.mubr.bf16.vlgmr.msra.gmra.mrb[24].mxu0 %v13918_v46  ;;  %v12196_v45 = vld [vmem:[%s12661_s0 + $0xf8c] ss:$16 sps:$4 sm:$0xff]  }
 0x6bf   : > { %9119 = vmatmul.mubr.bf16.vlgmr.msra.gmra.mrb[24].mxu1 %v13920_v40  ;;  %9128 = vmatpush1.bf16.msra.mxu0 %v12119_v21  ;;  %v12191_v21 = vld [vmem:[%s12661_s0 + $0xd88] ss:$16 sps:$4 sm:$0xff]  }
 0x6c0   : > { %9169 = vmatpush1.bf16.msra.mxu1 %v12122_v41  ;;  %9129 = vmatprep.subr.bf16.mxu0 %v12127_v42  ;;  %v12194_v41 = vld [vmem:[%s12661_s0 + $0xf88] ss:$16 sps:$4 sm:$0xff]   ;;  %v12199_v42 = vld [vmem:[%s12661_s0 + $0xdac] ss:$16 sps:$4 sm:$0xff]  }
 0x6c1   : > { %9170 = vmatprep.subr.bf16.mxu1 %v12130_v48  ;;  %9159 = vmatprep.mubr.bf16.mxu0 %v13844_v0  ;;  %v12140_v0 = vld [vmem:[%s12661_s0 + $0xe68] ss:$16 sps:$4 sm:$0xff]   ;;  %v12202_v48 = vld [vmem:[%s12661_s0 + $0xfac] ss:$16 sps:$4 sm:$0xff]  }
 0x6c2   : > { %9200 = vmatprep.mubr.bf16.mxu1 %v13846_v30  ;;  %v12145_v30 = vld [vmem:[%s12661_s0 + $0xc8c] ss:$16 sps:$4 sm:$0xff]  }
 0x6c3   : > { %9130 = vmatpush1.bf16.msra.mxu0 %v12125_v52  ;;  %v12197_v52 = vld [vmem:[%s12661_s0 + $0xda8] ss:$16 sps:$4 sm:$0xff]  }
 0x6c4   : > { %9171 = vmatpush1.bf16.msra.mxu1 %v12128_v53  ;;  %9131 = vmatprep.subr.bf16.mxu0 %v12133_v10  ;;  %v12200_v53 = vld [vmem:[%s12661_s0 + $0xfa8] ss:$16 sps:$4 sm:$0xff]   ;;  %v12205_v10 = vld [vmem:[%s12661_s0 + $0xdcc] ss:$16 sps:$4 sm:$0xff]  }
 0x6c5   : > { %9172 = vmatprep.subr.bf16.mxu1 %v12136_v8  ;;  %v12208_v8 = vld [vmem:[%s12661_s0 + $0xfcc] ss:$16 sps:$4 sm:$0xff]  }
 0x6c7   : > { %9132 = vmatpush1.bf16.msra.mxu0 %v12131_v55  ;;  %v12203_v55 = vld [vmem:[%s12661_s0 + $0xdc8] ss:$16 sps:$4 sm:$0xff]  }
 0x6c8   : > { %9173 = vmatpush1.bf16.msra.mxu1 %v12134_v56  ;;  %9133 = vmatprep.subr.bf16.mxu0 %v12139_v57  ;;  %v12206_v56 = vld [vmem:[%s12661_s0 + $0xfc8] ss:$16 sps:$4 sm:$0xff]   ;;  %v12211_v57 = vld [vmem:[%s12661_s0 + $0xdec] ss:$16 sps:$4 sm:$0xff]  }
 0x6c9   : > { %9174 = vmatprep.subr.bf16.mxu1 %v12142_v58  ;;  %v12214_v58 = vld [vmem:[%s12661_s0 + $0xfec] ss:$16 sps:$4 sm:$0xff]  }
 0x6cb   : > { %9134 = vmatpush1.bf16.msra.mxu0 %v12137_v1  ;;  %v12209_v1 = vld [vmem:[%s12661_s0 + $0xde8] ss:$16 sps:$4 sm:$0xff]  }
 0x6cc   : > { %9175 = vmatpush1.bf16.msra.mxu1 %v12140_v0  ;;  %9135 = vmatprep.subr.bf16.mxu0 %v12145_v30  ;;  %v12212_v0 = vld [vmem:[%s12661_s0 + $0xfe8] ss:$16 sps:$4 sm:$0xff]  }
 0x6cd   : > { %9176 = vmatprep.subr.bf16.mxu1 %v12148_v2 }
 0x6cf   : > { %9136 = vmatpush1.bf16.msra.mxu0 %v12143_v4 }
 0x6d0   : > { %9177 = vmatpush1.bf16.msra.mxu1 %v12146_v25  ;;  %9137 = vmatprep.subr.bf16.mxu0 %v12151_v12 }
 0x6d1   : > { %9178 = vmatprep.subr.bf16.mxu1 %v12154_v15  ;;  %v7275_v11 = vpop.f32.mrb[12].mxu0 }
 0x6d2   : > { %v7316_v18 = vpop.f32.mrb[12].mxu1  ;;  %v7276_v19 = vadd.f32 %v7275_v11, %v13796_v35  ;;  %v7277_v20 = vpop.f32.mrb[13].mxu0  ;;  %v12163_v35 = vld [vmem:[%s12661_s0 + $0xcec] ss:$16 sps:$4 sm:$0xff]  }
 0x6d3   : > { %v7318_v22 = vpop.f32.mrb[13].mxu1  ;;  %v7278_v47 = vadd.f32 %v7277_v20, %v13798_v13  ;;  %v7279_v9 = vpop.f32.mrb[14].mxu0  ;;  %9138 = vmatpush1.bf16.msra.mxu0 %v12149_v26  ;;  %v12166_v13 = vld [vmem:[%s12661_s0 + $0xeec] ss:$16 sps:$4 sm:$0xff]  }
 0x6d4   : > { %v7320_v23 = vpop.f32.mrb[14].mxu1  ;;  %9179 = vmatpush1.bf16.msra.mxu1 %v12152_v50  ;;  %v13954_v43 = vadd.f32 %v7316_v18, %v7276_v19  ;;  %v7280_v39 = vpop.f32.mrb[15].mxu0  ;;  %9139 = vmatprep.subr.bf16.mxu0 %v12157_v16 }
 0x6d5   : > { %v7321_v6 = vpop.f32.mrb[15].mxu1  ;;  %9180 = vmatprep.subr.bf16.mxu1 %v12160_v17  ;;  %v13958_v61 = vadd.f32 %v7318_v22, %v7278_v47 }
 0x6d7   : > { %9140 = vmatpush1.bf16.msra.mxu0 %v12155_v14 }
 0x6d8   : > { %9181 = vmatpush1.bf16.msra.mxu1 %v12158_v7  ;;  %9141 = vmatprep.subr.bf16.mxu0 %v12163_v35 }
 0x6d9   : > { %9182 = vmatprep.subr.bf16.mxu1 %v12166_v13  ;;  %v9213_v13 = vld [vmem:[%s283_s1] sm:$0xf] }
 0x6db   : > { %9142 = vmatpush1.bf16.msra.mxu0 %v12161_v62 }
 0x6dc   : > { %9183 = vmatpush1.bf16.msra.mxu1 %v12164_v24  ;;  %9143 = vmatprep.subr.bf16.mxu0 %v12169_v27 }
 0x6dd   : > { %9184 = vmatprep.subr.bf16.mxu1 %v12172_v28 }
 0x6df   : > { %9144 = vmatpush1.bf16.msra.mxu0 %v12167_v29 }
 0x6e0   : > { %9185 = vmatpush1.bf16.msra.mxu1 %v12170_v63  ;;  %9145 = vmatprep.subr.bf16.mxu0 %v12175_v31 }
 0x6e1   : > { %9186 = vmatprep.subr.bf16.mxu1 %v12178_v32 }
 0x6e3   : > { %9146 = vmatpush1.bf16.msra.mxu0 %v12173_v33 }
 0x6e4   : > { %9187 = vmatpush1.bf16.msra.mxu1 %v12176_v34  ;;  %9147 = vmatprep.subr.bf16.mxu0 %v12181_v59 }
 0x6e5   : > { %9188 = vmatprep.subr.bf16.mxu1 %v12184_v60 }
 0x6e7   : > { %9148 = vmatpush1.bf16.msra.mxu0 %v12179_v36  ;;  %v9243_v36 = vstv %s12738_s7 }
 0x6e8   : > { %9189 = vmatpush1.bf16.msra.mxu1 %v12182_v38  ;;  %9149 = vmatprep.subr.bf16.mxu0 %v12187_v5 }
 0x6e9   : > { %9190 = vmatprep.subr.bf16.mxu1 %v12190_v44 }
 0x6eb   : > { %9150 = vmatpush1.bf16.msra.mxu0 %v12185_v51 }
 0x6ec   : > { %9191 = vmatpush1.bf16.msra.mxu1 %v12188_v54  ;;  %9151 = vmatprep.subr.bf16.mxu0 %v12193_v37 }
 0x6ed   : > { %9192 = vmatprep.subr.bf16.mxu1 %v12196_v45 }
 0x6ef   : > { %9152 = vmatpush1.bf16.msra.mxu0 %v12191_v21 }
 0x6f0   : > { %9193 = vmatpush1.bf16.msra.mxu1 %v12194_v41  ;;  %9153 = vmatprep.subr.bf16.mxu0 %v12199_v42 }
 0x6f1   : > { %9194 = vmatprep.subr.bf16.mxu1 %v12202_v48 }
 0x6f3   : > { %9154 = vmatpush1.bf16.msra.mxu0 %v12197_v52 }
 0x6f4   : > { %9195 = vmatpush1.bf16.msra.mxu1 %v12200_v53  ;;  %9155 = vmatprep.subr.bf16.mxu0 %v12205_v10 }
 0x6f5   : > { %9196 = vmatprep.subr.bf16.mxu1 %v12208_v8 }
 0x6f7   : > { %9156 = vmatpush1.bf16.msra.mxu0 %v12203_v55 }
 0x6f8   : > { %9197 = vmatpush1.bf16.msra.mxu1 %v12206_v56  ;;  %9157 = vmatprep.subr.bf16.mxu0 %v12211_v57 }
 0x6f9   : > { %9198 = vmatprep.subr.bf16.mxu1 %v12214_v58 }
 0x6fb   : > { %9158 = vmatpush1.bf16.msra.mxu0 %v12209_v1 }
 0x6fc   : > { %9199 = vmatpush1.bf16.msra.mxu1 %v12212_v0 }
 0x6fe   : > { %9160 = vmatmul.mubr.bf16.vlgmr.msra.gmra.mrb[28].mxu0 %v13918_v46 }
 0x6ff   : > { %9201 = vmatmul.mubr.bf16.vlgmr.msra.gmra.mrb[28].mxu1 %v13920_v40 }
 0x711   : > { %v8134_v30 = vpop.f32.mrb[16].mxu0 }
 0x712   : > { %v8175_v2 = vpop.f32.mrb[16].mxu1  ;;  %v8136_v25 = vpop.f32.mrb[17].mxu0 }
 0x713   : > { %v8176_v4 = vadd.f32 %v8175_v2, %v8134_v30  ;;  %v8177_v12 = vpop.f32.mrb[17].mxu1  ;;  %v8138_v26 = vpop.f32.mrb[18].mxu0 }
 0x714   : > { %v8178_v15 = vadd.f32 %v8177_v12, %v8136_v25  ;;  %v8179_v50 = vpop.f32.mrb[18].mxu1  ;;  %v8139_v17 = vpop.f32.mrb[19].mxu0 }
 0x715   : > { %v8264_v16 = vadd.f32 %v8176_v4, %v13876_v3  ;;  %v8180_v11 = vpop.f32.mrb[19].mxu1 }
 0x716   : > { %v8265_v18 = vadd.f32 %v8178_v15, %v13880_v49  ;;  %v9215_v49 = vlaneseq }
 0x718   : > { %v9216_v6 = vshrl.u32 %v9215_v49, 7 }
 0x71a   : > { %v9217_v35 = vsub.s32 0, %v9216_v6  ;;  %v9221_v62 = vsub.s32 1, %v9216_v6  ;;  %v9225_v21 = vsub.s32 2, %v9216_v6  ;;  %v9229_v41 = vsub.s32 3, %v9216_v6 }
 0x71c   : > { %v9218_v28 = vrot.slane %v9213_v13, %v9217_v35  ;;  %v9222_v31 = vrot.slane %v9213_v13, %v9221_v62  ;;  %v9226_v53 = vrot.slane %v9213_v13, %v9225_v21  ;;  %v9230_v56 = vrot.slane %v9213_v13, %v9229_v41 }
 0x751   : > { %v8216_v19 = vpop.f32.mrb[20].mxu0 }
 0x752   : > { %v8257_v46 = vpop.f32.mrb[20].mxu1  ;;  %v8218_v20 = vpop.f32.mrb[21].mxu0 }
 0x753   : > { %v8258_v40 = vadd.f32 %v8257_v46, %v8216_v19  ;;  %v8259_v22 = vpop.f32.mrb[21].mxu1  ;;  %v8220_v9 = vpop.f32.mrb[22].mxu0 }
 0x754   : > { %v8260_v47 = vadd.f32 %v8259_v22, %v8218_v20  ;;  %v8261_v23 = vpop.f32.mrb[22].mxu1  ;;  %v8221_v7 = vpop.f32.mrb[23].mxu0 }
 0x755   : > { %v8266_v14 = vadd.f32 %v8258_v40, %v13954_v43  ;;  %v8262_v39 = vpop.f32.mrb[23].mxu1 }
 0x756   : > { %v8267_v3 = vadd.f32 %v8260_v47, %v13958_v61 }
 0x791   : > { %v9079_v24 = vpop.f32.mrb[24].mxu0 }
 0x792   : > { %v9120_v43 = vpop.f32.mrb[24].mxu1  ;;  %v9081_v29 = vpop.f32.mrb[25].mxu0 }
 0x793   : > { %v9121_v27 = vadd.f32 %v9120_v43, %v9079_v24  ;;  %v9122_v61 = vpop.f32.mrb[25].mxu1  ;;  %v9083_v32 = vpop.f32.mrb[26].mxu0 }
 0x794   : > { %v9123_v63 = vadd.f32 %v9122_v61, %v9081_v29  ;;  %v9124_v33 = vpop.f32.mrb[26].mxu1  ;;  %v9084_v59 = vpop.f32.mrb[27].mxu0 }
 0x795   : > { %v9209_v34 = vadd.f32 %v9121_v27, %v8264_v16  ;;  %v9125_v60 = vpop.f32.mrb[27].mxu1 }
 0x796   : > { %v9210_v38 = vadd.f32 %v9123_v63, %v8265_v18 }
 0x797   : > { %v9235_v5 = vadd.f32 %v9218_v28, %v9209_v34 }
 0x798   : > { %v9236_v44 = vadd.f32 %v9222_v31, %v9210_v38 }
 0x799   : > { %vm9239_vm4 = vcmp.ge.f32.partialorder %v9235_v5, 0.0  ;;  %v9244_v51 = vmul.f32 %v9243_v36, %v9235_v5 }
 0x79a   : > { %vm9240_vm5 = vcmp.ge.f32.partialorder %v9236_v44, 0.0  ;;  %v9245_v54 = vmul.f32 %v9243_v36, %v9236_v44 }
 0x79b   : > { %v9248_v37 = vsel %vm9239_vm4, %v9235_v5, %v9244_v51 }
 0x79c   : > { %9255 = vst [vmem:[%s9254_s28] sm:$0xff] %v9248_v37  ;;  %v9249_v45 = vsel %vm9240_vm5, %v9236_v44, %v9245_v54  ;;  %9290 = vst [vmem:[%s14144_s17 + $0x60] sm:$0xff] (!%p14003_p3), %v9248_v37 }
 0x79d   : > { %9256 = vst [vmem:[%s9254_s28 + $0x8] sm:$0xff] %v9249_v45  ;;  %9291 = vst [vmem:[%s14144_s17 + $0x68] sm:$0xff] (!%p14003_p3), %v9249_v45 }
 0x7d1   : > { %v9161_v42 = vpop.f32.mrb[28].mxu0 }
 0x7d2   : > { %v9202_v48 = vpop.f32.mrb[28].mxu1  ;;  %v9163_v10 = vpop.f32.mrb[29].mxu0 }
 0x7d3   : > { %v9203_v52 = vadd.f32 %v9202_v48, %v9161_v42  ;;  %v9204_v8 = vpop.f32.mrb[29].mxu1  ;;  %v9165_v57 = vpop.f32.mrb[30].mxu0 }
 0x7d4   : > { %v9205_v55 = vadd.f32 %v9204_v8, %v9163_v10  ;;  %v9206_v58 = vpop.f32.mrb[30].mxu1  ;;  %v9166_v0 = vpop.f32.mrb[31].mxu0 }
 0x7d5   : > { %v9211_v1 = vadd.f32 %v9203_v52, %v8266_v14  ;;  %v9207_v30 = vpop.f32.mrb[31].mxu1 }
 0x7d6   : > { %v9212_v2 = vadd.f32 %v9205_v55, %v8267_v3 }
 0x7d7   : > { %v9237_v4 = vadd.f32 %v9226_v53, %v9211_v1  ;;  %9263 = sbr.rel (%p14003_p3) target bundleno = 2027 (0x7eb), region = 76 }
 0x7d8   : > { %v9238_v25 = vadd.f32 %v9230_v56, %v9212_v2 }
 0x7d9   : > { %vm9241_vm6 = vcmp.ge.f32.partialorder %v9237_v4, 0.0  ;;  %v9246_v12 = vmul.f32 %v9243_v36, %v9237_v4 }
 0x7da   : > { %vm9242_vm7 = vcmp.ge.f32.partialorder %v9238_v25, 0.0  ;;  %v9247_v15 = vmul.f32 %v9243_v36, %v9238_v25 }
 0x7db   : > { %v9250_v26 = vsel %vm9241_vm6, %v9237_v4, %v9246_v12 }
 0x7dc   : > { %9257 = vst [vmem:[%s9254_s28 + $0x10] sm:$0xff] %v9250_v26  ;;  %v9251_v50 = vsel %vm9242_vm7, %v9238_v25, %v9247_v15  ;;  %9292 = vst [vmem:[%s14144_s17 + $0x70] sm:$0xff] (!%p14003_p3), %v9250_v26 }
 0x7dd   : > { %9258 = vst [vmem:[%s9254_s28 + $0x18] sm:$0xff] %v9251_v50  ;;  %9293 = vst [vmem:[%s14144_s17 + $0x78] sm:$0xff] (!%p14003_p3), %v9251_v50 }
 0x7e4   : > { %v9264_v16 = vld [vmem:[#allocation2] sm:$0xff]  ;;  %v9265_v17 = vld [vmem:[#allocation2 + $0x8] sm:$0xff]  ;;  %v9266_v11 = vld [vmem:[#allocation2 + $0x10] sm:$0xff] }
 0x7e5   : > { %9268 = vst [vmem:[%s14144_s17] sm:$0xff] %v9264_v16  ;;  %9269 = vst [vmem:[%s14144_s17 + $0x8] sm:$0xff] %v9265_v17  ;;  %v9267_v18 = vld [vmem:[#allocation2 + $0x18] sm:$0xff]  ;;  %v9273_v19 = vld [vmem:[#allocation2 + $0x20] sm:$0xff] }
 0x7e6   : > { %9270 = vst [vmem:[%s14144_s17 + $0x10] sm:$0xff] %v9266_v11  ;;  %v9274_v46 = vld [vmem:[#allocation2 + $0x28] sm:$0xff]  ;;  %9271 = vst [vmem:[%s14144_s17 + $0x18] sm:$0xff] %v9267_v18  ;;  %v9275_v40 = vld [vmem:[#allocation2 + $0x30] sm:$0xff] }
 0x7e7   : > { %9277 = vst [vmem:[%s14144_s17 + $0x20] sm:$0xff] %v9273_v19  ;;  %9278 = vst [vmem:[%s14144_s17 + $0x28] sm:$0xff] %v9274_v46  ;;  %v9276_v20 = vld [vmem:[#allocation2 + $0x38] sm:$0xff]  ;;  %v9282_v22 = vld [vmem:[#allocation2 + $0x40] sm:$0xff] }
 0x7e8   : > { %9279 = vst [vmem:[%s14144_s17 + $0x30] sm:$0xff] %v9275_v40  ;;  %9280 = vst [vmem:[%s14144_s17 + $0x38] sm:$0xff] %v9276_v20  ;;  %v9283_v47 = vld [vmem:[#allocation2 + $0x48] sm:$0xff]  ;;  %v9284_v9 = vld [vmem:[#allocation2 + $0x50] sm:$0xff] }
 0x7e9   : > { %9286 = vst [vmem:[%s14144_s17 + $0x40] sm:$0xff] %v9282_v22  ;;  %v9285_v23 = vld [vmem:[#allocation2 + $0x58] sm:$0xff]  ;;  %9287 = vst [vmem:[%s14144_s17 + $0x48] sm:$0xff] %v9283_v47 }
 0x7ea   : > { %9288 = vst [vmem:[%s14144_s17 + $0x50] sm:$0xff] %v9284_v9  ;;  %9289 = vst [vmem:[%s14144_s17 + $0x58] sm:$0xff] %v9285_v23 }
 0x7eb PF: > { %s17_s25 = sadd.s32 1, %s12405_s25   ;;  %s14145_s8 = sld [smem:[#allocation14_spill]] }
 0x7ec   : > { %p14_p8 = scmp.ge.s32.totalorder %s17_s25, 26   ;;  %s14146_s12 = sld [smem:[#allocation15_spill]] }
 0x7ed   : > { %s14147_s18 = smov %s12381_s19  ;;  %s14148_s19 = smov %s12385_s20 }
 0x7ee   : > { %s14149_s20 = smov %s12574_s21  ;;  %s14150_s21 = smov %s12397_s23 }
 0x7ef   : > { %s14151_s22 = smov %s12401_s24  ;;  %16 = sbr.rel (!%p14_p8) target bundleno = 10 (0xa), region = 129 }
 0x7f1   : > { %s14152_s23 = smov %s14145_s8 }
 0x7f2   : > { %s14153_s24 = smov %s14146_s12 }
 0x7f6   :  { %9305 = vsyncpa [#allocation5], 1 }
 0x7f7   :  { %9307 = vsyncpa [#allocation5 + $0x1], 1 }
 0x7f8   :  { %9308 = vsyncpa [#allocation7], 1 }

</bundles_post_ra>
